<compile_context>
chip_gen: v5e
topology: v5e:2x2
jax: 0.10.0
libtpu: 0.0.40
codegen_flags: <defaults>
</compile_context>

<pallas_src>
import math

import numpy as np
import jax
import jax.numpy as jnp
from jax.experimental import pallas as pl
from jax.experimental.pallas import tpu as pltpu


_LN_EPS = 1e-5                       # nn.LayerNorm default
_VMEM_LIMIT = 64 * 1024 * 1024       # explicit scoped-VMEM budget (<= v7x physical)


# ----------------------------- in-kernel helpers ----------------------------

def _ln(x, g, b, eps=_LN_EPS):
    mu = jnp.mean(x, axis=-1, keepdims=True)
    var = jnp.mean((x - mu) ** 2, axis=-1, keepdims=True)
    return (x - mu) * jax.lax.rsqrt(var + eps) * g + b


def _erf(x):
    # TODO(synk): lax.erf lowering in Mosaic is uncertain; use Abramowitz&Stegun
    # 7.1.26 rational approximation (|err| <= 1.5e-7 -> f32-exact for GELU).
    z = jnp.abs(x)
    t = 1.0 / (1.0 + 0.3275911 * z)
    poly = ((((1.061405429 * t - 1.453152027) * t + 1.421413741) * t
             - 0.284496736) * t + 0.254829592) * t
    y = 1.0 - poly * jnp.exp(-z * z)
    return jnp.where(x >= 0.0, y, -y)


def _gelu_exact(x):
    return 0.5 * x * (1.0 + _erf(x * 0.7071067811865476))


def _block_body(x, ln1g, ln1b, qkvw, qkvb, projw, projb,
                ln2g, ln2b, fc1w, fc1b, fc2w, fc2b, *, num_heads):
    """One pre-norm transformer block on a (S, D) f32 residual.

    Weight refs carry a leading depth-block dim of size 1 (streamed per layer).
    """
    S, D = x.shape
    dh = D // num_heads
    scale = float(dh) ** -0.5

    # --- LN1 + fused QKV projection (bf16 MXU, f32 accumulation) ---
    h = _ln(x, ln1g[0], ln1b[0])
    qkv = jnp.dot(h.astype(jnp.bfloat16), qkvw[0],
                  preferred_element_type=jnp.float32) + qkvb[0]        # (S, 3D)

    # --- multi-head attention, heads unrolled; per-head proj accumulation
    #     (no lane-axis concatenate).  Scale folded into q (as timm does). ---
    attn = None
    for hh in range(num_heads):
        q = (qkv[:, hh * dh:(hh + 1) * dh] * scale).astype(jnp.bfloat16)
        k = qkv[:, D + hh * dh:D + (hh + 1) * dh].astype(jnp.bfloat16)
        v = qkv[:, 2 * D + hh * dh:2 * D + (hh + 1) * dh].astype(jnp.bfloat16)
        s = jax.lax.dot_general(q, k, (((1,), (1,)), ((), ())),
                                preferred_element_type=jnp.float32)    # (S, S)
        s = s - jnp.max(s, axis=-1, keepdims=True)                     # stable softmax
        e = jnp.exp(s)
        p = e * pl.reciprocal(jnp.sum(e, axis=-1, keepdims=True), approx=True)
        hv = jnp.dot(p.astype(jnp.bfloat16), v,
                     preferred_element_type=jnp.float32)               # (S, dh)
        contrib = jnp.dot(hv.astype(jnp.bfloat16), projw[0, hh],
                          preferred_element_type=jnp.float32)          # (S, D)
        attn = contrib if attn is None else attn + contrib

    # --- output projection bias + residual ---
    x = x + attn + projb[0]

    # --- LN2 + MLP (GELU; hidden never leaves VMEM) + residual ---
    h2 = _ln(x, ln2g[0], ln2b[0])
    h2 = jnp.dot(h2.astype(jnp.bfloat16), fc1w[0],
                 preferred_element_type=jnp.float32) + fc1b[0]
    h2 = _gelu_exact(h2)
    h2 = jnp.dot(h2.astype(jnp.bfloat16), fc2w[0],
                 preferred_element_type=jnp.float32) + fc2b[0]
    return x + h2


# ----------------------------- Pallas kernels ------------------------------

def transformer_stack(x, sp, num_heads, pos=None):
    """Whole stack of transformer blocks in one pallas_call.

    x: (B, S, D) f32.  sp: dict of (depth, ...) stacked weights (bf16 matmul
    weights, f32 norms/biases).  pos (optional): (1, S, D) pos-embed fused into
    the depth==0 residual init.  grid = (B, depth); the residual stream is
    VMEM-resident across the depth axis (output index_map independent of d).
    """
    B, S, D = x.shape
    depth = sp["qkv_w"].shape[0]
    add_pos = pos is not None

    def kernel(*refs):
        x_ref = refs[0]
        off = 2 if add_pos else 1
        weights = refs[off:off + 12]
        o_ref = refs[off + 12]
        d = pl.program_id(1)

        @pl.when(d == 0)
        def _():
            if add_pos:
                o_ref[...] = x_ref[...] + refs[1][...]
            else:
                o_ref[...] = x_ref[...]

        o_ref[0] = _block_body(o_ref[0], *weights, num_heads=num_heads)

    x_spec = pl.BlockSpec((1, S, D), lambda b, d: (b, 0, 0))
    in_specs = [x_spec]
    inputs = [x]
    if add_pos:
        in_specs.append(pl.BlockSpec((1, S, D), lambda b, d: (0, 0, 0)))
        inputs.append(pos)
    names = ("ln1_g", "ln1_b", "qkv_w", "qkv_b", "proj_w", "proj_b",
             "ln2_g", "ln2_b", "fc1_w", "fc1_b", "fc2_w", "fc2_b")
    for name in names:
        arr = sp[name]
        nd = arr.ndim - 1
        in_specs.append(pl.BlockSpec((1,) + arr.shape[1:],
                                     lambda b, d, _nd=nd: (d,) + (0,) * _nd))
        inputs.append(arr)

    return pl.pallas_call(
        kernel,
        out_shape=jax.ShapeDtypeStruct((B, S, D), jnp.float32),
        grid=(B, depth),
        in_specs=in_specs,
        out_specs=x_spec,
        compiler_params=pltpu.CompilerParams(
            dimension_semantics=("parallel", "arbitrary"),
            vmem_limit_bytes=_VMEM_LIMIT),
    )(*inputs)


def _patch_embed_kernel(x_ref, w_ref, b_ref, pos_ref, o_ref):
    y = jnp.dot(x_ref[0].astype(jnp.bfloat16), w_ref[...],
                preferred_element_type=jnp.float32)
    o_ref[0] = y + b_ref[...] + pos_ref[0]


def patch_embed(x, w_bf16, b_1e, pos):
    """x: (N, L, pd) -> (N, L, E); matmul + bias + pos-embed add fused."""
    N, L, pd = x.shape
    E = w_bf16.shape[1]
    return pl.pallas_call(
        _patch_embed_kernel,
        out_shape=jax.ShapeDtypeStruct((N, L, E), jnp.float32),
        grid=(N,),
        in_specs=[pl.BlockSpec((1, L, pd), lambda n: (n, 0, 0)),
                  pl.BlockSpec((pd, E), lambda n: (0, 0)),
                  pl.BlockSpec((1, E), lambda n: (0, 0)),
                  pl.BlockSpec((1, L, E), lambda n: (0, 0, 0))],
        out_specs=pl.BlockSpec((1, L, E), lambda n: (n, 0, 0)),
        compiler_params=pltpu.CompilerParams(
            dimension_semantics=("parallel",),
            vmem_limit_bytes=_VMEM_LIMIT),
    )(x, w_bf16, b_1e, pos)


def _ln_linear_kernel(x_ref, g_ref, b_ref, w_ref, wb_ref, o_ref):
    h = _ln(x_ref[...], g_ref[...], b_ref[...])
    o_ref[...] = jnp.dot(h.astype(jnp.bfloat16), w_ref[...],
                         preferred_element_type=jnp.float32) + wb_ref[...]


def ln_linear(x2d, g_1d, b_1d, w_bf16, wb_1n):
    """Fused LayerNorm + Linear, row-tiled over M. x2d: (M, D) -> (M, N)."""
    M, D = x2d.shape
    N = w_bf16.shape[1]
    tm = M if M <= 256 else 256
    return pl.pallas_call(
        _ln_linear_kernel,
        out_shape=jax.ShapeDtypeStruct((M, N), jnp.float32),
        grid=(pl.cdiv(M, tm),),
        in_specs=[pl.BlockSpec((tm, D), lambda i: (i, 0)),
                  pl.BlockSpec((1, D), lambda i: (0, 0)),
                  pl.BlockSpec((1, D), lambda i: (0, 0)),
                  pl.BlockSpec((D, N), lambda i: (0, 0)),
                  pl.BlockSpec((1, N), lambda i: (0, 0))],
        out_specs=pl.BlockSpec((tm, N), lambda i: (i, 0)),
        compiler_params=pltpu.CompilerParams(
            dimension_semantics=("parallel",),
            vmem_limit_bytes=_VMEM_LIMIT),
    )(x2d, g_1d, b_1d, w_bf16, wb_1n)


def _loss_kernel(pred_ref, tgt_ref, mask_ref, o_ref, num_ref, den_ref):
    n = pl.program_id(0)

    @pl.when(n == 0)
    def _():
        num_ref[...] = jnp.zeros_like(num_ref)
        den_ref[...] = jnp.zeros_like(den_ref)

    diff = pred_ref[...] - tgt_ref[...]                           # (1, L, pd)
    per_patch = jnp.mean(diff * diff, axis=-1, keepdims=True)     # (1, L, 1)
    m = mask_ref[...]                                             # (1, L, 1)
    one = jnp.ones((1, 1), jnp.float32)
    num_ref[...] = num_ref[...] + jnp.sum(per_patch * m) * one
    den_ref[...] = den_ref[...] + jnp.sum(m) * one

    @pl.when(n == pl.num_programs(0) - 1)
    def _():
        # Guard against mask.sum()==0 (torch reference would NaN at mask_ratio=0).
        o_ref[...] = num_ref[...] / jnp.maximum(den_ref[...], 1e-12)


def masked_mse_loss(pred, target, mask):
    N, L, pd = pred.shape
    mask3 = mask.reshape(N, L, 1)
    out = pl.pallas_call(
        _loss_kernel,
        out_shape=jax.ShapeDtypeStruct((1, 1), jnp.float32),
        grid=(N,),
        in_specs=[pl.BlockSpec((1, L, pd), lambda n: (n, 0, 0)),
                  pl.BlockSpec((1, L, pd), lambda n: (n, 0, 0)),
                  pl.BlockSpec((1, L, 1), lambda n: (n, 0, 0))],
        out_specs=pl.BlockSpec((1, 1), lambda n: (0, 0)),
        scratch_shapes=[pltpu.VMEM((1, 1), jnp.float32),
                        pltpu.VMEM((1, 1), jnp.float32)],
        compiler_params=pltpu.CompilerParams(
            dimension_semantics=("arbitrary",),
            vmem_limit_bytes=_VMEM_LIMIT),
    )(pred, target, mask3)
    return out[0, 0]


# --------------------------- model glue (plain JAX) -------------------------

def patchify(imgs, p, C):
    N, _, H, W = imgs.shape
    h, w = H // p, W // p
    x = imgs.reshape(N, C, h, p, w, p)
    x = jnp.einsum("nchpwq->nhwpqc", x)
    return x.reshape(N, h * w, p * p * C)


def unpatchify(x, p, C):
    N, L, _ = x.shape
    h = w = int(math.sqrt(L))
    x = x.reshape(N, h, w, p, p, C)
    x = jnp.einsum("nhwpqc->nchpwq", x)
    return x.reshape(N, C, h * p, w * p)


def get_1d_sincos_pos_embed_from_grid(embed_dim, pos):
    omega = np.arange(embed_dim // 2, dtype=np.float64)
    omega /= embed_dim / 2.0
    omega = 1.0 / 10000 ** omega
    pos = pos.reshape(-1)
    out = np.einsum("m,d->md", pos, omega)
    return np.concatenate([np.sin(out), np.cos(out)], axis=1)


def get_2d_sincos_pos_embed(embed_dim, grid_size, cls_token=False):
    grid_h = np.arange(grid_size, dtype=np.float32)
    grid_w = np.arange(grid_size, dtype=np.float32)
    grid = np.meshgrid(grid_w, grid_h)           # w goes first
    grid = np.stack(grid, axis=0).reshape([2, 1, grid_size, grid_size])
    emb_h = get_1d_sincos_pos_embed_from_grid(embed_dim // 2, grid[0])
    emb_w = get_1d_sincos_pos_embed_from_grid(embed_dim // 2, grid[1])
    pos_embed = np.concatenate([emb_h, emb_w], axis=1)
    if cls_token:
        pos_embed = np.concatenate([np.zeros([1, embed_dim]), pos_embed], axis=0)
    return pos_embed.astype(np.float32)


def xavier_uniform(key, fan_in, fan_out):
    limit = math.sqrt(6.0 / (fan_in + fan_out))
    return jax.random.uniform(key, (fan_in, fan_out), jnp.float32, -limit, limit)


def init_block(key, dim, mlp_ratio):
    ks = jax.random.split(key, 4)
    hidden = int(dim * mlp_ratio)
    return dict(
        ln1_g=jnp.ones((dim,), jnp.float32), ln1_b=jnp.zeros((dim,), jnp.float32),
        qkv_w=xavier_uniform(ks[0], dim, 3 * dim), qkv_b=jnp.zeros((3 * dim,), jnp.float32),
        proj_w=xavier_uniform(ks[1], dim, dim), proj_b=jnp.zeros((dim,), jnp.float32),
        ln2_g=jnp.ones((dim,), jnp.float32), ln2_b=jnp.zeros((dim,), jnp.float32),
        fc1_w=xavier_uniform(ks[2], dim, hidden), fc1_b=jnp.zeros((hidden,), jnp.float32),
        fc2_w=xavier_uniform(ks[3], hidden, dim), fc2_b=jnp.zeros((dim,), jnp.float32),
    )


def init_params(key, cfg):
    p, C = cfg["patch_size"], cfg["in_chans"]
    E, Ed = cfg["embed_dim"], cfg["dec_dim"]
    grid = cfg["img_size"] // p
    patch_dim = p * p * C

    n_keys = 5 + cfg["depth"] + cfg["dec_depth"]
    keys = jax.random.split(key, n_keys)
    ki = iter(keys)

    return dict(
        patch_w=xavier_uniform(next(ki), patch_dim, E),
        patch_b=jnp.zeros((E,), jnp.float32),
        cls_token=0.02 * jax.random.normal(next(ki), (1, 1, E), jnp.float32),
        pos_embed=jnp.asarray(get_2d_sincos_pos_embed(E, grid, cls_token=True))[None],
        blocks=[init_block(next(ki), E, cfg["mlp_ratio"]) for _ in range(cfg["depth"])],
        norm_g=jnp.ones((E,), jnp.float32), norm_b=jnp.zeros((E,), jnp.float32),
        dec_embed_w=xavier_uniform(next(ki), E, Ed),
        dec_embed_b=jnp.zeros((Ed,), jnp.float32),
        mask_token=0.02 * jax.random.normal(next(ki), (1, 1, Ed), jnp.float32),
        dec_pos_embed=jnp.asarray(get_2d_sincos_pos_embed(Ed, grid, cls_token=True))[None],
        dec_blocks=[init_block(next(ki), Ed, cfg["mlp_ratio"]) for _ in range(cfg["dec_depth"])],
        dec_norm_g=jnp.ones((Ed,), jnp.float32), dec_norm_b=jnp.zeros((Ed,), jnp.float32),
        dec_pred_w=xavier_uniform(next(ki), Ed, patch_dim),
        dec_pred_b=jnp.zeros((patch_dim,), jnp.float32),
    )


def _stack_blocks(blocks, num_heads):
    """Stack per-layer params to (depth, ...); matmul weights cast to bf16 once."""
    D = blocks[0]["proj_w"].shape[0]
    Hd = blocks[0]["fc1_w"].shape[1]
    dh = D // num_heads
    stack = lambda fn: jnp.stack([fn(b) for b in blocks], axis=0)
    return dict(
        ln1_g=stack(lambda b: b["ln1_g"].reshape(1, D)),
        ln1_b=stack(lambda b: b["ln1_b"].reshape(1, D)),
        qkv_w=stack(lambda b: b["qkv_w"].astype(jnp.bfloat16)),
        qkv_b=stack(lambda b: b["qkv_b"].reshape(1, 3 * D)),
        proj_w=stack(lambda b: b["proj_w"].reshape(num_heads, dh, D).astype(jnp.bfloat16)),
        proj_b=stack(lambda b: b["proj_b"].reshape(1, D)),
        ln2_g=stack(lambda b: b["ln2_g"].reshape(1, D)),
        ln2_b=stack(lambda b: b["ln2_b"].reshape(1, D)),
        fc1_w=stack(lambda b: b["fc1_w"].astype(jnp.bfloat16)),
        fc1_b=stack(lambda b: b["fc1_b"].reshape(1, Hd)),
        fc2_w=stack(lambda b: b["fc2_w"].astype(jnp.bfloat16)),
        fc2_b=stack(lambda b: b["fc2_b"].reshape(1, D)),
    )


def prepare_params(params, cfg):
    """One-time prep: bf16 weight casts, bias reshapes, per-layer stacking."""
    E, Ed = cfg["embed_dim"], cfg["dec_dim"]
    pd = cfg["patch_size"] ** 2 * cfg["in_chans"]
    return dict(
        patch_w=params["patch_w"].astype(jnp.bfloat16),
        patch_b=params["patch_b"].reshape(1, E),
        pos_patch=params["pos_embed"][:, 1:, :],
        cls_pos=params["cls_token"] + params["pos_embed"][:, :1, :],
        enc_blocks=_stack_blocks(params["blocks"], cfg["num_heads"]),
        norm_g=params["norm_g"].reshape(1, E),
        norm_b=params["norm_b"].reshape(1, E),
        dec_embed_w=params["dec_embed_w"].astype(jnp.bfloat16),
        dec_embed_b=params["dec_embed_b"].reshape(1, Ed),
        mask_token=params["mask_token"],
        dec_pos_embed=params["dec_pos_embed"],
        dec_blocks=_stack_blocks(params["dec_blocks"], cfg["dec_heads"]),
        dec_norm_g=params["dec_norm_g"].reshape(1, Ed),
        dec_norm_b=params["dec_norm_b"].reshape(1, Ed),
        dec_pred_w=params["dec_pred_w"].astype(jnp.bfloat16),
        dec_pred_b=params["dec_pred_b"].reshape(1, pd),
    )


def random_masking(x, mask_ratio, key):
    N, L, D = x.shape
    len_keep = int(L * (1 - mask_ratio))
    noise = jax.random.uniform(key, (N, L), jnp.float32)
    ids_shuffle = jnp.argsort(noise, axis=1)
    ids_restore = jnp.argsort(ids_shuffle, axis=1)
    ids_keep = ids_shuffle[:, :len_keep]
    gather_idx = jnp.broadcast_to(ids_keep[:, :, None], (N, len_keep, D))
    x_masked = jnp.take_along_axis(x, gather_idx, axis=1)
    mask = jnp.ones((N, L), jnp.float32)
    mask = mask.at[:, :len_keep].set(0.0)
    mask = jnp.take_along_axis(mask, ids_restore, axis=1)
    return x_masked, mask, ids_restore


def forward_encoder(params, imgs, mask_ratio, mask_key, cfg):
    p, C, E = cfg["patch_size"], cfg["in_chans"], cfg["embed_dim"]
    N = imgs.shape[0]
    # PatchEmbed: conv(k=s=p) == patchify + linear; pos add fused into kernel.
    x = patchify(imgs, p, C)                                   # (N, L, p*p*C)
    x = patch_embed(x, params["patch_w"], params["patch_b"],
                    params["pos_patch"])                       # (N, L, E)
    x, mask, ids_restore = random_masking(x, mask_ratio, mask_key)
    cls = jnp.broadcast_to(params["cls_pos"], (N, 1, E))
    x = jnp.concatenate([cls, x], axis=1)
    x = transformer_stack(x, params["enc_blocks"], cfg["num_heads"])
    # NOTE: encoder final LayerNorm is fused with decoder_embed (ln_linear) in
    # forward_decoder; the tensor returned here is pre-final-norm.
    return x, mask, ids_restore


def forward_decoder(params, x, ids_restore, cfg):
    Ed = cfg["dec_dim"]
    B, S, E = x.shape
    L = ids_restore.shape[1]
    # Fused: encoder final LayerNorm + decoder_embed Linear (one HBM pass).
    x = ln_linear(x.reshape(B * S, E), params["norm_g"], params["norm_b"],
                  params["dec_embed_w"], params["dec_embed_b"]).reshape(B, S, Ed)
    n_mask = L + 1 - S
    mask_tokens = jnp.broadcast_to(params["mask_token"], (B, n_mask, Ed))
    x_ = jnp.concatenate([x[:, 1:, :], mask_tokens], axis=1)          # (B, L, Ed)
    gather_idx = jnp.broadcast_to(ids_restore[:, :, None], (B, L, Ed))
    x_ = jnp.take_along_axis(x_, gather_idx, axis=1)
    x = jnp.concatenate([x[:, :1, :], x_], axis=1)                    # (B, L+1, Ed)
    # dec_pos_embed add is fused into the decoder stack kernel (depth==0 init).
    x = transformer_stack(x, params["dec_blocks"], cfg["dec_heads"],
                          pos=params["dec_pos_embed"])
    Bn, Sn, Dn = x.shape
    h = ln_linear(x.reshape(Bn * Sn, Dn),
                  params["dec_norm_g"], params["dec_norm_b"],
                  params["dec_pred_w"], params["dec_pred_b"]).reshape(Bn, Sn, -1)
    return h[:, 1:, :]


def forward_loss(imgs, pred, mask, cfg):
    target = patchify(imgs, cfg["patch_size"], cfg["in_chans"])
    # norm_pix_loss = False (module default)
    return masked_mse_loss(pred, target, mask)


def mae_forward(params, imgs, mask_ratio, mask_key, cfg):
    latent, mask, ids_restore = forward_encoder(params, imgs, mask_ratio, mask_key, cfg)
    pred = forward_decoder(params, latent, ids_restore, cfg)
    bvp_map = unpatchify(pred, cfg["patch_size"], cfg["in_chans"])
    loss = forward_loss(imgs, pred, mask, cfg)
    return loss, bvp_map, mask


# --------------------------------- main -------------------------------------

if __name__ == "__main__":
    cfg = dict(
        img_size=16, patch_size=4, in_chans=4,
        embed_dim=32, depth=2, num_heads=4,
        dec_dim=32, dec_depth=2, dec_heads=4,
        mlp_ratio=4.0,
    )
    key = jax.random.PRNGKey(0)
    k_param, k_img, k_mask = jax.random.split(key, 3)

    raw_params = init_params(k_param, cfg)
    params = prepare_params(raw_params, cfg)   # bf16 casts / stacking done ONCE
    imgs = jax.random.normal(
        k_img, (2, cfg["in_chans"], cfg["img_size"], cfg["img_size"]), jnp.float32
    )

    fwd = jax.jit(lambda p_, im_, k_: mae_forward(p_, im_, 0.75, k_, cfg))
    loss, bvp_map, mask = fwd(params, imgs, k_mask)
    jax.block_until_ready((loss, bvp_map, mask))

    L = (cfg["img_size"] // cfg["patch_size"]) ** 2
    assert loss.shape == ()
    assert bvp_map.shape == (2, cfg["in_chans"], cfg["img_size"], cfg["img_size"])
    assert mask.shape == (2, L)
    assert bool(jnp.isfinite(loss))

    print("KERNEL_OK")
</pallas_src>

<mosaic_0001>
module attributes {stable_mosaic.version = 11 : i64} {
  func.func @_patch_embed_kernel(%arg0: i32, %arg1: memref<1x16x64xf32, #tpu.memory_space<vmem>>, %arg2: memref<64x32xbf16, #tpu.memory_space<vmem>>, %arg3: memref<1x32xf32, #tpu.memory_space<vmem>>, %arg4: memref<1x16x32xf32, #tpu.memory_space<vmem>>, %arg5: memref<1x16x32xf32, #tpu.memory_space<vmem>>) attributes {dimension_semantics = [#tpu.dimension_semantics<parallel>], iteration_bounds = array<i64: 2>, scalar_prefetch = 0 : i64, scratch_operands = 0 : i64, tpu.core_type = #tpu.core_type<tc>, window_params = [{transform_indices = @transform_0, window_bounds = array<i64: 1, 16, 64>}, {pipeline_mode = #tpu.pipeline_mode<synchronous>, transform_indices = @transform_1, window_bounds = array<i64: 64, 32>}, {pipeline_mode = #tpu.pipeline_mode<synchronous>, transform_indices = @transform_2, window_bounds = array<i64: 1, 32>}, {pipeline_mode = #tpu.pipeline_mode<synchronous>, transform_indices = @transform_3, window_bounds = array<i64: 1, 16, 32>}, {transform_indices = @transform_4, window_bounds = array<i64: 1, 16, 32>}]} {
    %c0 = arith.constant 0 : index
    %c0_0 = arith.constant 0 : index
    %c0_1 = arith.constant 0 : index
    %0 = vector.load %arg1[%c0, %c0_0, %c0_1] : memref<1x16x64xf32, #tpu.memory_space<vmem>>, vector<1x16x64xf32>
    %1 = vector.shape_cast %0 : vector<1x16x64xf32> to vector<16x64xf32>
    %2 = arith.truncf %1 : vector<16x64xf32> to vector<16x64xbf16>
    %c0_2 = arith.constant 0 : index
    %c0_3 = arith.constant 0 : index
    %3 = vector.load %arg2[%c0_2, %c0_3] : memref<64x32xbf16, #tpu.memory_space<vmem>>, vector<64x32xbf16>
    %cst = arith.constant dense<0.000000e+00> : vector<16x32xf32>
    %4 = tpu.matmul %2, %3, %cst {dimension_numbers = #tpu.dot_dimension_numbers<[1], [0], [0], [1], [0, 0, 1, 1], [], []>} : vector<16x64xbf16>, vector<64x32xbf16>, vector<16x32xf32> -> vector<16x32xf32>
    %c0_4 = arith.constant 0 : index
    %c0_5 = arith.constant 0 : index
    %5 = vector.load %arg3[%c0_4, %c0_5] : memref<1x32xf32, #tpu.memory_space<vmem>>, vector<1x32xf32>
    %6 = vector.broadcast %5 : vector<1x32xf32> to vector<16x32xf32>
    %7 = arith.addf %4, %6 : vector<16x32xf32>
    %c0_6 = arith.constant 0 : index
    %c0_7 = arith.constant 0 : index
    %c0_8 = arith.constant 0 : index
    %8 = vector.load %arg4[%c0_6, %c0_7, %c0_8] : memref<1x16x32xf32, #tpu.memory_space<vmem>>, vector<1x16x32xf32>
    %9 = vector.shape_cast %8 : vector<1x16x32xf32> to vector<16x32xf32>
    %10 = arith.addf %7, %9 : vector<16x32xf32>
    %c0_9 = arith.constant 0 : index
    %c0_10 = arith.constant 0 : index
    %c0_11 = arith.constant 0 : index
    %11 = vector.load %arg5[%c0_9, %c0_10, %c0_11] : memref<1x16x32xf32, #tpu.memory_space<vmem>>, vector<1x16x32xf32>
    %12 = vector.shape_cast %11 : vector<1x16x32xf32> to vector<16x32xf32>
    %13 = vector.shape_cast %10 : vector<16x32xf32> to vector<1x16x32xf32>
    tpu.vector_store %arg5[%c0_9, %c0_10, %c0_11], %13 {strides = array<i32>} : memref<1x16x32xf32, #tpu.memory_space<vmem>>, vector<1x16x32xf32>,
    return
  }
  func.func @transform_0(%arg0: i32) -> (i32, i32, i32) {
    %c0_i32 = arith.constant 0 : i32
    %c0_i32_0 = arith.constant 0 : i32
    %c0_i32_1 = arith.constant 0 : i32
    return %arg0, %c0_i32, %c0_i32_0 : i32, i32, i32
  }
  func.func @transform_1(%arg0: i32) -> (i32, i32) {
    %c0_i32 = arith.constant 0 : i32
    %c0_i32_0 = arith.constant 0 : i32
    %c0_i32_1 = arith.constant 0 : i32
    return %c0_i32, %c0_i32_0 : i32, i32
  }
  func.func @transform_2(%arg0: i32) -> (i32, i32) {
    %c0_i32 = arith.constant 0 : i32
    %c0_i32_0 = arith.constant 0 : i32
    %c0_i32_1 = arith.constant 0 : i32
    return %c0_i32, %c0_i32_0 : i32, i32
  }
  func.func @transform_3(%arg0: i32) -> (i32, i32, i32) {
    %c0_i32 = arith.constant 0 : i32
    %c0_i32_0 = arith.constant 0 : i32
    %c0_i32_1 = arith.constant 0 : i32
    %c0_i32_2 = arith.constant 0 : i32
    return %c0_i32, %c0_i32_0, %c0_i32_1 : i32, i32, i32
  }
  func.func @transform_4(%arg0: i32) -> (i32, i32, i32) {
    %c0_i32 = arith.constant 0 : i32
    %c0_i32_0 = arith.constant 0 : i32
    %c0_i32_1 = arith.constant 0 : i32
    return %arg0, %c0_i32, %c0_i32_0 : i32, i32, i32
  }
}

module attributes {stable_mosaic.version = 11 : i64} {
  func.func @kernel(%arg0: i32, %arg1: i32, %arg2: memref<1x5x32xf32, #tpu.memory_space<vmem>>, %arg3: memref<1x1x32xf32, #tpu.memory_space<vmem>>, %arg4: memref<1x1x32xf32, #tpu.memory_space<vmem>>, %arg5: memref<1x32x96xbf16, #tpu.memory_space<vmem>>, %arg6: memref<1x1x96xf32, #tpu.memory_space<vmem>>, %arg7: memref<1x4x8x32xbf16, #tpu.memory_space<vmem>>, %arg8: memref<1x1x32xf32, #tpu.memory_space<vmem>>, %arg9: memref<1x1x32xf32, #tpu.memory_space<vmem>>, %arg10: memref<1x1x32xf32, #tpu.memory_space<vmem>>, %arg11: memref<1x32x128xbf16, #tpu.memory_space<vmem>>, %arg12: memref<1x1x128xf32, #tpu.memory_space<vmem>>, %arg13: memref<1x128x32xbf16, #tpu.memory_space<vmem>>, %arg14: memref<1x1x32xf32, #tpu.memory_space<vmem>>, %arg15: memref<1x5x32xf32, #tpu.memory_space<vmem>>) attributes {dimension_semantics = [#tpu.dimension_semantics<parallel>, #tpu.dimension_semantics<arbitrary>], iteration_bounds = array<i64: 2, 2>, scalar_prefetch = 0 : i64, scratch_operands = 0 : i64, tpu.core_type = #tpu.core_type<tc>, window_params = [{transform_indices = @transform_0, window_bounds = array<i64: 1, 5, 32>}, {transform_indices = @transform_1, window_bounds = array<i64: 1, 1, 32>}, {transform_indices = @transform_2, window_bounds = array<i64: 1, 1, 32>}, {transform_indices = @transform_3, window_bounds = array<i64: 1, 32, 96>}, {transform_indices = @transform_4, window_bounds = array<i64: 1, 1, 96>}, {transform_indices = @transform_5, window_bounds = array<i64: 1, 4, 8, 32>}, {transform_indices = @transform_6, window_bounds = array<i64: 1, 1, 32>}, {transform_indices = @transform_7, window_bounds = array<i64: 1, 1, 32>}, {transform_indices = @transform_8, window_bounds = array<i64: 1, 1, 32>}, {transform_indices = @transform_9, window_bounds = array<i64: 1, 32, 128>}, {transform_indices = @transform_10, window_bounds = array<i64: 1, 1, 128>}, {transform_indices = @transform_11, window_bounds = array<i64: 1, 128, 32>}, {transform_indices = @transform_12, window_bounds = array<i64: 1, 1, 32>}, {transform_indices = @transform_13, window_bounds = array<i64: 1, 5, 32>}]} {
    %c0_i32 = arith.constant 0 : i32
    %0 = arith.cmpi eq, %arg1, %c0_i32 : i32
    %1 = arith.extui %0 : i1 to i32
    %c0_i32_0 = arith.constant 0 : i32
    %2 = arith.cmpi ne, %1, %c0_i32_0 : i32
    scf.if %2 {
      %c0_103 = arith.constant 0 : index
      %c0_104 = arith.constant 0 : index
      %c0_105 = arith.constant 0 : index
      %233 = vector.load %arg2[%c0_103, %c0_104, %c0_105] : memref<1x5x32xf32, #tpu.memory_space<vmem>>, vector<1x5x32xf32>
      %c0_106 = arith.constant 0 : index
      %c0_107 = arith.constant 0 : index
      %c0_108 = arith.constant 0 : index
      %234 = vector.load %arg15[%c0_106, %c0_107, %c0_108] : memref<1x5x32xf32, #tpu.memory_space<vmem>>, vector<1x5x32xf32>
      tpu.vector_store %arg15[%c0_106, %c0_107, %c0_108], %233 {strides = array<i32>} : memref<1x5x32xf32, #tpu.memory_space<vmem>>, vector<1x5x32xf32>,
    } else {
    }
    %c0 = arith.constant 0 : index
    %c0_1 = arith.constant 0 : index
    %c0_2 = arith.constant 0 : index
    %3 = vector.load %arg15[%c0, %c0_1, %c0_2] : memref<1x5x32xf32, #tpu.memory_space<vmem>>, vector<1x5x32xf32>
    %4 = vector.shape_cast %3 : vector<1x5x32xf32> to vector<5x32xf32>
    %c0_3 = arith.constant 0 : index
    %c0_4 = arith.constant 0 : index
    %c0_5 = arith.constant 0 : index
    %5 = vector.load %arg3[%c0_3, %c0_4, %c0_5] : memref<1x1x32xf32, #tpu.memory_space<vmem>>, vector<1x1x32xf32>
    %6 = vector.shape_cast %5 : vector<1x1x32xf32> to vector<1x32xf32>
    %c0_6 = arith.constant 0 : index
    %c0_7 = arith.constant 0 : index
    %c0_8 = arith.constant 0 : index
    %7 = vector.load %arg4[%c0_6, %c0_7, %c0_8] : memref<1x1x32xf32, #tpu.memory_space<vmem>>, vector<1x1x32xf32>
    %8 = vector.shape_cast %7 : vector<1x1x32xf32> to vector<1x32xf32>
    %cst = arith.constant dense<0.000000e+00> : vector<5xf32>
    %9 = vector.multi_reduction <add>, %4, %cst [1] : vector<5x32xf32> to vector<5xf32>
    %10 = vector.shape_cast %9 : vector<5xf32> to vector<5x1xf32>
    %cst_9 = arith.constant 3.200000e+01 : f32
    %11 = vector.broadcast %cst_9 : f32 to vector<5x1xf32>
    %12 = arith.divf %10, %11 : vector<5x1xf32>
    %13 = vector.broadcast %12 : vector<5x1xf32> to vector<5x32xf32>
    %14 = arith.subf %4, %13 : vector<5x32xf32>
    %15 = arith.mulf %14, %14 : vector<5x32xf32>
    %cst_10 = arith.constant dense<0.000000e+00> : vector<5xf32>
    %16 = vector.multi_reduction <add>, %15, %cst_10 [1] : vector<5x32xf32> to vector<5xf32>
    %17 = vector.shape_cast %16 : vector<5xf32> to vector<5x1xf32>
    %cst_11 = arith.constant 3.200000e+01 : f32
    %18 = vector.broadcast %cst_11 : f32 to vector<5x1xf32>
    %19 = arith.divf %17, %18 : vector<5x1xf32>
    %20 = vector.broadcast %12 : vector<5x1xf32> to vector<5x32xf32>
    %21 = arith.subf %4, %20 : vector<5x32xf32>
    %cst_12 = arith.constant 9.99999974E-6 : f32
    %22 = vector.broadcast %cst_12 : f32 to vector<5x1xf32>
    %23 = arith.addf %19, %22 : vector<5x1xf32>
    %24 = math.rsqrt %23 : vector<5x1xf32>
    %25 = vector.broadcast %24 : vector<5x1xf32> to vector<5x32xf32>
    %26 = arith.mulf %21, %25 : vector<5x32xf32>
    %27 = vector.broadcast %6 : vector<1x32xf32> to vector<5x32xf32>
    %28 = arith.mulf %26, %27 : vector<5x32xf32>
    %29 = vector.broadcast %8 : vector<1x32xf32> to vector<5x32xf32>
    %30 = arith.addf %28, %29 : vector<5x32xf32>
    %31 = arith.truncf %30 : vector<5x32xf32> to vector<5x32xbf16>
    %c0_13 = arith.constant 0 : index
    %c0_14 = arith.constant 0 : index
    %c0_15 = arith.constant 0 : index
    %32 = vector.load %arg5[%c0_13, %c0_14, %c0_15] : memref<1x32x96xbf16, #tpu.memory_space<vmem>>, vector<1x32x96xbf16>
    %33 = vector.shape_cast %32 : vector<1x32x96xbf16> to vector<32x96xbf16>
    %cst_16 = arith.constant dense<0.000000e+00> : vector<5x96xf32>
    %34 = tpu.matmul %31, %33, %cst_16 {dimension_numbers = #tpu.dot_dimension_numbers<[1], [0], [0], [1], [0, 0, 1, 1], [], []>} : vector<5x32xbf16>, vector<32x96xbf16>, vector<5x96xf32> -> vector<5x96xf32>
    %c0_17 = arith.constant 0 : index
    %c0_18 = arith.constant 0 : index
    %c0_19 = arith.constant 0 : index
    %35 = vector.load %arg6[%c0_17, %c0_18, %c0_19] : memref<1x1x96xf32, #tpu.memory_space<vmem>>, vector<1x1x96xf32>
    %36 = vector.shape_cast %35 : vector<1x1x96xf32> to vector<1x96xf32>
    %37 = vector.broadcast %36 : vector<1x96xf32> to vector<5x96xf32>
    %38 = arith.addf %34, %37 : vector<5x96xf32>
    %39 = vector.extract_strided_slice %38 {offsets = [0, 0], sizes = [5, 8], strides = [1, 1]} : vector<5x96xf32> to vector<5x8xf32>
    %cst_20 = arith.constant 0.353553385 : f32
    %40 = vector.broadcast %cst_20 : f32 to vector<5x8xf32>
    %41 = arith.mulf %39, %40 : vector<5x8xf32>
    %42 = arith.truncf %41 : vector<5x8xf32> to vector<5x8xbf16>
    %43 = vector.extract_strided_slice %38 {offsets = [0, 32], sizes = [5, 8], strides = [1, 1]} : vector<5x96xf32> to vector<5x8xf32>
    %44 = arith.truncf %43 : vector<5x8xf32> to vector<5x8xbf16>
    %45 = vector.extract_strided_slice %38 {offsets = [0, 64], sizes = [5, 8], strides = [1, 1]} : vector<5x96xf32> to vector<5x8xf32>
    %46 = arith.truncf %45 : vector<5x8xf32> to vector<5x8xbf16>
    %cst_21 = arith.constant dense<0.000000e+00> : vector<5x5xf32>
    %47 = tpu.matmul %42, %44, %cst_21 {dimension_numbers = #tpu.dot_dimension_numbers<[1], [1], [0], [0], [0, 0, 1, 0], [], []>} : vector<5x8xbf16>, vector<5x8xbf16>, vector<5x5xf32> -> vector<5x5xf32>
    %cst_22 = arith.constant dense<0xFF800000> : vector<5xf32>
    %48 = vector.multi_reduction <maximumf>, %47, %cst_22 [1] : vector<5x5xf32> to vector<5xf32>
    %49 = vector.shape_cast %48 : vector<5xf32> to vector<5x1xf32>
    %50 = vector.broadcast %49 : vector<5x1xf32> to vector<5x5xf32>
    %51 = arith.subf %47, %50 : vector<5x5xf32>
    %52 = math.exp %51 : vector<5x5xf32>
    %cst_23 = arith.constant dense<0.000000e+00> : vector<5xf32>
    %53 = vector.multi_reduction <add>, %52, %cst_23 [1] : vector<5x5xf32> to vector<5xf32>
    %54 = vector.shape_cast %53 : vector<5xf32> to vector<5x1xf32>
    %55 = tpu.reciprocal %54 {approx = true} : vector<5x1xf32> -> vector<5x1xf32>
    %56 = vector.broadcast %55 : vector<5x1xf32> to vector<5x5xf32>
    %57 = arith.mulf %52, %56 : vector<5x5xf32>
    %58 = arith.truncf %57 : vector<5x5xf32> to vector<5x5xbf16>
    %cst_24 = arith.constant dense<0.000000e+00> : vector<5x8xf32>
    %59 = tpu.matmul %58, %46, %cst_24 {dimension_numbers = #tpu.dot_dimension_numbers<[1], [0], [0], [1], [0, 0, 1, 1], [], []>} : vector<5x5xbf16>, vector<5x8xbf16>, vector<5x8xf32> -> vector<5x8xf32>
    %60 = arith.truncf %59 : vector<5x8xf32> to vector<5x8xbf16>
    %c0_25 = arith.constant 0 : index
    %c0_26 = arith.constant 0 : index
    %c0_27 = arith.constant 0 : index
    %c0_28 = arith.constant 0 : index
    %61 = vector.load %arg7[%c0_25, %c0_26, %c0_27, %c0_28] : memref<1x4x8x32xbf16, #tpu.memory_space<vmem>>, vector<1x1x8x32xbf16>
    %62 = vector.shape_cast %61 : vector<1x1x8x32xbf16> to vector<8x32xbf16>
    %cst_29 = arith.constant dense<0.000000e+00> : vector<5x32xf32>
    %63 = tpu.matmul %60, %62, %cst_29 {dimension_numbers = #tpu.dot_dimension_numbers<[1], [0], [0], [1], [0, 0, 1, 1], [], []>} : vector<5x8xbf16>, vector<8x32xbf16>, vector<5x32xf32> -> vector<5x32xf32>
    %64 = vector.extract_strided_slice %38 {offsets = [0, 8], sizes = [5, 8], strides = [1, 1]} : vector<5x96xf32> to vector<5x8xf32>
    %cst_30 = arith.constant 0.353553385 : f32
    %65 = vector.broadcast %cst_30 : f32 to vector<5x8xf32>
    %66 = arith.mulf %64, %65 : vector<5x8xf32>
    %67 = arith.truncf %66 : vector<5x8xf32> to vector<5x8xbf16>
    %68 = vector.extract_strided_slice %38 {offsets = [0, 40], sizes = [5, 8], strides = [1, 1]} : vector<5x96xf32> to vector<5x8xf32>
    %69 = arith.truncf %68 : vector<5x8xf32> to vector<5x8xbf16>
    %70 = vector.extract_strided_slice %38 {offsets = [0, 72], sizes = [5, 8], strides = [1, 1]} : vector<5x96xf32> to vector<5x8xf32>
    %71 = arith.truncf %70 : vector<5x8xf32> to vector<5x8xbf16>
    %cst_31 = arith.constant dense<0.000000e+00> : vector<5x5xf32>
    %72 = tpu.matmul %67, %69, %cst_31 {dimension_numbers = #tpu.dot_dimension_numbers<[1], [1], [0], [0], [0, 0, 1, 0], [], []>} : vector<5x8xbf16>, vector<5x8xbf16>, vector<5x5xf32> -> vector<5x5xf32>
    %cst_32 = arith.constant dense<0xFF800000> : vector<5xf32>
    %73 = vector.multi_reduction <maximumf>, %72, %cst_32 [1] : vector<5x5xf32> to vector<5xf32>
    %74 = vector.shape_cast %73 : vector<5xf32> to vector<5x1xf32>
    %75 = vector.broadcast %74 : vector<5x1xf32> to vector<5x5xf32>
    %76 = arith.subf %72, %75 : vector<5x5xf32>
    %77 = math.exp %76 : vector<5x5xf32>
    %cst_33 = arith.constant dense<0.000000e+00> : vector<5xf32>
    %78 = vector.multi_reduction <add>, %77, %cst_33 [1] : vector<5x5xf32> to vector<5xf32>
    %79 = vector.shape_cast %78 : vector<5xf32> to vector<5x1xf32>
    %80 = tpu.reciprocal %79 {approx = true} : vector<5x1xf32> -> vector<5x1xf32>
    %81 = vector.broadcast %80 : vector<5x1xf32> to vector<5x5xf32>
    %82 = arith.mulf %77, %81 : vector<5x5xf32>
    %83 = arith.truncf %82 : vector<5x5xf32> to vector<5x5xbf16>
    %cst_34 = arith.constant dense<0.000000e+00> : vector<5x8xf32>
    %84 = tpu.matmul %83, %71, %cst_34 {dimension_numbers = #tpu.dot_dimension_numbers<[1], [0], [0], [1], [0, 0, 1, 1], [], []>} : vector<5x5xbf16>, vector<5x8xbf16>, vector<5x8xf32> -> vector<5x8xf32>
    %85 = arith.truncf %84 : vector<5x8xf32> to vector<5x8xbf16>
    %c0_35 = arith.constant 0 : index
    %c1 = arith.constant 1 : index
    %c0_36 = arith.constant 0 : index
    %c0_37 = arith.constant 0 : index
    %86 = vector.load %arg7[%c0_35, %c1, %c0_36, %c0_37] : memref<1x4x8x32xbf16, #tpu.memory_space<vmem>>, vector<1x1x8x32xbf16>
    %87 = vector.shape_cast %86 : vector<1x1x8x32xbf16> to vector<8x32xbf16>
    %cst_38 = arith.constant dense<0.000000e+00> : vector<5x32xf32>
    %88 = tpu.matmul %85, %87, %cst_38 {dimension_numbers = #tpu.dot_dimension_numbers<[1], [0], [0], [1], [0, 0, 1, 1], [], []>} : vector<5x8xbf16>, vector<8x32xbf16>, vector<5x32xf32> -> vector<5x32xf32>
    %89 = arith.addf %63, %88 : vector<5x32xf32>
    %90 = vector.extract_strided_slice %38 {offsets = [0, 16], sizes = [5, 8], strides = [1, 1]} : vector<5x96xf32> to vector<5x8xf32>
    %cst_39 = arith.constant 0.353553385 : f32
    %91 = vector.broadcast %cst_39 : f32 to vector<5x8xf32>
    %92 = arith.mulf %90, %91 : vector<5x8xf32>
    %93 = arith.truncf %92 : vector<5x8xf32> to vector<5x8xbf16>
    %94 = vector.extract_strided_slice %38 {offsets = [0, 48], sizes = [5, 8], strides = [1, 1]} : vector<5x96xf32> to vector<5x8xf32>
    %95 = arith.truncf %94 : vector<5x8xf32> to vector<5x8xbf16>
    %96 = vector.extract_strided_slice %38 {offsets = [0, 80], sizes = [5, 8], strides = [1, 1]} : vector<5x96xf32> to vector<5x8xf32>
    %97 = arith.truncf %96 : vector<5x8xf32> to vector<5x8xbf16>
    %cst_40 = arith.constant dense<0.000000e+00> : vector<5x5xf32>
    %98 = tpu.matmul %93, %95, %cst_40 {dimension_numbers = #tpu.dot_dimension_numbers<[1], [1], [0], [0], [0, 0, 1, 0], [], []>} : vector<5x8xbf16>, vector<5x8xbf16>, vector<5x5xf32> -> vector<5x5xf32>
    %cst_41 = arith.constant dense<0xFF800000> : vector<5xf32>
    %99 = vector.multi_reduction <maximumf>, %98, %cst_41 [1] : vector<5x5xf32> to vector<5xf32>
    %100 = vector.shape_cast %99 : vector<5xf32> to vector<5x1xf32>
    %101 = vector.broadcast %100 : vector<5x1xf32> to vector<5x5xf32>
    %102 = arith.subf %98, %101 : vector<5x5xf32>
    %103 = math.exp %102 : vector<5x5xf32>
    %cst_42 = arith.constant dense<0.000000e+00> : vector<5xf32>
    %104 = vector.multi_reduction <add>, %103, %cst_42 [1] : vector<5x5xf32> to vector<5xf32>
    %105 = vector.shape_cast %104 : vector<5xf32> to vector<5x1xf32>
    %106 = tpu.reciprocal %105 {approx = true} : vector<5x1xf32> -> vector<5x1xf32>
    %107 = vector.broadcast %106 : vector<5x1xf32> to vector<5x5xf32>
    %108 = arith.mulf %103, %107 : vector<5x5xf32>
    %109 = arith.truncf %108 : vector<5x5xf32> to vector<5x5xbf16>
    %cst_43 = arith.constant dense<0.000000e+00> : vector<5x8xf32>
    %110 = tpu.matmul %109, %97, %cst_43 {dimension_numbers = #tpu.dot_dimension_numbers<[1], [0], [0], [1], [0, 0, 1, 1], [], []>} : vector<5x5xbf16>, vector<5x8xbf16>, vector<5x8xf32> -> vector<5x8xf32>
    %111 = arith.truncf %110 : vector<5x8xf32> to vector<5x8xbf16>
    %c0_44 = arith.constant 0 : index
    %c2 = arith.constant 2 : index
    %c0_45 = arith.constant 0 : index
    %c0_46 = arith.constant 0 : index
    %112 = vector.load %arg7[%c0_44, %c2, %c0_45, %c0_46] : memref<1x4x8x32xbf16, #tpu.memory_space<vmem>>, vector<1x1x8x32xbf16>
    %113 = vector.shape_cast %112 : vector<1x1x8x32xbf16> to vector<8x32xbf16>
    %cst_47 = arith.constant dense<0.000000e+00> : vector<5x32xf32>
    %114 = tpu.matmul %111, %113, %cst_47 {dimension_numbers = #tpu.dot_dimension_numbers<[1], [0], [0], [1], [0, 0, 1, 1], [], []>} : vector<5x8xbf16>, vector<8x32xbf16>, vector<5x32xf32> -> vector<5x32xf32>
    %115 = arith.addf %89, %114 : vector<5x32xf32>
    %116 = vector.extract_strided_slice %38 {offsets = [0, 24], sizes = [5, 8], strides = [1, 1]} : vector<5x96xf32> to vector<5x8xf32>
    %cst_48 = arith.constant 0.353553385 : f32
    %117 = vector.broadcast %cst_48 : f32 to vector<5x8xf32>
    %118 = arith.mulf %116, %117 : vector<5x8xf32>
    %119 = arith.truncf %118 : vector<5x8xf32> to vector<5x8xbf16>
    %120 = vector.extract_strided_slice %38 {offsets = [0, 56], sizes = [5, 8], strides = [1, 1]} : vector<5x96xf32> to vector<5x8xf32>
    %121 = arith.truncf %120 : vector<5x8xf32> to vector<5x8xbf16>
    %122 = vector.extract_strided_slice %38 {offsets = [0, 88], sizes = [5, 8], strides = [1, 1]} : vector<5x96xf32> to vector<5x8xf32>
    %123 = arith.truncf %122 : vector<5x8xf32> to vector<5x8xbf16>
    %cst_49 = arith.constant dense<0.000000e+00> : vector<5x5xf32>
    %124 = tpu.matmul %119, %121, %cst_49 {dimension_numbers = #tpu.dot_dimension_numbers<[1], [1], [0], [0], [0, 0, 1, 0], [], []>} : vector<5x8xbf16>, vector<5x8xbf16>, vector<5x5xf32> -> vector<5x5xf32>
    %cst_50 = arith.constant dense<0xFF800000> : vector<5xf32>
    %125 = vector.multi_reduction <maximumf>, %124, %cst_50 [1] : vector<5x5xf32> to vector<5xf32>
    %126 = vector.shape_cast %125 : vector<5xf32> to vector<5x1xf32>
    %127 = vector.broadcast %126 : vector<5x1xf32> to vector<5x5xf32>
    %128 = arith.subf %124, %127 : vector<5x5xf32>
    %129 = math.exp %128 : vector<5x5xf32>
    %cst_51 = arith.constant dense<0.000000e+00> : vector<5xf32>
    %130 = vector.multi_reduction <add>, %129, %cst_51 [1] : vector<5x5xf32> to vector<5xf32>
    %131 = vector.shape_cast %130 : vector<5xf32> to vector<5x1xf32>
    %132 = tpu.reciprocal %131 {approx = true} : vector<5x1xf32> -> vector<5x1xf32>
    %133 = vector.broadcast %132 : vector<5x1xf32> to vector<5x5xf32>
    %134 = arith.mulf %129, %133 : vector<5x5xf32>
    %135 = arith.truncf %134 : vector<5x5xf32> to vector<5x5xbf16>
    %cst_52 = arith.constant dense<0.000000e+00> : vector<5x8xf32>
    %136 = tpu.matmul %135, %123, %cst_52 {dimension_numbers = #tpu.dot_dimension_numbers<[1], [0], [0], [1], [0, 0, 1, 1], [], []>} : vector<5x5xbf16>, vector<5x8xbf16>, vector<5x8xf32> -> vector<5x8xf32>
    %137 = arith.truncf %136 : vector<5x8xf32> to vector<5x8xbf16>
    %c0_53 = arith.constant 0 : index
    %c3 = arith.constant 3 : index
    %c0_54 = arith.constant 0 : index
    %c0_55 = arith.constant 0 : index
    %138 = vector.load %arg7[%c0_53, %c3, %c0_54, %c0_55] : memref<1x4x8x32xbf16, #tpu.memory_space<vmem>>, vector<1x1x8x32xbf16>
    %139 = vector.shape_cast %138 : vector<1x1x8x32xbf16> to vector<8x32xbf16>
    %cst_56 = arith.constant dense<0.000000e+00> : vector<5x32xf32>
    %140 = tpu.matmul %137, %139, %cst_56 {dimension_numbers = #tpu.dot_dimension_numbers<[1], [0], [0], [1], [0, 0, 1, 1], [], []>} : vector<5x8xbf16>, vector<8x32xbf16>, vector<5x32xf32> -> vector<5x32xf32>
    %141 = arith.addf %115, %140 : vector<5x32xf32>
    %142 = arith.addf %4, %141 : vector<5x32xf32>
    %c0_57 = arith.constant 0 : index
    %c0_58 = arith.constant 0 : index
    %c0_59 = arith.constant 0 : index
    %143 = vector.load %arg8[%c0_57, %c0_58, %c0_59] : memref<1x1x32xf32, #tpu.memory_space<vmem>>, vector<1x1x32xf32>
    %144 = vector.shape_cast %143 : vector<1x1x32xf32> to vector<1x32xf32>
    %145 = vector.broadcast %144 : vector<1x32xf32> to vector<5x32xf32>
    %146 = arith.addf %142, %145 : vector<5x32xf32>
    %c0_60 = arith.constant 0 : index
    %c0_61 = arith.constant 0 : index
    %c0_62 = arith.constant 0 : index
    %147 = vector.load %arg9[%c0_60, %c0_61, %c0_62] : memref<1x1x32xf32, #tpu.memory_space<vmem>>, vector<1x1x32xf32>
    %148 = vector.shape_cast %147 : vector<1x1x32xf32> to vector<1x32xf32>
    %c0_63 = arith.constant 0 : index
    %c0_64 = arith.constant 0 : index
    %c0_65 = arith.constant 0 : index
    %149 = vector.load %arg10[%c0_63, %c0_64, %c0_65] : memref<1x1x32xf32, #tpu.memory_space<vmem>>, vector<1x1x32xf32>
    %150 = vector.shape_cast %149 : vector<1x1x32xf32> to vector<1x32xf32>
    %cst_66 = arith.constant dense<0.000000e+00> : vector<5xf32>
    %151 = vector.multi_reduction <add>, %146, %cst_66 [1] : vector<5x32xf32> to vector<5xf32>
    %152 = vector.shape_cast %151 : vector<5xf32> to vector<5x1xf32>
    %cst_67 = arith.constant 3.200000e+01 : f32
    %153 = vector.broadcast %cst_67 : f32 to vector<5x1xf32>
    %154 = arith.divf %152, %153 : vector<5x1xf32>
    %155 = vector.broadcast %154 : vector<5x1xf32> to vector<5x32xf32>
    %156 = arith.subf %146, %155 : vector<5x32xf32>
    %157 = arith.mulf %156, %156 : vector<5x32xf32>
    %cst_68 = arith.constant dense<0.000000e+00> : vector<5xf32>
    %158 = vector.multi_reduction <add>, %157, %cst_68 [1] : vector<5x32xf32> to vector<5xf32>
    %159 = vector.shape_cast %158 : vector<5xf32> to vector<5x1xf32>
    %cst_69 = arith.constant 3.200000e+01 : f32
    %160 = vector.broadcast %cst_69 : f32 to vector<5x1xf32>
    %161 = arith.divf %159, %160 : vector<5x1xf32>
    %162 = vector.broadcast %154 : vector<5x1xf32> to vector<5x32xf32>
    %163 = arith.subf %146, %162 : vector<5x32xf32>
    %cst_70 = arith.constant 9.99999974E-6 : f32
    %164 = vector.broadcast %cst_70 : f32 to vector<5x1xf32>
    %165 = arith.addf %161, %164 : vector<5x1xf32>
    %166 = math.rsqrt %165 : vector<5x1xf32>
    %167 = vector.broadcast %166 : vector<5x1xf32> to vector<5x32xf32>
    %168 = arith.mulf %163, %167 : vector<5x32xf32>
    %169 = vector.broadcast %148 : vector<1x32xf32> to vector<5x32xf32>
    %170 = arith.mulf %168, %169 : vector<5x32xf32>
    %171 = vector.broadcast %150 : vector<1x32xf32> to vector<5x32xf32>
    %172 = arith.addf %170, %171 : vector<5x32xf32>
    %173 = arith.truncf %172 : vector<5x32xf32> to vector<5x32xbf16>
    %c0_71 = arith.constant 0 : index
    %c0_72 = arith.constant 0 : index
    %c0_73 = arith.constant 0 : index
    %174 = vector.load %arg11[%c0_71, %c0_72, %c0_73] : memref<1x32x128xbf16, #tpu.memory_space<vmem>>, vector<1x32x128xbf16>
    %175 = vector.shape_cast %174 : vector<1x32x128xbf16> to vector<32x128xbf16>
    %cst_74 = arith.constant dense<0.000000e+00> : vector<5x128xf32>
    %176 = tpu.matmul %173, %175, %cst_74 {dimension_numbers = #tpu.dot_dimension_numbers<[1], [0], [0], [1], [0, 0, 1, 1], [], []>} : vector<5x32xbf16>, vector<32x128xbf16>, vector<5x128xf32> -> vector<5x128xf32>
    %c0_75 = arith.constant 0 : index
    %c0_76 = arith.constant 0 : index
    %c0_77 = arith.constant 0 : index
    %177 = vector.load %arg12[%c0_75, %c0_76, %c0_77] : memref<1x1x128xf32, #tpu.memory_space<vmem>>, vector<1x1x128xf32>
    %178 = vector.shape_cast %177 : vector<1x1x128xf32> to vector<1x128xf32>
    %179 = vector.broadcast %178 : vector<1x128xf32> to vector<5x128xf32>
    %180 = arith.addf %176, %179 : vector<5x128xf32>
    %cst_78 = arith.constant 5.000000e-01 : f32
    %181 = vector.broadcast %cst_78 : f32 to vector<5x128xf32>
    %182 = arith.mulf %181, %180 : vector<5x128xf32>
    %cst_79 = arith.constant 0.707106769 : f32
    %183 = vector.broadcast %cst_79 : f32 to vector<5x128xf32>
    %184 = arith.mulf %180, %183 : vector<5x128xf32>
    %185 = math.absf %184 : vector<5x128xf32>
    %cst_80 = arith.constant 0.327591091 : f32
    %186 = vector.broadcast %cst_80 : f32 to vector<5x128xf32>
    %187 = arith.mulf %186, %185 : vector<5x128xf32>
    %cst_81 = arith.constant 1.000000e+00 : f32
    %188 = vector.broadcast %cst_81 : f32 to vector<5x128xf32>
    %189 = arith.addf %188, %187 : vector<5x128xf32>
    %cst_82 = arith.constant 1.000000e+00 : f32
    %190 = vector.broadcast %cst_82 : f32 to vector<5x128xf32>
    %191 = arith.divf %190, %189 : vector<5x128xf32>
    %cst_83 = arith.constant 1.06140542 : f32
    %192 = vector.broadcast %cst_83 : f32 to vector<5x128xf32>
    %193 = arith.mulf %192, %191 : vector<5x128xf32>
    %cst_84 = arith.constant 1.45315206 : f32
    %194 = vector.broadcast %cst_84 : f32 to vector<5x128xf32>
    %195 = arith.subf %193, %194 : vector<5x128xf32>
    %196 = arith.mulf %195, %191 : vector<5x128xf32>
    %cst_85 = arith.constant 1.42141378 : f32
    %197 = vector.broadcast %cst_85 : f32 to vector<5x128xf32>
    %198 = arith.addf %196, %197 : vector<5x128xf32>
    %199 = arith.mulf %198, %191 : vector<5x128xf32>
    %cst_86 = arith.constant 0.284496725 : f32
    %200 = vector.broadcast %cst_86 : f32 to vector<5x128xf32>
    %201 = arith.subf %199, %200 : vector<5x128xf32>
    %202 = arith.mulf %201, %191 : vector<5x128xf32>
    %cst_87 = arith.constant 0.254829586 : f32
    %203 = vector.broadcast %cst_87 : f32 to vector<5x128xf32>
    %204 = arith.addf %202, %203 : vector<5x128xf32>
    %205 = arith.mulf %204, %191 : vector<5x128xf32>
    %cst_88 = arith.constant 0.000000e+00 : f32
    %206 = vector.broadcast %cst_88 : f32 to vector<5x128xf32>
    %207 = arith.subf %206, %185 : vector<5x128xf32>
    %208 = arith.mulf %207, %185 : vector<5x128xf32>
    %209 = math.exp %208 : vector<5x128xf32>
    %210 = arith.mulf %205, %209 : vector<5x128xf32>
    %cst_89 = arith.constant 1.000000e+00 : f32
    %211 = vector.broadcast %cst_89 : f32 to vector<5x128xf32>
    %212 = arith.subf %211, %210 : vector<5x128xf32>
    %cst_90 = arith.constant 0.000000e+00 : f32
    %213 = vector.broadcast %cst_90 : f32 to vector<5x128xf32>
    %214 = arith.cmpf oge, %184, %213 : vector<5x128xf32>
    %cst_91 = arith.constant 0.000000e+00 : f32
    %215 = vector.broadcast %cst_91 : f32 to vector<5x128xf32>
    %216 = arith.subf %215, %212 : vector<5x128xf32>
    %217 = arith.select %214, %212, %216 : vector<5x128xi1>, vector<5x128xf32>
    %cst_92 = arith.constant 1.000000e+00 : f32
    %218 = vector.broadcast %cst_92 : f32 to vector<5x128xf32>
    %219 = arith.addf %218, %217 : vector<5x128xf32>
    %220 = arith.mulf %182, %219 : vector<5x128xf32>
    %221 = arith.truncf %220 : vector<5x128xf32> to vector<5x128xbf16>
    %c0_93 = arith.constant 0 : index
    %c0_94 = arith.constant 0 : index
    %c0_95 = arith.constant 0 : index
    %222 = vector.load %arg13[%c0_93, %c0_94, %c0_95] : memref<1x128x32xbf16, #tpu.memory_space<vmem>>, vector<1x128x32xbf16>
    %223 = vector.shape_cast %222 : vector<1x128x32xbf16> to vector<128x32xbf16>
    %cst_96 = arith.constant dense<0.000000e+00> : vector<5x32xf32>
    %224 = tpu.matmul %221, %223, %cst_96 {dimension_numbers = #tpu.dot_dimension_numbers<[1], [0], [0], [1], [0, 0, 1, 1], [], []>} : vector<5x128xbf16>, vector<128x32xbf16>, vector<5x32xf32> -> vector<5x32xf32>
    %c0_97 = arith.constant 0 : index
    %c0_98 = arith.constant 0 : index
    %c0_99 = arith.constant 0 : index
    %225 = vector.load %arg14[%c0_97, %c0_98, %c0_99] : memref<1x1x32xf32, #tpu.memory_space<vmem>>, vector<1x1x32xf32>
    %226 = vector.shape_cast %225 : vector<1x1x32xf32> to vector<1x32xf32>
    %227 = vector.broadcast %226 : vector<1x32xf32> to vector<5x32xf32>
    %228 = arith.addf %224, %227 : vector<5x32xf32>
    %229 = arith.addf %146, %228 : vector<5x32xf32>
    %c0_100 = arith.constant 0 : index
    %c0_101 = arith.constant 0 : index
    %c0_102 = arith.constant 0 : index
    %230 = vector.load %arg15[%c0_100, %c0_101, %c0_102] : memref<1x5x32xf32, #tpu.memory_space<vmem>>, vector<1x5x32xf32>
    %231 = vector.shape_cast %230 : vector<1x5x32xf32> to vector<5x32xf32>
    %232 = vector.shape_cast %229 : vector<5x32xf32> to vector<1x5x32xf32>
    tpu.vector_store %arg15[%c0_100, %c0_101, %c0_102], %232 {strides = array<i32>} : memref<1x5x32xf32, #tpu.memory_space<vmem>>, vector<1x5x32xf32>,
    return
  }
  func.func @transform_0(%arg0: i32, %arg1: i32) -> (i32, i32, i32) {
    %c0_i32 = arith.constant 0 : i32
    %c0_i32_0 = arith.constant 0 : i32
    %c0_i32_1 = arith.constant 0 : i32
    return %arg0, %c0_i32, %c0_i32_0 : i32, i32, i32
  }
  func.func @transform_1(%arg0: i32, %arg1: i32) -> (i32, i32, i32) {
    %c0_i32 = arith.constant 0 : i32
    %c0_i32_0 = arith.constant 0 : i32
    %c0_i32_1 = arith.constant 0 : i32
    return %arg1, %c0_i32, %c0_i32_0 : i32, i32, i32
  }
  func.func @transform_2(%arg0: i32, %arg1: i32) -> (i32, i32, i32) {
    %c0_i32 = arith.constant 0 : i32
    %c0_i32_0 = arith.constant 0 : i32
    %c0_i32_1 = arith.constant 0 : i32
    return %arg1, %c0_i32, %c0_i32_0 : i32, i32, i32
  }
  func.func @transform_3(%arg0: i32, %arg1: i32) -> (i32, i32, i32) {
    %c0_i32 = arith.constant 0 : i32
    %c0_i32_0 = arith.constant 0 : i32
    %c0_i32_1 = arith.constant 0 : i32
    return %arg1, %c0_i32, %c0_i32_0 : i32, i32, i32
  }
  func.func @transform_4(%arg0: i32, %arg1: i32) -> (i32, i32, i32) {
    %c0_i32 = arith.constant 0 : i32
    %c0_i32_0 = arith.constant 0 : i32
    %c0_i32_1 = arith.constant 0 : i32
    return %arg1, %c0_i32, %c0_i32_0 : i32, i32, i32
  }
  func.func @transform_5(%arg0: i32, %arg1: i32) -> (i32, i32, i32, i32) {
    %c0_i32 = arith.constant 0 : i32
    %c0_i32_0 = arith.constant 0 : i32
    %c0_i32_1 = arith.constant 0 : i32
    %c0_i32_2 = arith.constant 0 : i32
    return %arg1, %c0_i32, %c0_i32_0, %c0_i32_1 : i32, i32, i32, i32
  }
  func.func @transform_6(%arg0: i32, %arg1: i32) -> (i32, i32, i32) {
    %c0_i32 = arith.constant 0 : i32
    %c0_i32_0 = arith.constant 0 : i32
    %c0_i32_1 = arith.constant 0 : i32
    return %arg1, %c0_i32, %c0_i32_0 : i32, i32, i32
  }
  func.func @transform_7(%arg0: i32, %arg1: i32) -> (i32, i32, i32) {
    %c0_i32 = arith.constant 0 : i32
    %c0_i32_0 = arith.constant 0 : i32
    %c0_i32_1 = arith.constant 0 : i32
    return %arg1, %c0_i32, %c0_i32_0 : i32, i32, i32
  }
  func.func @transform_8(%arg0: i32, %arg1: i32) -> (i32, i32, i32) {
    %c0_i32 = arith.constant 0 : i32
    %c0_i32_0 = arith.constant 0 : i32
    %c0_i32_1 = arith.constant 0 : i32
    return %arg1, %c0_i32, %c0_i32_0 : i32, i32, i32
  }
  func.func @transform_9(%arg0: i32, %arg1: i32) -> (i32, i32, i32) {
    %c0_i32 = arith.constant 0 : i32
    %c0_i32_0 = arith.constant 0 : i32
    %c0_i32_1 = arith.constant 0 : i32
    return %arg1, %c0_i32, %c0_i32_0 : i32, i32, i32
  }
  func.func @transform_10(%arg0: i32, %arg1: i32) -> (i32, i32, i32) {
    %c0_i32 = arith.constant 0 : i32
    %c0_i32_0 = arith.constant 0 : i32
    %c0_i32_1 = arith.constant 0 : i32
    return %arg1, %c0_i32, %c0_i32_0 : i32, i32, i32
  }
  func.func @transform_11(%arg0: i32, %arg1: i32) -> (i32, i32, i32) {
    %c0_i32 = arith.constant 0 : i32
    %c0_i32_0 = arith.constant 0 : i32
    %c0_i32_1 = arith.constant 0 : i32
    return %arg1, %c0_i32, %c0_i32_0 : i32, i32, i32
  }
  func.func @transform_12(%arg0: i32, %arg1: i32) -> (i32, i32, i32) {
    %c0_i32 = arith.constant 0 : i32
    %c0_i32_0 = arith.constant 0 : i32
    %c0_i32_1 = arith.constant 0 : i32
    return %arg1, %c0_i32, %c0_i32_0 : i32, i32, i32
  }
  func.func @transform_13(%arg0: i32, %arg1: i32) -> (i32, i32, i32) {
    %c0_i32 = arith.constant 0 : i32
    %c0_i32_0 = arith.constant 0 : i32
    %c0_i32_1 = arith.constant 0 : i32
    return %arg0, %c0_i32, %c0_i32_0 : i32, i32, i32
  }
}

module attributes {stable_mosaic.version = 11 : i64} {
  func.func @_ln_linear_kernel(%arg0: i32, %arg1: memref<10x32xf32, #tpu.memory_space<vmem>>, %arg2: memref<1x32xf32, #tpu.memory_space<vmem>>, %arg3: memref<1x32xf32, #tpu.memory_space<vmem>>, %arg4: memref<32x32xbf16, #tpu.memory_space<vmem>>, %arg5: memref<1x32xf32, #tpu.memory_space<vmem>>, %arg6: memref<10x32xf32, #tpu.memory_space<vmem>>) attributes {dimension_semantics = [#tpu.dimension_semantics<parallel>], iteration_bounds = array<i64: 1>, scalar_prefetch = 0 : i64, scratch_operands = 0 : i64, tpu.core_type = #tpu.core_type<tc>, window_params = [{transform_indices = @transform_0, window_bounds = array<i64: 10, 32>}, {pipeline_mode = #tpu.pipeline_mode<synchronous>, transform_indices = @transform_1, window_bounds = array<i64: 1, 32>}, {pipeline_mode = #tpu.pipeline_mode<synchronous>, transform_indices = @transform_2, window_bounds = array<i64: 1, 32>}, {pipeline_mode = #tpu.pipeline_mode<synchronous>, transform_indices = @transform_3, window_bounds = array<i64: 32, 32>}, {pipeline_mode = #tpu.pipeline_mode<synchronous>, transform_indices = @transform_4, window_bounds = array<i64: 1, 32>}, {transform_indices = @transform_5, window_bounds = array<i64: 10, 32>}]} {
    %c0 = arith.constant 0 : index
    %c0_0 = arith.constant 0 : index
    %0 = vector.load %arg1[%c0, %c0_0] : memref<10x32xf32, #tpu.memory_space<vmem>>, vector<10x32xf32>
    %c0_1 = arith.constant 0 : index
    %c0_2 = arith.constant 0 : index
    %1 = vector.load %arg2[%c0_1, %c0_2] : memref<1x32xf32, #tpu.memory_space<vmem>>, vector<1x32xf32>
    %c0_3 = arith.constant 0 : index
    %c0_4 = arith.constant 0 : index
    %2 = vector.load %arg3[%c0_3, %c0_4] : memref<1x32xf32, #tpu.memory_space<vmem>>, vector<1x32xf32>
    %cst = arith.constant dense<0.000000e+00> : vector<10xf32>
    %3 = vector.multi_reduction <add>, %0, %cst [1] : vector<10x32xf32> to vector<10xf32>
    %4 = vector.shape_cast %3 : vector<10xf32> to vector<10x1xf32>
    %cst_5 = arith.constant 3.200000e+01 : f32
    %5 = vector.broadcast %cst_5 : f32 to vector<10x1xf32>
    %6 = arith.divf %4, %5 : vector<10x1xf32>
    %7 = vector.broadcast %6 : vector<10x1xf32> to vector<10x32xf32>
    %8 = arith.subf %0, %7 : vector<10x32xf32>
    %9 = arith.mulf %8, %8 : vector<10x32xf32>
    %cst_6 = arith.constant dense<0.000000e+00> : vector<10xf32>
    %10 = vector.multi_reduction <add>, %9, %cst_6 [1] : vector<10x32xf32> to vector<10xf32>
    %11 = vector.shape_cast %10 : vector<10xf32> to vector<10x1xf32>
    %cst_7 = arith.constant 3.200000e+01 : f32
    %12 = vector.broadcast %cst_7 : f32 to vector<10x1xf32>
    %13 = arith.divf %11, %12 : vector<10x1xf32>
    %14 = vector.broadcast %6 : vector<10x1xf32> to vector<10x32xf32>
    %15 = arith.subf %0, %14 : vector<10x32xf32>
    %cst_8 = arith.constant 9.99999974E-6 : f32
    %16 = vector.broadcast %cst_8 : f32 to vector<10x1xf32>
    %17 = arith.addf %13, %16 : vector<10x1xf32>
    %18 = math.rsqrt %17 : vector<10x1xf32>
    %19 = vector.broadcast %18 : vector<10x1xf32> to vector<10x32xf32>
    %20 = arith.mulf %15, %19 : vector<10x32xf32>
    %21 = vector.broadcast %1 : vector<1x32xf32> to vector<10x32xf32>
    %22 = arith.mulf %20, %21 : vector<10x32xf32>
    %23 = vector.broadcast %2 : vector<1x32xf32> to vector<10x32xf32>
    %24 = arith.addf %22, %23 : vector<10x32xf32>
    %25 = arith.truncf %24 : vector<10x32xf32> to vector<10x32xbf16>
    %c0_9 = arith.constant 0 : index
    %c0_10 = arith.constant 0 : index
    %26 = vector.load %arg4[%c0_9, %c0_10] : memref<32x32xbf16, #tpu.memory_space<vmem>>, vector<32x32xbf16>
    %cst_11 = arith.constant dense<0.000000e+00> : vector<10x32xf32>
    %27 = tpu.matmul %25, %26, %cst_11 {dimension_numbers = #tpu.dot_dimension_numbers<[1], [0], [0], [1], [0, 0, 1, 1], [], []>} : vector<10x32xbf16>, vector<32x32xbf16>, vector<10x32xf32> -> vector<10x32xf32>
    %c0_12 = arith.constant 0 : index
    %c0_13 = arith.constant 0 : index
    %28 = vector.load %arg5[%c0_12, %c0_13] : memref<1x32xf32, #tpu.memory_space<vmem>>, vector<1x32xf32>
    %29 = vector.broadcast %28 : vector<1x32xf32> to vector<10x32xf32>
    %30 = arith.addf %27, %29 : vector<10x32xf32>
    %c0_14 = arith.constant 0 : index
    %c0_15 = arith.constant 0 : index
    %31 = vector.load %arg6[%c0_14, %c0_15] : memref<10x32xf32, #tpu.memory_space<vmem>>, vector<10x32xf32>
    tpu.vector_store %arg6[%c0_14, %c0_15], %30 {strides = array<i32>} : memref<10x32xf32, #tpu.memory_space<vmem>>, vector<10x32xf32>,
    return
  }
  func.func @transform_0(%arg0: i32) -> (i32, i32) {
    %c0_i32 = arith.constant 0 : i32
    %c0_i32_0 = arith.constant 0 : i32
    return %arg0, %c0_i32 : i32, i32
  }
  func.func @transform_1(%arg0: i32) -> (i32, i32) {
    %c0_i32 = arith.constant 0 : i32
    %c0_i32_0 = arith.constant 0 : i32
    %c0_i32_1 = arith.constant 0 : i32
    return %c0_i32, %c0_i32_0 : i32, i32
  }
  func.func @transform_2(%arg0: i32) -> (i32, i32) {
    %c0_i32 = arith.constant 0 : i32
    %c0_i32_0 = arith.constant 0 : i32
    %c0_i32_1 = arith.constant 0 : i32
    return %c0_i32, %c0_i32_0 : i32, i32
  }
  func.func @transform_3(%arg0: i32) -> (i32, i32) {
    %c0_i32 = arith.constant 0 : i32
    %c0_i32_0 = arith.constant 0 : i32
    %c0_i32_1 = arith.constant 0 : i32
    return %c0_i32, %c0_i32_0 : i32, i32
  }
  func.func @transform_4(%arg0: i32) -> (i32, i32) {
    %c0_i32 = arith.constant 0 : i32
    %c0_i32_0 = arith.constant 0 : i32
    %c0_i32_1 = arith.constant 0 : i32
    return %c0_i32, %c0_i32_0 : i32, i32
  }
  func.func @transform_5(%arg0: i32) -> (i32, i32) {
    %c0_i32 = arith.constant 0 : i32
    %c0_i32_0 = arith.constant 0 : i32
    return %arg0, %c0_i32 : i32, i32
  }
}

module attributes {stable_mosaic.version = 11 : i64} {
  func.func @kernel(%arg0: i32, %arg1: i32, %arg2: memref<1x17x32xf32, #tpu.memory_space<vmem>>, %arg3: memref<1x17x32xf32, #tpu.memory_space<vmem>>, %arg4: memref<1x1x32xf32, #tpu.memory_space<vmem>>, %arg5: memref<1x1x32xf32, #tpu.memory_space<vmem>>, %arg6: memref<1x32x96xbf16, #tpu.memory_space<vmem>>, %arg7: memref<1x1x96xf32, #tpu.memory_space<vmem>>, %arg8: memref<1x4x8x32xbf16, #tpu.memory_space<vmem>>, %arg9: memref<1x1x32xf32, #tpu.memory_space<vmem>>, %arg10: memref<1x1x32xf32, #tpu.memory_space<vmem>>, %arg11: memref<1x1x32xf32, #tpu.memory_space<vmem>>, %arg12: memref<1x32x128xbf16, #tpu.memory_space<vmem>>, %arg13: memref<1x1x128xf32, #tpu.memory_space<vmem>>, %arg14: memref<1x128x32xbf16, #tpu.memory_space<vmem>>, %arg15: memref<1x1x32xf32, #tpu.memory_space<vmem>>, %arg16: memref<1x17x32xf32, #tpu.memory_space<vmem>>) attributes {dimension_semantics = [#tpu.dimension_semantics<parallel>, #tpu.dimension_semantics<arbitrary>], iteration_bounds = array<i64: 2, 2>, scalar_prefetch = 0 : i64, scratch_operands = 0 : i64, tpu.core_type = #tpu.core_type<tc>, window_params = [{transform_indices = @transform_0, window_bounds = array<i64: 1, 17, 32>}, {pipeline_mode = #tpu.pipeline_mode<synchronous>, transform_indices = @transform_1, window_bounds = array<i64: 1, 17, 32>}, {transform_indices = @transform_2, window_bounds = array<i64: 1, 1, 32>}, {transform_indices = @transform_3, window_bounds = array<i64: 1, 1, 32>}, {transform_indices = @transform_4, window_bounds = array<i64: 1, 32, 96>}, {transform_indices = @transform_5, window_bounds = array<i64: 1, 1, 96>}, {transform_indices = @transform_6, window_bounds = array<i64: 1, 4, 8, 32>}, {transform_indices = @transform_7, window_bounds = array<i64: 1, 1, 32>}, {transform_indices = @transform_8, window_bounds = array<i64: 1, 1, 32>}, {transform_indices = @transform_9, window_bounds = array<i64: 1, 1, 32>}, {transform_indices = @transform_10, window_bounds = array<i64: 1, 32, 128>}, {transform_indices = @transform_11, window_bounds = array<i64: 1, 1, 128>}, {transform_indices = @transform_12, window_bounds = array<i64: 1, 128, 32>}, {transform_indices = @transform_13, window_bounds = array<i64: 1, 1, 32>}, {transform_indices = @transform_14, window_bounds = array<i64: 1, 17, 32>}]} {
    %c0_i32 = arith.constant 0 : i32
    %0 = arith.cmpi eq, %arg1, %c0_i32 : i32
    %1 = arith.extui %0 : i1 to i32
    %c0_i32_0 = arith.constant 0 : i32
    %2 = arith.cmpi ne, %1, %c0_i32_0 : i32
    scf.if %2 {
      %c0_103 = arith.constant 0 : index
      %c0_104 = arith.constant 0 : index
      %c0_105 = arith.constant 0 : index
      %233 = vector.load %arg2[%c0_103, %c0_104, %c0_105] : memref<1x17x32xf32, #tpu.memory_space<vmem>>, vector<1x17x32xf32>
      %c0_106 = arith.constant 0 : index
      %c0_107 = arith.constant 0 : index
      %c0_108 = arith.constant 0 : index
      %234 = vector.load %arg3[%c0_106, %c0_107, %c0_108] : memref<1x17x32xf32, #tpu.memory_space<vmem>>, vector<1x17x32xf32>
      %235 = arith.addf %233, %234 : vector<1x17x32xf32>
      %c0_109 = arith.constant 0 : index
      %c0_110 = arith.constant 0 : index
      %c0_111 = arith.constant 0 : index
      %236 = vector.load %arg16[%c0_109, %c0_110, %c0_111] : memref<1x17x32xf32, #tpu.memory_space<vmem>>, vector<1x17x32xf32>
      tpu.vector_store %arg16[%c0_109, %c0_110, %c0_111], %235 {strides = array<i32>} : memref<1x17x32xf32, #tpu.memory_space<vmem>>, vector<1x17x32xf32>,
    } else {
    }
    %c0 = arith.constant 0 : index
    %c0_1 = arith.constant 0 : index
    %c0_2 = arith.constant 0 : index
    %3 = vector.load %arg16[%c0, %c0_1, %c0_2] : memref<1x17x32xf32, #tpu.memory_space<vmem>>, vector<1x17x32xf32>
    %4 = vector.shape_cast %3 : vector<1x17x32xf32> to vector<17x32xf32>
    %c0_3 = arith.constant 0 : index
    %c0_4 = arith.constant 0 : index
    %c0_5 = arith.constant 0 : index
    %5 = vector.load %arg4[%c0_3, %c0_4, %c0_5] : memref<1x1x32xf32, #tpu.memory_space<vmem>>, vector<1x1x32xf32>
    %6 = vector.shape_cast %5 : vector<1x1x32xf32> to vector<1x32xf32>
    %c0_6 = arith.constant 0 : index
    %c0_7 = arith.constant 0 : index
    %c0_8 = arith.constant 0 : index
    %7 = vector.load %arg5[%c0_6, %c0_7, %c0_8] : memref<1x1x32xf32, #tpu.memory_space<vmem>>, vector<1x1x32xf32>
    %8 = vector.shape_cast %7 : vector<1x1x32xf32> to vector<1x32xf32>
    %cst = arith.constant dense<0.000000e+00> : vector<17xf32>
    %9 = vector.multi_reduction <add>, %4, %cst [1] : vector<17x32xf32> to vector<17xf32>
    %10 = vector.shape_cast %9 : vector<17xf32> to vector<17x1xf32>
    %cst_9 = arith.constant 3.200000e+01 : f32
    %11 = vector.broadcast %cst_9 : f32 to vector<17x1xf32>
    %12 = arith.divf %10, %11 : vector<17x1xf32>
    %13 = vector.broadcast %12 : vector<17x1xf32> to vector<17x32xf32>
    %14 = arith.subf %4, %13 : vector<17x32xf32>
    %15 = arith.mulf %14, %14 : vector<17x32xf32>
    %cst_10 = arith.constant dense<0.000000e+00> : vector<17xf32>
    %16 = vector.multi_reduction <add>, %15, %cst_10 [1] : vector<17x32xf32> to vector<17xf32>
    %17 = vector.shape_cast %16 : vector<17xf32> to vector<17x1xf32>
    %cst_11 = arith.constant 3.200000e+01 : f32
    %18 = vector.broadcast %cst_11 : f32 to vector<17x1xf32>
    %19 = arith.divf %17, %18 : vector<17x1xf32>
    %20 = vector.broadcast %12 : vector<17x1xf32> to vector<17x32xf32>
    %21 = arith.subf %4, %20 : vector<17x32xf32>
    %cst_12 = arith.constant 9.99999974E-6 : f32
    %22 = vector.broadcast %cst_12 : f32 to vector<17x1xf32>
    %23 = arith.addf %19, %22 : vector<17x1xf32>
    %24 = math.rsqrt %23 : vector<17x1xf32>
    %25 = vector.broadcast %24 : vector<17x1xf32> to vector<17x32xf32>
    %26 = arith.mulf %21, %25 : vector<17x32xf32>
    %27 = vector.broadcast %6 : vector<1x32xf32> to vector<17x32xf32>
    %28 = arith.mulf %26, %27 : vector<17x32xf32>
    %29 = vector.broadcast %8 : vector<1x32xf32> to vector<17x32xf32>
    %30 = arith.addf %28, %29 : vector<17x32xf32>
    %31 = arith.truncf %30 : vector<17x32xf32> to vector<17x32xbf16>
    %c0_13 = arith.constant 0 : index
    %c0_14 = arith.constant 0 : index
    %c0_15 = arith.constant 0 : index
    %32 = vector.load %arg6[%c0_13, %c0_14, %c0_15] : memref<1x32x96xbf16, #tpu.memory_space<vmem>>, vector<1x32x96xbf16>
    %33 = vector.shape_cast %32 : vector<1x32x96xbf16> to vector<32x96xbf16>
    %cst_16 = arith.constant dense<0.000000e+00> : vector<17x96xf32>
    %34 = tpu.matmul %31, %33, %cst_16 {dimension_numbers = #tpu.dot_dimension_numbers<[1], [0], [0], [1], [0, 0, 1, 1], [], []>} : vector<17x32xbf16>, vector<32x96xbf16>, vector<17x96xf32> -> vector<17x96xf32>
    %c0_17 = arith.constant 0 : index
    %c0_18 = arith.constant 0 : index
    %c0_19 = arith.constant 0 : index
    %35 = vector.load %arg7[%c0_17, %c0_18, %c0_19] : memref<1x1x96xf32, #tpu.memory_space<vmem>>, vector<1x1x96xf32>
    %36 = vector.shape_cast %35 : vector<1x1x96xf32> to vector<1x96xf32>
    %37 = vector.broadcast %36 : vector<1x96xf32> to vector<17x96xf32>
    %38 = arith.addf %34, %37 : vector<17x96xf32>
    %39 = vector.extract_strided_slice %38 {offsets = [0, 0], sizes = [17, 8], strides = [1, 1]} : vector<17x96xf32> to vector<17x8xf32>
    %cst_20 = arith.constant 0.353553385 : f32
    %40 = vector.broadcast %cst_20 : f32 to vector<17x8xf32>
    %41 = arith.mulf %39, %40 : vector<17x8xf32>
    %42 = arith.truncf %41 : vector<17x8xf32> to vector<17x8xbf16>
    %43 = vector.extract_strided_slice %38 {offsets = [0, 32], sizes = [17, 8], strides = [1, 1]} : vector<17x96xf32> to vector<17x8xf32>
    %44 = arith.truncf %43 : vector<17x8xf32> to vector<17x8xbf16>
    %45 = vector.extract_strided_slice %38 {offsets = [0, 64], sizes = [17, 8], strides = [1, 1]} : vector<17x96xf32> to vector<17x8xf32>
    %46 = arith.truncf %45 : vector<17x8xf32> to vector<17x8xbf16>
    %cst_21 = arith.constant dense<0.000000e+00> : vector<17x17xf32>
    %47 = tpu.matmul %42, %44, %cst_21 {dimension_numbers = #tpu.dot_dimension_numbers<[1], [1], [0], [0], [0, 0, 1, 0], [], []>} : vector<17x8xbf16>, vector<17x8xbf16>, vector<17x17xf32> -> vector<17x17xf32>
    %cst_22 = arith.constant dense<0xFF800000> : vector<17xf32>
    %48 = vector.multi_reduction <maximumf>, %47, %cst_22 [1] : vector<17x17xf32> to vector<17xf32>
    %49 = vector.shape_cast %48 : vector<17xf32> to vector<17x1xf32>
    %50 = vector.broadcast %49 : vector<17x1xf32> to vector<17x17xf32>
    %51 = arith.subf %47, %50 : vector<17x17xf32>
    %52 = math.exp %51 : vector<17x17xf32>
    %cst_23 = arith.constant dense<0.000000e+00> : vector<17xf32>
    %53 = vector.multi_reduction <add>, %52, %cst_23 [1] : vector<17x17xf32> to vector<17xf32>
    %54 = vector.shape_cast %53 : vector<17xf32> to vector<17x1xf32>
    %55 = tpu.reciprocal %54 {approx = true} : vector<17x1xf32> -> vector<17x1xf32>
    %56 = vector.broadcast %55 : vector<17x1xf32> to vector<17x17xf32>
    %57 = arith.mulf %52, %56 : vector<17x17xf32>
    %58 = arith.truncf %57 : vector<17x17xf32> to vector<17x17xbf16>
    %cst_24 = arith.constant dense<0.000000e+00> : vector<17x8xf32>
    %59 = tpu.matmul %58, %46, %cst_24 {dimension_numbers = #tpu.dot_dimension_numbers<[1], [0], [0], [1], [0, 0, 1, 1], [], []>} : vector<17x17xbf16>, vector<17x8xbf16>, vector<17x8xf32> -> vector<17x8xf32>
    %60 = arith.truncf %59 : vector<17x8xf32> to vector<17x8xbf16>
    %c0_25 = arith.constant 0 : index
    %c0_26 = arith.constant 0 : index
    %c0_27 = arith.constant 0 : index
    %c0_28 = arith.constant 0 : index
    %61 = vector.load %arg8[%c0_25, %c0_26, %c0_27, %c0_28] : memref<1x4x8x32xbf16, #tpu.memory_space<vmem>>, vector<1x1x8x32xbf16>
    %62 = vector.shape_cast %61 : vector<1x1x8x32xbf16> to vector<8x32xbf16>
    %cst_29 = arith.constant dense<0.000000e+00> : vector<17x32xf32>
    %63 = tpu.matmul %60, %62, %cst_29 {dimension_numbers = #tpu.dot_dimension_numbers<[1], [0], [0], [1], [0, 0, 1, 1], [], []>} : vector<17x8xbf16>, vector<8x32xbf16>, vector<17x32xf32> -> vector<17x32xf32>
    %64 = vector.extract_strided_slice %38 {offsets = [0, 8], sizes = [17, 8], strides = [1, 1]} : vector<17x96xf32> to vector<17x8xf32>
    %cst_30 = arith.constant 0.353553385 : f32
    %65 = vector.broadcast %cst_30 : f32 to vector<17x8xf32>
    %66 = arith.mulf %64, %65 : vector<17x8xf32>
    %67 = arith.truncf %66 : vector<17x8xf32> to vector<17x8xbf16>
    %68 = vector.extract_strided_slice %38 {offsets = [0, 40], sizes = [17, 8], strides = [1, 1]} : vector<17x96xf32> to vector<17x8xf32>
    %69 = arith.truncf %68 : vector<17x8xf32> to vector<17x8xbf16>
    %70 = vector.extract_strided_slice %38 {offsets = [0, 72], sizes = [17, 8], strides = [1, 1]} : vector<17x96xf32> to vector<17x8xf32>
    %71 = arith.truncf %70 : vector<17x8xf32> to vector<17x8xbf16>
    %cst_31 = arith.constant dense<0.000000e+00> : vector<17x17xf32>
    %72 = tpu.matmul %67, %69, %cst_31 {dimension_numbers = #tpu.dot_dimension_numbers<[1], [1], [0], [0], [0, 0, 1, 0], [], []>} : vector<17x8xbf16>, vector<17x8xbf16>, vector<17x17xf32> -> vector<17x17xf32>
    %cst_32 = arith.constant dense<0xFF800000> : vector<17xf32>
    %73 = vector.multi_reduction <maximumf>, %72, %cst_32 [1] : vector<17x17xf32> to vector<17xf32>
    %74 = vector.shape_cast %73 : vector<17xf32> to vector<17x1xf32>
    %75 = vector.broadcast %74 : vector<17x1xf32> to vector<17x17xf32>
    %76 = arith.subf %72, %75 : vector<17x17xf32>
    %77 = math.exp %76 : vector<17x17xf32>
    %cst_33 = arith.constant dense<0.000000e+00> : vector<17xf32>
    %78 = vector.multi_reduction <add>, %77, %cst_33 [1] : vector<17x17xf32> to vector<17xf32>
    %79 = vector.shape_cast %78 : vector<17xf32> to vector<17x1xf32>
    %80 = tpu.reciprocal %79 {approx = true} : vector<17x1xf32> -> vector<17x1xf32>
    %81 = vector.broadcast %80 : vector<17x1xf32> to vector<17x17xf32>
    %82 = arith.mulf %77, %81 : vector<17x17xf32>
    %83 = arith.truncf %82 : vector<17x17xf32> to vector<17x17xbf16>
    %cst_34 = arith.constant dense<0.000000e+00> : vector<17x8xf32>
    %84 = tpu.matmul %83, %71, %cst_34 {dimension_numbers = #tpu.dot_dimension_numbers<[1], [0], [0], [1], [0, 0, 1, 1], [], []>} : vector<17x17xbf16>, vector<17x8xbf16>, vector<17x8xf32> -> vector<17x8xf32>
    %85 = arith.truncf %84 : vector<17x8xf32> to vector<17x8xbf16>
    %c0_35 = arith.constant 0 : index
    %c1 = arith.constant 1 : index
    %c0_36 = arith.constant 0 : index
    %c0_37 = arith.constant 0 : index
    %86 = vector.load %arg8[%c0_35, %c1, %c0_36, %c0_37] : memref<1x4x8x32xbf16, #tpu.memory_space<vmem>>, vector<1x1x8x32xbf16>
    %87 = vector.shape_cast %86 : vector<1x1x8x32xbf16> to vector<8x32xbf16>
    %cst_38 = arith.constant dense<0.000000e+00> : vector<17x32xf32>
    %88 = tpu.matmul %85, %87, %cst_38 {dimension_numbers = #tpu.dot_dimension_numbers<[1], [0], [0], [1], [0, 0, 1, 1], [], []>} : vector<17x8xbf16>, vector<8x32xbf16>, vector<17x32xf32> -> vector<17x32xf32>
    %89 = arith.addf %63, %88 : vector<17x32xf32>
    %90 = vector.extract_strided_slice %38 {offsets = [0, 16], sizes = [17, 8], strides = [1, 1]} : vector<17x96xf32> to vector<17x8xf32>
    %cst_39 = arith.constant 0.353553385 : f32
    %91 = vector.broadcast %cst_39 : f32 to vector<17x8xf32>
    %92 = arith.mulf %90, %91 : vector<17x8xf32>
    %93 = arith.truncf %92 : vector<17x8xf32> to vector<17x8xbf16>
    %94 = vector.extract_strided_slice %38 {offsets = [0, 48], sizes = [17, 8], strides = [1, 1]} : vector<17x96xf32> to vector<17x8xf32>
    %95 = arith.truncf %94 : vector<17x8xf32> to vector<17x8xbf16>
    %96 = vector.extract_strided_slice %38 {offsets = [0, 80], sizes = [17, 8], strides = [1, 1]} : vector<17x96xf32> to vector<17x8xf32>
    %97 = arith.truncf %96 : vector<17x8xf32> to vector<17x8xbf16>
    %cst_40 = arith.constant dense<0.000000e+00> : vector<17x17xf32>
    %98 = tpu.matmul %93, %95, %cst_40 {dimension_numbers = #tpu.dot_dimension_numbers<[1], [1], [0], [0], [0, 0, 1, 0], [], []>} : vector<17x8xbf16>, vector<17x8xbf16>, vector<17x17xf32> -> vector<17x17xf32>
    %cst_41 = arith.constant dense<0xFF800000> : vector<17xf32>
    %99 = vector.multi_reduction <maximumf>, %98, %cst_41 [1] : vector<17x17xf32> to vector<17xf32>
    %100 = vector.shape_cast %99 : vector<17xf32> to vector<17x1xf32>
    %101 = vector.broadcast %100 : vector<17x1xf32> to vector<17x17xf32>
    %102 = arith.subf %98, %101 : vector<17x17xf32>
    %103 = math.exp %102 : vector<17x17xf32>
    %cst_42 = arith.constant dense<0.000000e+00> : vector<17xf32>
    %104 = vector.multi_reduction <add>, %103, %cst_42 [1] : vector<17x17xf32> to vector<17xf32>
    %105 = vector.shape_cast %104 : vector<17xf32> to vector<17x1xf32>
    %106 = tpu.reciprocal %105 {approx = true} : vector<17x1xf32> -> vector<17x1xf32>
    %107 = vector.broadcast %106 : vector<17x1xf32> to vector<17x17xf32>
    %108 = arith.mulf %103, %107 : vector<17x17xf32>
    %109 = arith.truncf %108 : vector<17x17xf32> to vector<17x17xbf16>
    %cst_43 = arith.constant dense<0.000000e+00> : vector<17x8xf32>
    %110 = tpu.matmul %109, %97, %cst_43 {dimension_numbers = #tpu.dot_dimension_numbers<[1], [0], [0], [1], [0, 0, 1, 1], [], []>} : vector<17x17xbf16>, vector<17x8xbf16>, vector<17x8xf32> -> vector<17x8xf32>
    %111 = arith.truncf %110 : vector<17x8xf32> to vector<17x8xbf16>
    %c0_44 = arith.constant 0 : index
    %c2 = arith.constant 2 : index
    %c0_45 = arith.constant 0 : index
    %c0_46 = arith.constant 0 : index
    %112 = vector.load %arg8[%c0_44, %c2, %c0_45, %c0_46] : memref<1x4x8x32xbf16, #tpu.memory_space<vmem>>, vector<1x1x8x32xbf16>
    %113 = vector.shape_cast %112 : vector<1x1x8x32xbf16> to vector<8x32xbf16>
    %cst_47 = arith.constant dense<0.000000e+00> : vector<17x32xf32>
    %114 = tpu.matmul %111, %113, %cst_47 {dimension_numbers = #tpu.dot_dimension_numbers<[1], [0], [0], [1], [0, 0, 1, 1], [], []>} : vector<17x8xbf16>, vector<8x32xbf16>, vector<17x32xf32> -> vector<17x32xf32>
    %115 = arith.addf %89, %114 : vector<17x32xf32>
    %116 = vector.extract_strided_slice %38 {offsets = [0, 24], sizes = [17, 8], strides = [1, 1]} : vector<17x96xf32> to vector<17x8xf32>
    %cst_48 = arith.constant 0.353553385 : f32
    %117 = vector.broadcast %cst_48 : f32 to vector<17x8xf32>
    %118 = arith.mulf %116, %117 : vector<17x8xf32>
    %119 = arith.truncf %118 : vector<17x8xf32> to vector<17x8xbf16>
    %120 = vector.extract_strided_slice %38 {offsets = [0, 56], sizes = [17, 8], strides = [1, 1]} : vector<17x96xf32> to vector<17x8xf32>
    %121 = arith.truncf %120 : vector<17x8xf32> to vector<17x8xbf16>
    %122 = vector.extract_strided_slice %38 {offsets = [0, 88], sizes = [17, 8], strides = [1, 1]} : vector<17x96xf32> to vector<17x8xf32>
    %123 = arith.truncf %122 : vector<17x8xf32> to vector<17x8xbf16>
    %cst_49 = arith.constant dense<0.000000e+00> : vector<17x17xf32>
    %124 = tpu.matmul %119, %121, %cst_49 {dimension_numbers = #tpu.dot_dimension_numbers<[1], [1], [0], [0], [0, 0, 1, 0], [], []>} : vector<17x8xbf16>, vector<17x8xbf16>, vector<17x17xf32> -> vector<17x17xf32>
    %cst_50 = arith.constant dense<0xFF800000> : vector<17xf32>
    %125 = vector.multi_reduction <maximumf>, %124, %cst_50 [1] : vector<17x17xf32> to vector<17xf32>
    %126 = vector.shape_cast %125 : vector<17xf32> to vector<17x1xf32>
    %127 = vector.broadcast %126 : vector<17x1xf32> to vector<17x17xf32>
    %128 = arith.subf %124, %127 : vector<17x17xf32>
    %129 = math.exp %128 : vector<17x17xf32>
    %cst_51 = arith.constant dense<0.000000e+00> : vector<17xf32>
    %130 = vector.multi_reduction <add>, %129, %cst_51 [1] : vector<17x17xf32> to vector<17xf32>
    %131 = vector.shape_cast %130 : vector<17xf32> to vector<17x1xf32>
    %132 = tpu.reciprocal %131 {approx = true} : vector<17x1xf32> -> vector<17x1xf32>
    %133 = vector.broadcast %132 : vector<17x1xf32> to vector<17x17xf32>
    %134 = arith.mulf %129, %133 : vector<17x17xf32>
    %135 = arith.truncf %134 : vector<17x17xf32> to vector<17x17xbf16>
    %cst_52 = arith.constant dense<0.000000e+00> : vector<17x8xf32>
    %136 = tpu.matmul %135, %123, %cst_52 {dimension_numbers = #tpu.dot_dimension_numbers<[1], [0], [0], [1], [0, 0, 1, 1], [], []>} : vector<17x17xbf16>, vector<17x8xbf16>, vector<17x8xf32> -> vector<17x8xf32>
    %137 = arith.truncf %136 : vector<17x8xf32> to vector<17x8xbf16>
    %c0_53 = arith.constant 0 : index
    %c3 = arith.constant 3 : index
    %c0_54 = arith.constant 0 : index
    %c0_55 = arith.constant 0 : index
    %138 = vector.load %arg8[%c0_53, %c3, %c0_54, %c0_55] : memref<1x4x8x32xbf16, #tpu.memory_space<vmem>>, vector<1x1x8x32xbf16>
    %139 = vector.shape_cast %138 : vector<1x1x8x32xbf16> to vector<8x32xbf16>
    %cst_56 = arith.constant dense<0.000000e+00> : vector<17x32xf32>
    %140 = tpu.matmul %137, %139, %cst_56 {dimension_numbers = #tpu.dot_dimension_numbers<[1], [0], [0], [1], [0, 0, 1, 1], [], []>} : vector<17x8xbf16>, vector<8x32xbf16>, vector<17x32xf32> -> vector<17x32xf32>
    %141 = arith.addf %115, %140 : vector<17x32xf32>
    %142 = arith.addf %4, %141 : vector<17x32xf32>
    %c0_57 = arith.constant 0 : index
    %c0_58 = arith.constant 0 : index
    %c0_59 = arith.constant 0 : index
    %143 = vector.load %arg9[%c0_57, %c0_58, %c0_59] : memref<1x1x32xf32, #tpu.memory_space<vmem>>, vector<1x1x32xf32>
    %144 = vector.shape_cast %143 : vector<1x1x32xf32> to vector<1x32xf32>
    %145 = vector.broadcast %144 : vector<1x32xf32> to vector<17x32xf32>
    %146 = arith.addf %142, %145 : vector<17x32xf32>
    %c0_60 = arith.constant 0 : index
    %c0_61 = arith.constant 0 : index
    %c0_62 = arith.constant 0 : index
    %147 = vector.load %arg10[%c0_60, %c0_61, %c0_62] : memref<1x1x32xf32, #tpu.memory_space<vmem>>, vector<1x1x32xf32>
    %148 = vector.shape_cast %147 : vector<1x1x32xf32> to vector<1x32xf32>
    %c0_63 = arith.constant 0 : index
    %c0_64 = arith.constant 0 : index
    %c0_65 = arith.constant 0 : index
    %149 = vector.load %arg11[%c0_63, %c0_64, %c0_65] : memref<1x1x32xf32, #tpu.memory_space<vmem>>, vector<1x1x32xf32>
    %150 = vector.shape_cast %149 : vector<1x1x32xf32> to vector<1x32xf32>
    %cst_66 = arith.constant dense<0.000000e+00> : vector<17xf32>
    %151 = vector.multi_reduction <add>, %146, %cst_66 [1] : vector<17x32xf32> to vector<17xf32>
    %152 = vector.shape_cast %151 : vector<17xf32> to vector<17x1xf32>
    %cst_67 = arith.constant 3.200000e+01 : f32
    %153 = vector.broadcast %cst_67 : f32 to vector<17x1xf32>
    %154 = arith.divf %152, %153 : vector<17x1xf32>
    %155 = vector.broadcast %154 : vector<17x1xf32> to vector<17x32xf32>
    %156 = arith.subf %146, %155 : vector<17x32xf32>
    %157 = arith.mulf %156, %156 : vector<17x32xf32>
    %cst_68 = arith.constant dense<0.000000e+00> : vector<17xf32>
    %158 = vector.multi_reduction <add>, %157, %cst_68 [1] : vector<17x32xf32> to vector<17xf32>
    %159 = vector.shape_cast %158 : vector<17xf32> to vector<17x1xf32>
    %cst_69 = arith.constant 3.200000e+01 : f32
    %160 = vector.broadcast %cst_69 : f32 to vector<17x1xf32>
    %161 = arith.divf %159, %160 : vector<17x1xf32>
    %162 = vector.broadcast %154 : vector<17x1xf32> to vector<17x32xf32>
    %163 = arith.subf %146, %162 : vector<17x32xf32>
    %cst_70 = arith.constant 9.99999974E-6 : f32
    %164 = vector.broadcast %cst_70 : f32 to vector<17x1xf32>
    %165 = arith.addf %161, %164 : vector<17x1xf32>
    %166 = math.rsqrt %165 : vector<17x1xf32>
    %167 = vector.broadcast %166 : vector<17x1xf32> to vector<17x32xf32>
    %168 = arith.mulf %163, %167 : vector<17x32xf32>
    %169 = vector.broadcast %148 : vector<1x32xf32> to vector<17x32xf32>
    %170 = arith.mulf %168, %169 : vector<17x32xf32>
    %171 = vector.broadcast %150 : vector<1x32xf32> to vector<17x32xf32>
    %172 = arith.addf %170, %171 : vector<17x32xf32>
    %173 = arith.truncf %172 : vector<17x32xf32> to vector<17x32xbf16>
    %c0_71 = arith.constant 0 : index
    %c0_72 = arith.constant 0 : index
    %c0_73 = arith.constant 0 : index
    %174 = vector.load %arg12[%c0_71, %c0_72, %c0_73] : memref<1x32x128xbf16, #tpu.memory_space<vmem>>, vector<1x32x128xbf16>
    %175 = vector.shape_cast %174 : vector<1x32x128xbf16> to vector<32x128xbf16>
    %cst_74 = arith.constant dense<0.000000e+00> : vector<17x128xf32>
    %176 = tpu.matmul %173, %175, %cst_74 {dimension_numbers = #tpu.dot_dimension_numbers<[1], [0], [0], [1], [0, 0, 1, 1], [], []>} : vector<17x32xbf16>, vector<32x128xbf16>, vector<17x128xf32> -> vector<17x128xf32>
    %c0_75 = arith.constant 0 : index
    %c0_76 = arith.constant 0 : index
    %c0_77 = arith.constant 0 : index
    %177 = vector.load %arg13[%c0_75, %c0_76, %c0_77] : memref<1x1x128xf32, #tpu.memory_space<vmem>>, vector<1x1x128xf32>
    %178 = vector.shape_cast %177 : vector<1x1x128xf32> to vector<1x128xf32>
    %179 = vector.broadcast %178 : vector<1x128xf32> to vector<17x128xf32>
    %180 = arith.addf %176, %179 : vector<17x128xf32>
    %cst_78 = arith.constant 5.000000e-01 : f32
    %181 = vector.broadcast %cst_78 : f32 to vector<17x128xf32>
    %182 = arith.mulf %181, %180 : vector<17x128xf32>
    %cst_79 = arith.constant 0.707106769 : f32
    %183 = vector.broadcast %cst_79 : f32 to vector<17x128xf32>
    %184 = arith.mulf %180, %183 : vector<17x128xf32>
    %185 = math.absf %184 : vector<17x128xf32>
    %cst_80 = arith.constant 0.327591091 : f32
    %186 = vector.broadcast %cst_80 : f32 to vector<17x128xf32>
    %187 = arith.mulf %186, %185 : vector<17x128xf32>
    %cst_81 = arith.constant 1.000000e+00 : f32
    %188 = vector.broadcast %cst_81 : f32 to vector<17x128xf32>
    %189 = arith.addf %188, %187 : vector<17x128xf32>
    %cst_82 = arith.constant 1.000000e+00 : f32
    %190 = vector.broadcast %cst_82 : f32 to vector<17x128xf32>
    %191 = arith.divf %190, %189 : vector<17x128xf32>
    %cst_83 = arith.constant 1.06140542 : f32
    %192 = vector.broadcast %cst_83 : f32 to vector<17x128xf32>
    %193 = arith.mulf %192, %191 : vector<17x128xf32>
    %cst_84 = arith.constant 1.45315206 : f32
    %194 = vector.broadcast %cst_84 : f32 to vector<17x128xf32>
    %195 = arith.subf %193, %194 : vector<17x128xf32>
    %196 = arith.mulf %195, %191 : vector<17x128xf32>
    %cst_85 = arith.constant 1.42141378 : f32
    %197 = vector.broadcast %cst_85 : f32 to vector<17x128xf32>
    %198 = arith.addf %196, %197 : vector<17x128xf32>
    %199 = arith.mulf %198, %191 : vector<17x128xf32>
    %cst_86 = arith.constant 0.284496725 : f32
    %200 = vector.broadcast %cst_86 : f32 to vector<17x128xf32>
    %201 = arith.subf %199, %200 : vector<17x128xf32>
    %202 = arith.mulf %201, %191 : vector<17x128xf32>
    %cst_87 = arith.constant 0.254829586 : f32
    %203 = vector.broadcast %cst_87 : f32 to vector<17x128xf32>
    %204 = arith.addf %202, %203 : vector<17x128xf32>
    %205 = arith.mulf %204, %191 : vector<17x128xf32>
    %cst_88 = arith.constant 0.000000e+00 : f32
    %206 = vector.broadcast %cst_88 : f32 to vector<17x128xf32>
    %207 = arith.subf %206, %185 : vector<17x128xf32>
    %208 = arith.mulf %207, %185 : vector<17x128xf32>
    %209 = math.exp %208 : vector<17x128xf32>
    %210 = arith.mulf %205, %209 : vector<17x128xf32>
    %cst_89 = arith.constant 1.000000e+00 : f32
    %211 = vector.broadcast %cst_89 : f32 to vector<17x128xf32>
    %212 = arith.subf %211, %210 : vector<17x128xf32>
    %cst_90 = arith.constant 0.000000e+00 : f32
    %213 = vector.broadcast %cst_90 : f32 to vector<17x128xf32>
    %214 = arith.cmpf oge, %184, %213 : vector<17x128xf32>
    %cst_91 = arith.constant 0.000000e+00 : f32
    %215 = vector.broadcast %cst_91 : f32 to vector<17x128xf32>
    %216 = arith.subf %215, %212 : vector<17x128xf32>
    %217 = arith.select %214, %212, %216 : vector<17x128xi1>, vector<17x128xf32>
    %cst_92 = arith.constant 1.000000e+00 : f32
    %218 = vector.broadcast %cst_92 : f32 to vector<17x128xf32>
    %219 = arith.addf %218, %217 : vector<17x128xf32>
    %220 = arith.mulf %182, %219 : vector<17x128xf32>
    %221 = arith.truncf %220 : vector<17x128xf32> to vector<17x128xbf16>
    %c0_93 = arith.constant 0 : index
    %c0_94 = arith.constant 0 : index
    %c0_95 = arith.constant 0 : index
    %222 = vector.load %arg14[%c0_93, %c0_94, %c0_95] : memref<1x128x32xbf16, #tpu.memory_space<vmem>>, vector<1x128x32xbf16>
    %223 = vector.shape_cast %222 : vector<1x128x32xbf16> to vector<128x32xbf16>
    %cst_96 = arith.constant dense<0.000000e+00> : vector<17x32xf32>
    %224 = tpu.matmul %221, %223, %cst_96 {dimension_numbers = #tpu.dot_dimension_numbers<[1], [0], [0], [1], [0, 0, 1, 1], [], []>} : vector<17x128xbf16>, vector<128x32xbf16>, vector<17x32xf32> -> vector<17x32xf32>
    %c0_97 = arith.constant 0 : index
    %c0_98 = arith.constant 0 : index
    %c0_99 = arith.constant 0 : index
    %225 = vector.load %arg15[%c0_97, %c0_98, %c0_99] : memref<1x1x32xf32, #tpu.memory_space<vmem>>, vector<1x1x32xf32>
    %226 = vector.shape_cast %225 : vector<1x1x32xf32> to vector<1x32xf32>
    %227 = vector.broadcast %226 : vector<1x32xf32> to vector<17x32xf32>
    %228 = arith.addf %224, %227 : vector<17x32xf32>
    %229 = arith.addf %146, %228 : vector<17x32xf32>
    %c0_100 = arith.constant 0 : index
    %c0_101 = arith.constant 0 : index
    %c0_102 = arith.constant 0 : index
    %230 = vector.load %arg16[%c0_100, %c0_101, %c0_102] : memref<1x17x32xf32, #tpu.memory_space<vmem>>, vector<1x17x32xf32>
    %231 = vector.shape_cast %230 : vector<1x17x32xf32> to vector<17x32xf32>
    %232 = vector.shape_cast %229 : vector<17x32xf32> to vector<1x17x32xf32>
    tpu.vector_store %arg16[%c0_100, %c0_101, %c0_102], %232 {strides = array<i32>} : memref<1x17x32xf32, #tpu.memory_space<vmem>>, vector<1x17x32xf32>,
    return
  }
  func.func @transform_0(%arg0: i32, %arg1: i32) -> (i32, i32, i32) {
    %c0_i32 = arith.constant 0 : i32
    %c0_i32_0 = arith.constant 0 : i32
    %c0_i32_1 = arith.constant 0 : i32
    return %arg0, %c0_i32, %c0_i32_0 : i32, i32, i32
  }
  func.func @transform_1(%arg0: i32, %arg1: i32) -> (i32, i32, i32) {
    %c0_i32 = arith.constant 0 : i32
    %c0_i32_0 = arith.constant 0 : i32
    %c0_i32_1 = arith.constant 0 : i32
    %c0_i32_2 = arith.constant 0 : i32
    return %c0_i32, %c0_i32_0, %c0_i32_1 : i32, i32, i32
  }
  func.func @transform_2(%arg0: i32, %arg1: i32) -> (i32, i32, i32) {
    %c0_i32 = arith.constant 0 : i32
    %c0_i32_0 = arith.constant 0 : i32
    %c0_i32_1 = arith.constant 0 : i32
    return %arg1, %c0_i32, %c0_i32_0 : i32, i32, i32
  }
  func.func @transform_3(%arg0: i32, %arg1: i32) -> (i32, i32, i32) {
    %c0_i32 = arith.constant 0 : i32
    %c0_i32_0 = arith.constant 0 : i32
    %c0_i32_1 = arith.constant 0 : i32
    return %arg1, %c0_i32, %c0_i32_0 : i32, i32, i32
  }
  func.func @transform_4(%arg0: i32, %arg1: i32) -> (i32, i32, i32) {
    %c0_i32 = arith.constant 0 : i32
    %c0_i32_0 = arith.constant 0 : i32
    %c0_i32_1 = arith.constant 0 : i32
    return %arg1, %c0_i32, %c0_i32_0 : i32, i32, i32
  }
  func.func @transform_5(%arg0: i32, %arg1: i32) -> (i32, i32, i32) {
    %c0_i32 = arith.constant 0 : i32
    %c0_i32_0 = arith.constant 0 : i32
    %c0_i32_1 = arith.constant 0 : i32
    return %arg1, %c0_i32, %c0_i32_0 : i32, i32, i32
  }
  func.func @transform_6(%arg0: i32, %arg1: i32) -> (i32, i32, i32, i32) {
    %c0_i32 = arith.constant 0 : i32
    %c0_i32_0 = arith.constant 0 : i32
    %c0_i32_1 = arith.constant 0 : i32
    %c0_i32_2 = arith.constant 0 : i32
    return %arg1, %c0_i32, %c0_i32_0, %c0_i32_1 : i32, i32, i32, i32
  }
  func.func @transform_7(%arg0: i32, %arg1: i32) -> (i32, i32, i32) {
    %c0_i32 = arith.constant 0 : i32
    %c0_i32_0 = arith.constant 0 : i32
    %c0_i32_1 = arith.constant 0 : i32
    return %arg1, %c0_i32, %c0_i32_0 : i32, i32, i32
  }
  func.func @transform_8(%arg0: i32, %arg1: i32) -> (i32, i32, i32) {
    %c0_i32 = arith.constant 0 : i32
    %c0_i32_0 = arith.constant 0 : i32
    %c0_i32_1 = arith.constant 0 : i32
    return %arg1, %c0_i32, %c0_i32_0 : i32, i32, i32
  }
  func.func @transform_9(%arg0: i32, %arg1: i32) -> (i32, i32, i32) {
    %c0_i32 = arith.constant 0 : i32
    %c0_i32_0 = arith.constant 0 : i32
    %c0_i32_1 = arith.constant 0 : i32
    return %arg1, %c0_i32, %c0_i32_0 : i32, i32, i32
  }
  func.func @transform_10(%arg0: i32, %arg1: i32) -> (i32, i32, i32) {
    %c0_i32 = arith.constant 0 : i32
    %c0_i32_0 = arith.constant 0 : i32
    %c0_i32_1 = arith.constant 0 : i32
    return %arg1, %c0_i32, %c0_i32_0 : i32, i32, i32
  }
  func.func @transform_11(%arg0: i32, %arg1: i32) -> (i32, i32, i32) {
    %c0_i32 = arith.constant 0 : i32
    %c0_i32_0 = arith.constant 0 : i32
    %c0_i32_1 = arith.constant 0 : i32
    return %arg1, %c0_i32, %c0_i32_0 : i32, i32, i32
  }
  func.func @transform_12(%arg0: i32, %arg1: i32) -> (i32, i32, i32) {
    %c0_i32 = arith.constant 0 : i32
    %c0_i32_0 = arith.constant 0 : i32
    %c0_i32_1 = arith.constant 0 : i32
    return %arg1, %c0_i32, %c0_i32_0 : i32, i32, i32
  }
  func.func @transform_13(%arg0: i32, %arg1: i32) -> (i32, i32, i32) {
    %c0_i32 = arith.constant 0 : i32
    %c0_i32_0 = arith.constant 0 : i32
    %c0_i32_1 = arith.constant 0 : i32
    return %arg1, %c0_i32, %c0_i32_0 : i32, i32, i32
  }
  func.func @transform_14(%arg0: i32, %arg1: i32) -> (i32, i32, i32) {
    %c0_i32 = arith.constant 0 : i32
    %c0_i32_0 = arith.constant 0 : i32
    %c0_i32_1 = arith.constant 0 : i32
    return %arg0, %c0_i32, %c0_i32_0 : i32, i32, i32
  }
}

module attributes {stable_mosaic.version = 11 : i64} {
  func.func @_ln_linear_kernel(%arg0: i32, %arg1: memref<34x32xf32, #tpu.memory_space<vmem>>, %arg2: memref<1x32xf32, #tpu.memory_space<vmem>>, %arg3: memref<1x32xf32, #tpu.memory_space<vmem>>, %arg4: memref<32x64xbf16, #tpu.memory_space<vmem>>, %arg5: memref<1x64xf32, #tpu.memory_space<vmem>>, %arg6: memref<34x64xf32, #tpu.memory_space<vmem>>) attributes {dimension_semantics = [#tpu.dimension_semantics<parallel>], iteration_bounds = array<i64: 1>, scalar_prefetch = 0 : i64, scratch_operands = 0 : i64, tpu.core_type = #tpu.core_type<tc>, window_params = [{transform_indices = @transform_0, window_bounds = array<i64: 34, 32>}, {pipeline_mode = #tpu.pipeline_mode<synchronous>, transform_indices = @transform_1, window_bounds = array<i64: 1, 32>}, {pipeline_mode = #tpu.pipeline_mode<synchronous>, transform_indices = @transform_2, window_bounds = array<i64: 1, 32>}, {pipeline_mode = #tpu.pipeline_mode<synchronous>, transform_indices = @transform_3, window_bounds = array<i64: 32, 64>}, {pipeline_mode = #tpu.pipeline_mode<synchronous>, transform_indices = @transform_4, window_bounds = array<i64: 1, 64>}, {transform_indices = @transform_5, window_bounds = array<i64: 34, 64>}]} {
    %c0 = arith.constant 0 : index
    %c0_0 = arith.constant 0 : index
    %0 = vector.load %arg1[%c0, %c0_0] : memref<34x32xf32, #tpu.memory_space<vmem>>, vector<34x32xf32>
    %c0_1 = arith.constant 0 : index
    %c0_2 = arith.constant 0 : index
    %1 = vector.load %arg2[%c0_1, %c0_2] : memref<1x32xf32, #tpu.memory_space<vmem>>, vector<1x32xf32>
    %c0_3 = arith.constant 0 : index
    %c0_4 = arith.constant 0 : index
    %2 = vector.load %arg3[%c0_3, %c0_4] : memref<1x32xf32, #tpu.memory_space<vmem>>, vector<1x32xf32>
    %cst = arith.constant dense<0.000000e+00> : vector<34xf32>
    %3 = vector.multi_reduction <add>, %0, %cst [1] : vector<34x32xf32> to vector<34xf32>
    %4 = vector.shape_cast %3 : vector<34xf32> to vector<34x1xf32>
    %cst_5 = arith.constant 3.200000e+01 : f32
    %5 = vector.broadcast %cst_5 : f32 to vector<34x1xf32>
    %6 = arith.divf %4, %5 : vector<34x1xf32>
    %7 = vector.broadcast %6 : vector<34x1xf32> to vector<34x32xf32>
    %8 = arith.subf %0, %7 : vector<34x32xf32>
    %9 = arith.mulf %8, %8 : vector<34x32xf32>
    %cst_6 = arith.constant dense<0.000000e+00> : vector<34xf32>
    %10 = vector.multi_reduction <add>, %9, %cst_6 [1] : vector<34x32xf32> to vector<34xf32>
    %11 = vector.shape_cast %10 : vector<34xf32> to vector<34x1xf32>
    %cst_7 = arith.constant 3.200000e+01 : f32
    %12 = vector.broadcast %cst_7 : f32 to vector<34x1xf32>
    %13 = arith.divf %11, %12 : vector<34x1xf32>
    %14 = vector.broadcast %6 : vector<34x1xf32> to vector<34x32xf32>
    %15 = arith.subf %0, %14 : vector<34x32xf32>
    %cst_8 = arith.constant 9.99999974E-6 : f32
    %16 = vector.broadcast %cst_8 : f32 to vector<34x1xf32>
    %17 = arith.addf %13, %16 : vector<34x1xf32>
    %18 = math.rsqrt %17 : vector<34x1xf32>
    %19 = vector.broadcast %18 : vector<34x1xf32> to vector<34x32xf32>
    %20 = arith.mulf %15, %19 : vector<34x32xf32>
    %21 = vector.broadcast %1 : vector<1x32xf32> to vector<34x32xf32>
    %22 = arith.mulf %20, %21 : vector<34x32xf32>
    %23 = vector.broadcast %2 : vector<1x32xf32> to vector<34x32xf32>
    %24 = arith.addf %22, %23 : vector<34x32xf32>
    %25 = arith.truncf %24 : vector<34x32xf32> to vector<34x32xbf16>
    %c0_9 = arith.constant 0 : index
    %c0_10 = arith.constant 0 : index
    %26 = vector.load %arg4[%c0_9, %c0_10] : memref<32x64xbf16, #tpu.memory_space<vmem>>, vector<32x64xbf16>
    %cst_11 = arith.constant dense<0.000000e+00> : vector<34x64xf32>
    %27 = tpu.matmul %25, %26, %cst_11 {dimension_numbers = #tpu.dot_dimension_numbers<[1], [0], [0], [1], [0, 0, 1, 1], [], []>} : vector<34x32xbf16>, vector<32x64xbf16>, vector<34x64xf32> -> vector<34x64xf32>
    %c0_12 = arith.constant 0 : index
    %c0_13 = arith.constant 0 : index
    %28 = vector.load %arg5[%c0_12, %c0_13] : memref<1x64xf32, #tpu.memory_space<vmem>>, vector<1x64xf32>
    %29 = vector.broadcast %28 : vector<1x64xf32> to vector<34x64xf32>
    %30 = arith.addf %27, %29 : vector<34x64xf32>
    %c0_14 = arith.constant 0 : index
    %c0_15 = arith.constant 0 : index
    %31 = vector.load %arg6[%c0_14, %c0_15] : memref<34x64xf32, #tpu.memory_space<vmem>>, vector<34x64xf32>
    tpu.vector_store %arg6[%c0_14, %c0_15], %30 {strides = array<i32>} : memref<34x64xf32, #tpu.memory_space<vmem>>, vector<34x64xf32>,
    return
  }
  func.func @transform_0(%arg0: i32) -> (i32, i32) {
    %c0_i32 = arith.constant 0 : i32
    %c0_i32_0 = arith.constant 0 : i32
    return %arg0, %c0_i32 : i32, i32
  }
  func.func @transform_1(%arg0: i32) -> (i32, i32) {
    %c0_i32 = arith.constant 0 : i32
    %c0_i32_0 = arith.constant 0 : i32
    %c0_i32_1 = arith.constant 0 : i32
    return %c0_i32, %c0_i32_0 : i32, i32
  }
  func.func @transform_2(%arg0: i32) -> (i32, i32) {
    %c0_i32 = arith.constant 0 : i32
    %c0_i32_0 = arith.constant 0 : i32
    %c0_i32_1 = arith.constant 0 : i32
    return %c0_i32, %c0_i32_0 : i32, i32
  }
  func.func @transform_3(%arg0: i32) -> (i32, i32) {
    %c0_i32 = arith.constant 0 : i32
    %c0_i32_0 = arith.constant 0 : i32
    %c0_i32_1 = arith.constant 0 : i32
    return %c0_i32, %c0_i32_0 : i32, i32
  }
  func.func @transform_4(%arg0: i32) -> (i32, i32) {
    %c0_i32 = arith.constant 0 : i32
    %c0_i32_0 = arith.constant 0 : i32
    %c0_i32_1 = arith.constant 0 : i32
    return %c0_i32, %c0_i32_0 : i32, i32
  }
  func.func @transform_5(%arg0: i32) -> (i32, i32) {
    %c0_i32 = arith.constant 0 : i32
    %c0_i32_0 = arith.constant 0 : i32
    return %arg0, %c0_i32 : i32, i32
  }
}

module attributes {stable_mosaic.version = 11 : i64} {
  func.func @_loss_kernel(%arg0: i32, %arg1: memref<1x16x64xf32, #tpu.memory_space<vmem>>, %arg2: memref<1x16x64xf32, #tpu.memory_space<vmem>>, %arg3: memref<1x16x1xf32, #tpu.memory_space<vmem>>, %arg4: memref<1x1xf32, #tpu.memory_space<vmem>>, %arg5: memref<1x1xf32, #tpu.memory_space<vmem>>, %arg6: memref<1x1xf32, #tpu.memory_space<vmem>>) attributes {dimension_semantics = [#tpu.dimension_semantics<arbitrary>], iteration_bounds = array<i64: 2>, scalar_prefetch = 0 : i64, scratch_operands = 2 : i64, tpu.core_type = #tpu.core_type<tc>, window_params = [{transform_indices = @transform_0, window_bounds = array<i64: 1, 16, 64>}, {transform_indices = @transform_1, window_bounds = array<i64: 1, 16, 64>}, {transform_indices = @transform_2, window_bounds = array<i64: 1, 16, 1>}, {pipeline_mode = #tpu.pipeline_mode<synchronous>, transform_indices = @transform_3, window_bounds = array<i64: 1, 1>}]} {
    %c0_i32 = arith.constant 0 : i32
    %0 = arith.cmpi eq, %arg0, %c0_i32 : i32
    %1 = arith.extui %0 : i1 to i32
    %c0_i32_0 = arith.constant 0 : i32
    %2 = arith.cmpi ne, %1, %c0_i32_0 : i32
    scf.if %2 {
      %cst_22 = arith.constant 0.000000e+00 : f32
      %35 = vector.broadcast %cst_22 : f32 to vector<1x1xf32>
      %c0_23 = arith.constant 0 : index
      %c0_24 = arith.constant 0 : index
      %36 = vector.load %arg5[%c0_23, %c0_24] : memref<1x1xf32, #tpu.memory_space<vmem>>, vector<1x1xf32>
      tpu.vector_store %arg5[%c0_23, %c0_24], %35 {strides = array<i32>} : memref<1x1xf32, #tpu.memory_space<vmem>>, vector<1x1xf32>,
      %cst_25 = arith.constant 0.000000e+00 : f32
      %37 = vector.broadcast %cst_25 : f32 to vector<1x1xf32>
      %c0_26 = arith.constant 0 : index
      %c0_27 = arith.constant 0 : index
      %38 = vector.load %arg6[%c0_26, %c0_27] : memref<1x1xf32, #tpu.memory_space<vmem>>, vector<1x1xf32>
      tpu.vector_store %arg6[%c0_26, %c0_27], %37 {strides = array<i32>} : memref<1x1xf32, #tpu.memory_space<vmem>>, vector<1x1xf32>,
    } else {
    }
    %c0 = arith.constant 0 : index
    %c0_1 = arith.constant 0 : index
    %c0_2 = arith.constant 0 : index
    %3 = vector.load %arg1[%c0, %c0_1, %c0_2] : memref<1x16x64xf32, #tpu.memory_space<vmem>>, vector<1x16x64xf32>
    %c0_3 = arith.constant 0 : index
    %c0_4 = arith.constant 0 : index
    %c0_5 = arith.constant 0 : index
    %4 = vector.load %arg2[%c0_3, %c0_4, %c0_5] : memref<1x16x64xf32, #tpu.memory_space<vmem>>, vector<1x16x64xf32>
    %5 = arith.subf %3, %4 : vector<1x16x64xf32>
    %6 = arith.mulf %5, %5 : vector<1x16x64xf32>
    %cst = arith.constant dense<0.000000e+00> : vector<1x16xf32>
    %7 = vector.multi_reduction <add>, %6, %cst [2] : vector<1x16x64xf32> to vector<1x16xf32>
    %8 = vector.shape_cast %7 : vector<1x16xf32> to vector<1x16x1xf32>
    %cst_6 = arith.constant 6.400000e+01 : f32
    %9 = vector.broadcast %cst_6 : f32 to vector<1x16x1xf32>
    %10 = arith.divf %8, %9 : vector<1x16x1xf32>
    %c0_7 = arith.constant 0 : index
    %c0_8 = arith.constant 0 : index
    %c0_9 = arith.constant 0 : index
    %11 = vector.load %arg3[%c0_7, %c0_8, %c0_9] : memref<1x16x1xf32, #tpu.memory_space<vmem>>, vector<1x16x1xf32>
    %cst_10 = arith.constant 1.000000e+00 : f32
    %12 = vector.broadcast %cst_10 : f32 to vector<1x1xf32>
    %c0_11 = arith.constant 0 : index
    %c0_12 = arith.constant 0 : index
    %13 = vector.load %arg5[%c0_11, %c0_12] : memref<1x1xf32, #tpu.memory_space<vmem>>, vector<1x1xf32>
    %14 = arith.mulf %10, %11 : vector<1x16x1xf32>
    %15 = vector.shape_cast %14 : vector<1x16x1xf32> to vector<1x1x16x1xf32>
    %cst_13 = arith.constant dense<0.000000e+00> : vector<1xf32>
    %16 = vector.multi_reduction <add>, %15, %cst_13 [1, 2, 3] : vector<1x1x16x1xf32> to vector<1xf32>
    %17 = vector.shape_cast %16 : vector<1xf32> to vector<1x1x1x1xf32>
    %18 = vector.extract %17[0, 0, 0, 0] : f32 from vector<1x1x1x1xf32>
    %19 = vector.broadcast %18 : f32 to vector<1x1xf32>
    %20 = arith.mulf %19, %12 : vector<1x1xf32>
    %21 = arith.addf %13, %20 : vector<1x1xf32>
    %c0_14 = arith.constant 0 : index
    %c0_15 = arith.constant 0 : index
    %22 = vector.load %arg5[%c0_14, %c0_15] : memref<1x1xf32, #tpu.memory_space<vmem>>, vector<1x1xf32>
    tpu.vector_store %arg5[%c0_14, %c0_15], %21 {strides = array<i32>} : memref<1x1xf32, #tpu.memory_space<vmem>>, vector<1x1xf32>,
    %c0_16 = arith.constant 0 : index
    %c0_17 = arith.constant 0 : index
    %23 = vector.load %arg6[%c0_16, %c0_17] : memref<1x1xf32, #tpu.memory_space<vmem>>, vector<1x1xf32>
    %24 = vector.shape_cast %11 : vector<1x16x1xf32> to vector<1x1x16x1xf32>
    %cst_18 = arith.constant dense<0.000000e+00> : vector<1xf32>
    %25 = vector.multi_reduction <add>, %24, %cst_18 [1, 2, 3] : vector<1x1x16x1xf32> to vector<1xf32>
    %26 = vector.shape_cast %25 : vector<1xf32> to vector<1x1x1x1xf32>
    %27 = vector.extract %26[0, 0, 0, 0] : f32 from vector<1x1x1x1xf32>
    %28 = vector.broadcast %27 : f32 to vector<1x1xf32>
    %29 = arith.mulf %28, %12 : vector<1x1xf32>
    %30 = arith.addf %23, %29 : vector<1x1xf32>
    %c0_19 = arith.constant 0 : index
    %c0_20 = arith.constant 0 : index
    %31 = vector.load %arg6[%c0_19, %c0_20] : memref<1x1xf32, #tpu.memory_space<vmem>>, vector<1x1xf32>
    tpu.vector_store %arg6[%c0_19, %c0_20], %30 {strides = array<i32>} : memref<1x1xf32, #tpu.memory_space<vmem>>, vector<1x1xf32>,
    %c1_i32 = arith.constant 1 : i32
    %32 = arith.cmpi eq, %arg0, %c1_i32 : i32
    %33 = arith.extui %32 : i1 to i32
    %c0_i32_21 = arith.constant 0 : i32
    %34 = arith.cmpi ne, %33, %c0_i32_21 : i32
    scf.if %34 {
      %c0_22 = arith.constant 0 : index
      %c0_23 = arith.constant 0 : index
      %35 = vector.load %arg5[%c0_22, %c0_23] : memref<1x1xf32, #tpu.memory_space<vmem>>, vector<1x1xf32>
      %c0_24 = arith.constant 0 : index
      %c0_25 = arith.constant 0 : index
      %36 = vector.load %arg6[%c0_24, %c0_25] : memref<1x1xf32, #tpu.memory_space<vmem>>, vector<1x1xf32>
      %cst_26 = arith.constant 9.99999996E-13 : f32
      %37 = vector.broadcast %cst_26 : f32 to vector<1x1xf32>
      %38 = arith.maximumf %36, %37 : vector<1x1xf32>
      %39 = arith.divf %35, %38 : vector<1x1xf32>
      %c0_27 = arith.constant 0 : index
      %c0_28 = arith.constant 0 : index
      %40 = vector.load %arg4[%c0_27, %c0_28] : memref<1x1xf32, #tpu.memory_space<vmem>>, vector<1x1xf32>
      tpu.vector_store %arg4[%c0_27, %c0_28], %39 {strides = array<i32>} : memref<1x1xf32, #tpu.memory_space<vmem>>, vector<1x1xf32>,
    } else {
    }
    return
  }
  func.func @transform_0(%arg0: i32) -> (i32, i32, i32) {
    %c0_i32 = arith.constant 0 : i32
    %c0_i32_0 = arith.constant 0 : i32
    %c0_i32_1 = arith.constant 0 : i32
    return %arg0, %c0_i32, %c0_i32_0 : i32, i32, i32
  }
  func.func @transform_1(%arg0: i32) -> (i32, i32, i32) {
    %c0_i32 = arith.constant 0 : i32
    %c0_i32_0 = arith.constant 0 : i32
    %c0_i32_1 = arith.constant 0 : i32
    return %arg0, %c0_i32, %c0_i32_0 : i32, i32, i32
  }
  func.func @transform_2(%arg0: i32) -> (i32, i32, i32) {
    %c0_i32 = arith.constant 0 : i32
    %c0_i32_0 = arith.constant 0 : i32
    %c0_i32_1 = arith.constant 0 : i32
    return %arg0, %c0_i32, %c0_i32_0 : i32, i32, i32
  }
  func.func @transform_3(%arg0: i32) -> (i32, i32) {
    %c0_i32 = arith.constant 0 : i32
    %c0_i32_0 = arith.constant 0 : i32
    %c0_i32_1 = arith.constant 0 : i32
    return %c0_i32, %c0_i32_0 : i32, i32
  }
}

</mosaic_0001>

<bundles_post_ra>
// kernel: _lambda_.6
= control target key start
LH: loop header
LB: loop body
LE: loop exit
PB: predicated region body
PF: predicated region fallthrough
CT: control target
= control target key end

     0   :  { %s394_s15 = smov 0   ;;  %s432_s0 = inlined_call_operand.vmem [shape: f32[2,16,64], index: 0, kind: input, shape index: {}]   ;;  %s433_s1 = inlined_call_operand.vmem [shape: bf16[64,32], index: 1, kind: input, shape index: {}]   ;;  %s434_s2 = inlined_call_operand.vmem [shape: f32[1,32], index: 2, kind: input, shape index: {}]   ;;  %s435_s3 = inlined_call_operand.vmem [shape: f32[1,16,32], index: 3, kind: input, shape index: {}]   ;;  %s436_s4 = inlined_call_operand.vmem [shape: f32[2,16,32], index: 4, kind: output, shape index: {}]  }
   0x1 LB: > { %s318_s16 = sadd.s32 4294967295, %s367_s15   ;;  %p322_p0 = scmp.ge.s32.totalorder %s367_s15, 1  ;;  %s367_s15 = sphi %s394_s15, %s14_s15  }
   0x2   : > { %p162_p1 = scmp.lt.s32.totalorder %s367_s15, 3 }
   0x4   : > { %p163_p2 = pnand %p322_p0, %p162_p1 }
   0x5   : > { %p188_p3 = scmp.lt.s32.totalorder (!%p163_p2), %s318_s16, 1 }
   0x6   : > { %166 = sbr.rel (%p163_p2) target bundleno = 166 (0xa6), region = 36 }
   0xb   : > { %v351_v0 = vld [vmem:[%s433_s1 + $0x18] sm:$0xff]  ;;  %v350_v1 = vld [vmem:[%s433_s1 + $0x10] sm:$0xff]  ;;  %s438_s16 = smov (!%p188_p3, %s318_s16), 1  ;;  %v349_v2 = vld [vmem:[%s433_s1 + $0x8] sm:$0xff]  ;;  %vm238_vm0 = vcmask 523264   ;;  %vm260_vm1 = vcmask 261120  }
   0xc   : > { %246 = vmatpush.bf16.msra.mxu0 %v351_v0  ;;  %s346_s21 = sshll.u32 %s438_s16, 4  ;;  %v348_v3 = vld [vmem:[%s433_s1] sm:$0xff]  ;;  %v257_v13 = vld [vmem:[%s435_s3 + $0x8] sm:$0xff] }
   0xd   : > { %s192_s26 = scalar_lea.vmem %s432_s0, %s346_s21  ;;  %v360_v7 = vld [vmem:[%s434_s2] ss:$0 sm:$0xff]  ;;  %s197_s9 = scalar_lea.vmem %s436_s4, %s346_s21 }
   0xe   : > { %v199_v4 = vld [vmem:[%s192_s26] sm:$0xff]  ;;  %v200_v5 = vld [vmem:[%s192_s26 + $0x8] sm:$0xff] }
   0xf   : > { %v201_v6 = vpack.c.bf16 %v200_v5, %v199_v4  ;;  %v256_v9 = vld [vmem:[%s435_s3] sm:$0xff] }
  0x10   : > { %247 = vmatpush.bf16.msra.mxu0 %v350_v1 }
  0x14   : > { %248 = vmatpush.bf16.msra.mxu0 %v349_v2 }
  0x18   : > { %249 = vmatpush.bf16.msra.mxu0 %v348_v3 }
  0x1b   : > { %343 = vmatmul.msk.bf16.vlgmr.msra.gmra.mxu0 %vm238_vm0, %v201_v6 }
  0x98   : > { %v251_v8 = vpop.f32.mrf.mxu0 }
  0x99   : > { %v252_v10 = vadd.f32 %v360_v7, %v251_v8 }
  0x9b   : > { %v258_v11 = vadd.f32 %v256_v9, %v252_v10 }
  0x9d   : > { %261 = vst.msk [vmem:[%s197_s9] sm:$0xff] %vm260_vm1, %v258_v11 }
  0xa0   : > { %v253_v12 = vpop.f32.mrf.mxu0 }
  0xa1   : > { %v254_v14 = vadd.f32 %v360_v7, %v253_v12 }
  0xa3   : > { %v259_v15 = vadd.f32 %v257_v13, %v254_v14 }
  0xa5   : > { %262 = vst.msk [vmem:[%s197_s9 + $0x8] sm:$0xff] %vm260_vm1, %v259_v15 }
  0xa6 PF: > { %s14_s15 = sadd.s32 1, %s367_s15  }
  0xa7   : > { %p11_p4 = scmp.ge.s32.totalorder %s14_s15, 4  }
  0xa9   :  { %13 = sbr.rel (!%p11_p4) target bundleno = 1 (0x1), region = 66 }

// kernel: _lambda_.8
= control target key start
LH: loop header
LB: loop body
LE: loop exit
PB: predicated region body
PF: predicated region fallthrough
CT: control target
= control target key end

     0   :  { %vm25_vm0 = vcmask 261120   ;;  %vm29_vm1 = vcmask 254976   ;;  %v153_v4 = vmov 32.0   ;;  %s218_s0 = inlined_call_operand.vmem [shape: f32[10,32], index: 0, kind: input, shape index: {}]   ;;  %s219_s1 = inlined_call_operand.vmem [shape: f32[1,32], index: 1, kind: input, shape index: {}]   ;;  %s220_s2 = inlined_call_operand.vmem [shape: f32[1,32], index: 2, kind: input, shape index: {}]   ;;  %s221_s4 = inlined_call_operand.vmem [shape: f32[1,32], index: 4, kind: input, shape index: {}]   ;;  %s222_s3 = inlined_call_operand.vmem [shape: bf16[32,32], index: 3, kind: input, shape index: {}]   ;;  %s223_s5 = inlined_call_operand.vmem [shape: f32[10,32], index: 5, kind: output, shape index: {}]  }
   0x1   :  { %v21_v0 = vld [vmem:[%s218_s0] sm:$0xff]  ;;  %v22_v2 = vld [vmem:[%s218_s0 + $0x8] sm:$0x3]  ;;  %147 = vrcp.f32 %v153_v4 }
   0x2   :  { %v26_v1 = vsel %vm25_vm0, %v21_v0, 0.0  ;;  %v30_v3 = vsel %vm29_vm1, %v22_v2, 0.0  ;;  %v142_v21 = vld [vmem:[%s222_s3 + $0x8] sm:$0xff]  ;;  %v141_v23 = vld [vmem:[%s222_s3] sm:$0xff] }
   0x3   :  { %27 = vadd.xlane.f32.xlu0 %v26_v1  ;;  %118 = vmatpush.bf16.msra.mxu0 %v142_v21  ;;  %v144_v42 = vld [vmem:[%s219_s1] ss:$0 sm:$0xff] }
   0x4   :  { %v145_v47 = vld [vmem:[%s220_s2] ss:$0 sm:$0xff] }
   0x5   :  { %v146_v52 = vld [vmem:[%s221_s4] ss:$0 sm:$0xff] }
   0x7   :  { %v148_v5 = vpop.eup %147  ;;  %119 = vmatpush.bf16.msra.mxu0 %v141_v23 }
   0x8   :  { %v34_v6 = vmul.f32 32.0, %v148_v5  ;;  %vm38_vm2 = vweird.f32 %v148_v5 }
   0xa   :  { %v35_v7 = vsub.f32 1.0, %v34_v6 }
   0xb   :  { %31 = vadd.xlane.f32.xlu0 %v30_v3 }
   0xc   :  { %v36_v8 = vmul.f32 %v148_v5, %v35_v7 }
   0xe   :  { %v37_v9 = vadd.f32 %v148_v5, %v36_v8 }
  0x10   :  { %v39_v10 = vsel %vm38_vm2, %v148_v5, %v37_v9 }
  0x76   :  { %v28_v11 = vpop.xlane.xlu0 %27 }
  0x77   :  { %v40_v12 = vmul.f32 %v39_v10, %v28_v11 }
  0x79   :  { %v42_v13 = vsub.f32 %v21_v0, %v40_v12 }
  0x7b   :  { %v44_v14 = vmul.f32 %v42_v13, %v42_v13 }
  0x7d   :  { %v46_v15 = vsel %vm25_vm0, %v44_v14, 0.0 }
  0x7e   :  { %47 = vadd.xlane.f32.xlu1 %v46_v15  ;;  %v32_v16 = vpop.xlane.xlu0 %31 }
  0x7f   :  { %v41_v17 = vmul.f32 %v39_v10, %v32_v16 }
  0x81   :  { %v43_v18 = vsub.f32 %v22_v2, %v41_v17 }
  0x83   :  { %v45_v19 = vmul.f32 %v43_v18, %v43_v18 }
  0x85   :  { %v49_v20 = vsel %vm29_vm1, %v45_v19, 0.0 }
  0x86   :  { %50 = vadd.xlane.f32.xlu1 %v49_v20 }
  0xf1   :  { %v48_v22 = vpop.xlane.xlu1 %47 }
  0xf2   :  { %v52_v24 = vmul.f32 %v48_v22, %v39_v10 }
  0xf4   :  { %v54_v25 = vadd.f32 1e-05, %v52_v24 }
  0xf6   :  { %149 = vrsqrt.f32 %v54_v25  ;;  %vm62_vm4 = vweird.f32 %v54_v25 }
  0xf9   :  { %v51_v26 = vpop.xlane.xlu1 %50 }
  0xfa   :  { %v53_v27 = vmul.f32 %v51_v26, %v39_v10 }
  0xfc   :  { %v150_v28 = vpop.eup %149  ;;  %v55_v29 = vadd.f32 1e-05, %v53_v27 }
  0xfd   :  { %v57_v30 = vmul.f32 %v150_v28, %v54_v25  ;;  %vm63_vm3 = vweird.f32 %v150_v28 }
  0xfe   :  { %151 = vrsqrt.f32 %v55_v29  ;;  %vm64_vm5 = vmor %vm62_vm4, %vm63_vm3  ;;  %vm72_vm7 = vweird.f32 %v55_v29 }
  0xff   :  { %v58_v31 = vmul.f32 %v150_v28, %v57_v30 }
 0x101   :  { %v59_v32 = vmul.f32 0.5, %v58_v31 }
 0x103   :  { %v60_v33 = vsub.f32 1.5, %v59_v32 }
 0x104   :  { %v152_v34 = vpop.eup %151 }
 0x105   :  { %v61_v35 = vmul.f32 %v150_v28, %v60_v33  ;;  %v67_v36 = vmul.f32 %v152_v34, %v55_v29  ;;  %vm73_vm6 = vweird.f32 %v152_v34 }
 0x106   :  { %vm74_vm8 = vmor %vm72_vm7, %vm73_vm6 }
 0x107   :  { %v68_v37 = vmul.f32 %v152_v34, %v67_v36  ;;  %v65_v38 = vsel %vm64_vm5, %v150_v28, %v61_v35 }
 0x108   :  { %v76_v41 = vmul.f32 %v65_v38, %v42_v13 }
 0x109   :  { %v69_v39 = vmul.f32 0.5, %v68_v37 }
 0x10a   :  { %v81_v46 = vmul.f32 %v144_v42, %v76_v41 }
 0x10b   :  { %v70_v40 = vsub.f32 1.5, %v69_v39 }
 0x10c   :  { %v86_v49 = vadd.f32 %v145_v47, %v81_v46 }
 0x10d   :  { %v71_v43 = vmul.f32 %v152_v34, %v70_v40 }
 0x10f   :  { %v75_v44 = vsel %vm74_vm8, %v152_v34, %v71_v43 }
 0x110   :  { %v77_v45 = vmul.f32 %v75_v44, %v43_v18 }
 0x112   :  { %v82_v48 = vmul.f32 %v144_v42, %v77_v45 }
 0x114   :  { %v87_v50 = vadd.f32 %v145_v47, %v82_v48 }
 0x116   :  { %v88_v51 = vpack.c.bf16 %v87_v50, %v86_v49 }
 0x118   :  { %140 = vmatmul.msk.bf16.vlgmr.msra.gmra.mxu0 %vm25_vm0, %v88_v51 }
 0x195   :  { %v121_v53 = vpop.f32.mrf.mxu0 }
 0x196   :  { %v122_v54 = vadd.f32 %v146_v52, %v121_v53 }
 0x198   :  { %126 = vst.msk [vmem:[%s223_s5] sm:$0xff] %vm25_vm0, %v122_v54 }
 0x19d   :  { %v123_v55 = vpop.f32.mrf.mxu0 }
 0x19e   :  { %v124_v56 = vadd.f32 %v146_v52, %v123_v55 }
 0x1a0   :  { %127 = vst.msk [vmem:[%s223_s5 + $0x8] sm:$0x3] %vm29_vm1, %v124_v56 }

// kernel: _lambda_.7
= control target key start
LH: loop header
LB: loop body
LE: loop exit
PB: predicated region body
PF: predicated region fallthrough
CT: control target
= control target key end

     0   :  { %s1745_s25 = smov 0   ;;  %s1747_s26 = smov 0   ;;  %s1988_s0 = inlined_call_operand.vmem [shape: f32[2,5,32], index: 0, kind: input, shape index: {}]   ;;  %s1989_s1 = inlined_call_operand.vmem [shape: f32[2,1,32], index: 1, kind: input, shape index: {}]   ;;  %s1990_s2 = inlined_call_operand.vmem [shape: f32[2,1,32], index: 2, kind: input, shape index: {}]   ;;  %s1991_s3 = inlined_call_operand.vmem [shape: bf16[2,32,96], index: 3, kind: input, shape index: {}]   ;;  %s1992_s4 = inlined_call_operand.vmem [shape: f32[2,1,96], index: 4, kind: input, shape index: {}]   ;;  %s1993_s5 = inlined_call_operand.vmem [shape: bf16[2,4,8,32], index: 5, kind: input, shape index: {}]   ;;  %s1994_s6 = inlined_call_operand.vmem [shape: f32[2,1,32], index: 6, kind: input, shape index: {}]   ;;  %s1995_s7 = inlined_call_operand.vmem [shape: f32[2,1,32], index: 7, kind: input, shape index: {}]   ;;  %s1996_s8 = inlined_call_operand.vmem [shape: f32[2,1,32], index: 8, kind: input, shape index: {}]   ;;  %s1997_s9 = inlined_call_operand.vmem [shape: bf16[2,32,128], index: 9, kind: input, shape index: {}]   ;;  %s1998_s10 = inlined_call_operand.vmem [shape: f32[2,1,128], index: 10, kind: input, shape index: {}]   ;;  %s1999_s11 = inlined_call_operand.vmem [shape: bf16[2,128,32], index: 11, kind: input, shape index: {}]   ;;  %s2000_s12 = inlined_call_operand.vmem [shape: f32[2,1,32], index: 12, kind: input, shape index: {}]   ;;  %s2001_s13 = inlined_call_operand.vmem [shape: f32[2,5,32], index: 13, kind: output, shape index: {}]  }
   0x1   :  { %2006 = sst [smem:[#allocation8_spill]] %s1988_s0  ;;  %s1749_s27 = smov 0  }
   0x2   :  { %2007 = sst [smem:[#allocation9_spill]] %s1990_s2  ;;  %s1751_s28 = smov 0  }
   0x3   :  { %2008 = sst [smem:[#allocation10_spill]] %s1991_s3  ;;  %s1753_s29 = smov 0  }
   0x4   :  { %2009 = sst [smem:[#allocation11_spill]] %s1993_s5 }
   0x5   :  { %2010 = sst [smem:[#allocation12_spill]] %s2001_s13 }
   0x6 LB: > { %2011 = sst [smem:[#allocation2_spill]] %s1644_s25  ;;  %s32_s30 = sadd.s32 1, %s1652_s27  ;;  %s1660_s29 = sphi %s1753_s29, %s23_s29   ;;  %s1656_s28 = sphi %s1751_s28, %s2034_s28   ;;  %s1652_s27 = sphi %s1749_s27, %s2033_s27   ;;  %s1648_s26 = sphi %s1747_s26, %s2032_s26   ;;  %s1644_s25 = sphi %s1745_s25, %s2031_s25  }
   0x7   : > { %2012 = sst [smem:[#allocation3_spill]] %s1652_s27  ;;  %s35_s14 = sadd.s32 1, %s1656_s28 }
   0x8   : > { %2013 = sst [smem:[#allocation4_spill]] %s1656_s28  ;;  %p33_p0 = scmp.ge.s32.totalorder %s32_s30, 2 }
   0x9   : > { %2014 = sst [smem:[#allocation5_spill]] %s1660_s29  ;;  %p1438_p1 = scmp.ge.s32.totalorder %s1660_s29, 1 }
   0xa   : > { %p502_p2 = scmp.lt.s32.totalorder %s1660_s29, 5  ;;  %s2036_s30 = smov (%p33_p0, %s32_s30), 0 }
   0xb   : > { %2015 = sst [smem:[#allocation6_spill]] %s2036_s30  ;;  %s2038_s14 = smov (!%p33_p0, %s35_s14), %s1656_s28 }
   0xc   : > { %p503_p3 = pnand %p1438_p1, %p502_p2  ;;  %p37_p4 = scmp.ge.s32.totalorder %s2038_s14, 2 }
   0xd   : > { %p588_p5 = scmp.lt.s32.totalorder (!%p503_p3), %s1648_s26, 1  ;;  %p592_p6 = scmp.lt.s32.totalorder (!%p503_p3), %s1644_s25, 1 }
   0xe   : > { %s2040_s14 = smov (%p37_p4, %s2038_s14), 0  ;;  %506 = sbr.rel (%p503_p3) target bundleno = 2354 (0x932), region = 72 }
   0xf   : > { %2016 = sst [smem:[#allocation7_spill]] %s2040_s14 }
  0x10   : > { %s2017_s0 = sld [smem:[#allocation8_spill]] (!%p503_p3) }
  0x11   : > { %s2019_s3 = sld [smem:[#allocation10_spill]] (!%p503_p3) }
  0x12   : > { %s2020_s5 = sld [smem:[#allocation11_spill]] (!%p503_p3) }
  0x13   : > { %s2042_s26 = smov (!%p588_p5, %s1648_s26), 1 }
  0x14   : > { %s1779_s15 = scalar_select %p592_p6, %s1644_s25, 1 }
  0x15   : > { %s1439_s16 = sshll.u32 %s2042_s26, 3 }
  0x16   : > { %s591_s19 = scalar_lea.vmem %s2017_s0, %s1439_s16  ;;  %s1519_s30 = sshll.u32 %s1779_s15, 4 }
  0x17   : > { %s1796_s29 = scalar_lea.vmem %s2019_s3, %s1519_s30  ;;  %s1822_s26 = scalar_lea.vmem %s1997_s9, %s1519_s30 }
  0x18   : > { %s1805_s0 = scalar_lea.vmem %s2020_s5, %s1519_s30  ;;  %s627_s13 = scalar_lea.vmem %s1998_s10, %s1779_s15 }
  0x19   : > { %s1522_s5 = sshll.u32 %s1779_s15, 6  ;;  %s635_s23 = scalar_lea.vmem %s2000_s12, %s1779_s15 }
  0x1a   : > { %s1836_s22 = scalar_lea.vmem %s1999_s11, %s1522_s5  ;;  %s2021_s3 = sld [smem:[#allocation12_spill]] }
  0x1b   : > { %s2022_s30 = sld [smem:[#allocation2_spill]] }
  0x20   : > { %s1841_s2 = scalar_lea.vmem %s2021_s3, %s1439_s16 }
  0x21   : > { %p1449_p7 = scmp.ne.s32.totalorder %s2022_s30, 0 }
  0x23   : > { %644 = sbr.rel (%p1449_p7) target bundleno = 42 (0x2a), region = 76 }
  0x28   : > { %v645_v0 = vld [vmem:[%s591_s19] sm:$0x1f]  ;;  %vm646_vm0 = vcmask 258048  }
  0x29   : > { %647 = vst.msk [vmem:[%s1841_s2] sm:$0x1f] %vm646_vm0, %v645_v0 }
  0x2a PF: > { %vm651_vm1 = vcmask 258048   ;;  %v1662_v3 = vmov 32.0   ;;  %v1524_v15 = vld [vmem:[%s1796_s29 + $0x8] sm:$0xff]  ;;  %v1523_v16 = vld [vmem:[%s1796_s29] sm:$0xff]  ;;  %s2023_s29 = scalar_lea.vmem %s1989_s1, %s1779_s15  ;;  %s2024_s25 = sld [smem:[#allocation9_spill]]  ;;  %vm710_vm6 = vcmask 261120  }
  0x2b   : > { %1596 = vrcp.f32 %v1662_v3  ;;  %720 = vmatpush.bf16.msra.mxu0 %v1524_v15  ;;  %v1588_v26 = vld [vmem:[%s2023_s29] ss:$0 sm:$0xff]  ;;  %s2026_s21 = scalar_lea.vmem %s1992_s4, %s1779_s15  ;;  %s1663_s14 = smov 88   ;;  %vm733_vm7 = vcmask 64512   ;;  %vm753_vm8 = vcmask 36864   ;;  %vm857_vm9 = vcmask 1043456  }
  0x2c   : > { %v1590_v33 = vld [vmem:[%s2026_s21] ss:$0 sm:$0xff]  ;;  %s1664_s24 = smov 96   ;;  %s1665_s27 = smov 80   ;;  %vm772_vm10 = vcmask 1041408   ;;  %vm773_vm11 = vcmask 1042432  }
  0x2d   : > { %s1666_s28 = smov 112   ;;  %s1667_s30 = smov 64   ;;  %v793_v54 = vld [vmem:[%s1805_s0] sm:$0xf]  ;;  %v1671_v57 = vmov 65535   ;;  %vm768_vm12 = vcmask 39936  }
  0x2e   : > { %s1668_s3 = smov 120   ;;  %s1669_s5 = smov 72   ;;  %v878_v55 = vsel %vm857_vm9, %v793_v54, 0  ;;  %v774_v58 = vsel %vm772_vm10, 4294967295, %v1671_v57  ;;  %v1468_v54 = vld [vmem:[%s1805_s0 + $0x8] sm:$0xf] }
  0x2f   : > { %721 = vmatpush.bf16.msra.mxu0 %v1523_v16  ;;  %s1670_s29 = smov 104   ;;  %887 = vmatpush.bf16.msra.mxu1 %v878_v55  ;;  %v1889_v59 = vsel %vm773_vm11, %v774_v58, 0  ;;  %s1672_s16 = smov 40   ;;  %v956_v55 = vsel %vm857_vm9, %v1468_v54, 0  ;;  %v1530_v54 = vld [vmem:[%s1836_s22 + $0x18] sm:$0xff] }
  0x30   : > { %v1846_v1 = vld [vmem:[%s1841_s2] sm:$0x1f]  ;;  %s2025_s17 = scalar_lea.vmem %s2024_s25, %s1779_s15  ;;  %s1673_s19 = smov 56  }
  0x31   : > { %v652_v2 = vsel %vm651_vm1, %v1846_v1, 0.0  ;;  %v1597_v4 = vpop.eup %1596  ;;  %v1589_v29 = vld [vmem:[%s2025_s17] ss:$0 sm:$0xff]  ;;  %s1674_s25 = smov 48   ;;  %s2027_s18 = scalar_lea.vmem %s1994_s6, %s1779_s15 }
  0x32   : > { %653 = vadd.xlane.f32.xlu0 %v652_v2  ;;  %v656_v5 = vmul.f32 32.0, %v1597_v4  ;;  %vm660_vm2 = vweird.f32 %v1597_v4  ;;  %s2028_s21 = scalar_lea.vmem %s1995_s7, %s1779_s15 }
  0x34   : > { %v657_v6 = vsub.f32 1.0, %v656_v5 }
  0x36   : > { %v658_v7 = vmul.f32 %v1597_v4, %v657_v6 }
  0x38   : > { %v659_v8 = vadd.f32 %v1597_v4, %v658_v7 }
  0x3a   : > { %v1850_v9 = vsel %vm660_vm2, %v1597_v4, %v659_v8 }
  0xa5   : > { %v654_v10 = vpop.xlane.xlu0 %653 }
  0xa6   : > { %v662_v11 = vmul.f32 %v1850_v9, %v654_v10 }
  0xa8   : > { %v663_v12 = vsub.f32 %v1846_v1, %v662_v11 }
  0xaa   : > { %v664_v13 = vmul.f32 %v663_v12, %v663_v12 }
  0xac   : > { %v665_v14 = vsel %vm651_vm1, %v664_v13, 0.0 }
  0xad   : > { %666 = vadd.xlane.f32.xlu0 %v665_v14 }
 0x120   : > { %v667_v17 = vpop.xlane.xlu0 %666 }
 0x121   : > { %v668_v18 = vmul.f32 %v667_v17, %v1850_v9 }
 0x123   : > { %v669_v19 = vadd.f32 1e-05, %v668_v18 }
 0x125   : > { %1598 = vrsqrt.f32 %v669_v19  ;;  %vm676_vm4 = vweird.f32 %v669_v19 }
 0x12b   : > { %v1599_v20 = vpop.eup %1598 }
 0x12c   : > { %v671_v21 = vmul.f32 %v1599_v20, %v669_v19  ;;  %vm677_vm3 = vweird.f32 %v1599_v20 }
 0x12d   : > { %vm678_vm5 = vmor %vm676_vm4, %vm677_vm3 }
 0x12e   : > { %v672_v22 = vmul.f32 %v1599_v20, %v671_v21 }
 0x130   : > { %v673_v23 = vmul.f32 0.5, %v672_v22 }
 0x132   : > { %v674_v24 = vsub.f32 1.5, %v673_v23 }
 0x134   : > { %v675_v25 = vmul.f32 %v1599_v20, %v674_v24 }
 0x136   : > { %v679_v27 = vsel %vm678_vm5, %v1599_v20, %v675_v25 }
 0x137   : > { %v680_v28 = vmul.f32 %v679_v27, %v663_v12 }
 0x139   : > { %v684_v30 = vmul.f32 %v1588_v26, %v680_v28 }
 0x13b   : > { %v688_v31 = vadd.f32 %v1589_v29, %v684_v30 }
 0x13d   : > { %v689_v32 = vpack.c.bf16 %v688_v31, %v688_v31 }
 0x13f   : > { %1458 = vmatmul.msk.bf16.vlgmr.msra.gmra.mxu0 %vm710_vm6, %v689_v32 }
 0x1bc   : > { %v723_v34 = vpop.f32.mrf.mxu0 }
 0x1bd   : > { %v724_v35 = vadd.f32 %v1590_v33, %v723_v34 }
 0x1bf   : > { %v1874_v36 = vpack.c.bf16 %v724_v35, %v724_v35  ;;  %v727_v38 = vmul.f32 0.35355338, %v724_v35 }
 0x1c1   : > { %797 = vrot.lane.b32.xlu0 %v1874_v36, %s1663_s14  ;;  %731 = vrot.lane.b32.xlu1 %v1874_v36, %s1664_s24  ;;  %v728_v39 = vpack.c.bf16 %v727_v38, %v727_v38 }
 0x1c4   : > { %v725_v37 = vpop.f32.mrf.mxu0 }
 0x1c9   : > { %895 = vrot.lane.b32.xlu0 %v1874_v36, %s1665_s27  ;;  %s2029_s27 = scalar_lea.vmem %s1996_s8, %s1779_s15 }
 0x1d1   : > { %893 = vrot.lane.b32.xlu0 %v728_v39, %s1666_s28 }
 0x233   : > { %v798_v40 = vpop.permute.xlu0 %797  ;;  %v732_v41 = vpop.permute.xlu1 %731 }
 0x234   : > { %v738_v42 = vsel %vm733_vm7, %v732_v41, 0  ;;  %v803_v43 = vsel %vm733_vm7, %v798_v40, 0 }
 0x235   : > { %747 = vmatpush.bf16.xpose.msra.mxu3 %v738_v42 }
 0x23b   : > { %v896_v44 = vpop.permute.xlu0 %895 }
 0x23c   : > { %v901_v45 = vsel %vm733_vm7, %v896_v44, 0  ;;  %1459 = vmatmul.msk.bf16.vlgmr.msra.gmra.mxu3 %vm733_vm7, %v728_v39 }
 0x23d   : > { %812 = vmatpush.bf16.xpose.msrb.mxu3 %v803_v43 }
 0x243   : > { %v894_v5 = vpop.permute.xlu0 %893 }
 0x245   : > { %910 = vmatpush.bf16.xpose.msra.mxu3 %v901_v45 }
 0x2bf   : > { %v749_v46 = vpop.f32.mrf.mxu3 }
 0x2c0   : > { %v754_v47 = vsel %vm753_vm8, %v749_v46, -inf }
 0x2c1   : > { %755 = vmax.xlane.f32.xlu1 %v754_v47 }
 0x2c7   : > { %v751_v48 = vpop.f32.mrf.mxu3 }
 0x334   : > { %v756_v49 = vpop.xlane.xlu1 %755 }
 0x335   : > { %v757_v50 = vsub.f32 %v749_v46, %v756_v49 }
 0x337   : > { %v758_v51 = vmul.f32 1.442695, %v757_v50 }
 0x339   : > { %1600 = vpow2.f32 %v758_v51  ;;  %v1463_v51 = vld [vmem:[%s1805_s0 + $0x4] sm:$0xf] }
 0x33f   : > { %v1601_v52 = vpop.eup %1600 }
 0x340   : > { %v760_v53 = vsel %vm753_vm8, %v1601_v52, 0.0 }
 0x341   : > { %761 = vadd.xlane.f32.xlu2 %v760_v53 }
 0x359   : > { %766 = vrot.lane.b32.xlu2 %v1874_v36, %s1667_s30 }
 0x361   : > { %795 = vrot.lane.b32.xlu2 %v728_v39, %s1668_s3 }
 0x369   : > { %974 = vrot.lane.b32.xlu2 %v1874_v36, %s1669_s5 }
 0x371   : > { %972 = vrot.lane.b32.xlu2 %v728_v39, %s1670_s29 }
 0x3b4   : > { %v762_v56 = vpop.xlane.xlu2 %761 }
 0x3b5   : > { %1602 = vrcp.f32 %v762_v56 }
 0x3bb   : > { %v1603_v60 = vpop.eup %1602 }
 0x3bc   : > { %v767_v61 = vpop.permute.xlu2 %766  ;;  %v764_v62 = vmul.f32 %v1603_v60, %v1601_v52  ;;  %v859_v52 = vsel %vm857_vm9, %v1463_v51, 0  ;;  %v1531_v51 = vld [vmem:[%s1836_s22 + $0x20] sm:$0xff] }
 0x3bd   : > { %v777_v63 = vand.u32 %v1889_v59, %v767_v61  ;;  %868 = vmatpush.bf16.msrb.mxu0 %v859_v52 }
 0x3be   : > { %v765_v0 = vpack.c.bf16 %v764_v62, %v764_v62 }
 0x3bf   : > { %786 = vmatpush.bf16.msra.mxu2 %v777_v63 }
 0x3c1   : > { %965 = vmatpush.bf16.msra.mxu0 %v956_v55  ;;  %v1529_v55 = vld [vmem:[%s1836_s22 + $0x10] sm:$0xff] }
 0x3c2   : > { %1460 = vmatmul.msk.bf16.vlgmr.msra.gmra.mxu2 %vm768_vm12, %v765_v0 }
 0x3c4   : > { %v796_v2 = vpop.permute.xlu2 %795 }
 0x3c5   : > { %1461 = vmatmul.msk.bf16.vlgmr.msrb.gmra.mxu3 %vm733_vm7, %v796_v2 }
 0x3cc   : > { %v975_v3 = vpop.permute.xlu2 %974 }
 0x3cd   : > { %v980_v4 = vsel %vm733_vm7, %v975_v3, 0 }
 0x3ce   : > { %989 = vmatpush.bf16.xpose.msrb.mxu1 %v980_v4 }
 0x3d4   : > { %v973_v13 = vpop.permute.xlu2 %972 }
 0x3d5   : > { %1466 = vmatmul.msk.bf16.vlgmr.msra.gmra.mxu3 %vm733_vm7, %v894_v5 }
 0x445   : > { %v788_v6 = vpop.f32.mrf.mxu2 }
 0x446   : > { %v792_v7 = vpack.c.bf16 %v788_v6, %v788_v6 }
 0x448   : > { %v814_v8 = vpop.f32.mrf.mxu3  ;;  %1465 = vmatmul.msk.bf16.vlgmr.msra.gmra.mxu1 %vm733_vm7, %v792_v7 }
 0x449   : > { %v818_v10 = vsel %vm753_vm8, %v814_v8, -inf }
 0x44a   : > { %819 = vmax.xlane.f32.xlu1 %v818_v10 }
 0x44d   : > { %v790_v11 = vpop.f32.mrf.mxu2 }
 0x450   : > { %v816_v12 = vpop.f32.mrf.mxu3 }
 0x458   : > { %v912_v14 = vpop.f32.mrf.mxu3  ;;  %1470 = vmatmul.msk.bf16.vlgmr.msrb.gmra.mxu1 %vm733_vm7, %v973_v13 }
 0x459   : > { %v916_v15 = vsel %vm753_vm8, %v912_v14, -inf }
 0x45a   : > { %917 = vmax.xlane.f32.xlu2 %v916_v15 }
 0x460   : > { %v914_v16 = vpop.f32.mrf.mxu3 }
 0x461   : > { %v1591_v16 = vld [vmem:[%s2027_s18] ss:$0 sm:$0xff] }
 0x472   : > { %1007 = vrot.lane.b32.xlu2 %v1874_v36, %s1672_s16 }
 0x4bd   : > { %v820_v17 = vpop.xlane.xlu1 %819 }
 0x4be   : > { %v821_v18 = vsub.f32 %v814_v8, %v820_v17 }
 0x4c0   : > { %v822_v19 = vmul.f32 1.442695, %v821_v18 }
 0x4c2   : > { %1604 = vpow2.f32 %v822_v19 }
 0x4c5   : > { %v1901_v20 = vpop.f32.mrf.mxu1 }
 0x4c8   : > { %v1605_v21 = vpop.eup %1604 }
 0x4c9   : > { %v824_v22 = vsel %vm753_vm8, %v1605_v21, 0.0 }
 0x4ca   : > { %825 = vadd.xlane.f32.xlu1 %v824_v22 }
 0x4cd   : > { %v891_v23 = vpop.f32.mrf.mxu1  ;;  %v918_v24 = vpop.xlane.xlu2 %917 }
 0x4ce   : > { %v919_v25 = vsub.f32 %v912_v14, %v918_v24 }
 0x4d0   : > { %v920_v26 = vmul.f32 1.442695, %v919_v25 }
 0x4d2   : > { %1606 = vpow2.f32 %v920_v26  ;;  %v1526_v26 = vld [vmem:[%s1822_s26 + $0x8] sm:$0xff] }
 0x4d5   : > { %v991_v27 = vpop.f32.mrf.mxu1  ;;  %v1008_v28 = vpop.permute.xlu2 %1007 }
 0x4d6   : > { %v1013_v29 = vand.u32 %v1008_v28, %v1889_v59  ;;  %v995_v30 = vsel %vm753_vm8, %v991_v27, -inf }
 0x4d7   : > { %996 = vmax.xlane.f32.xlu0 %v995_v30 }
 0x4d8   : > { %1022 = vmatpush.bf16.msrb.mxu3 %v1013_v29  ;;  %v1607_v31 = vpop.eup %1606 }
 0x4d9   : > { %v922_v33 = vsel %vm753_vm8, %v1607_v31, 0.0 }
 0x4dd   : > { %v993_v32 = vpop.f32.mrf.mxu1 }
 0x4df   : > { %923 = vadd.xlane.f32.xlu0 %v922_v33 }
 0x4e3   : > { %830 = vrot.lane.b32.xlu1 %v1874_v36, %s1673_s19 }
 0x4f3   : > { %928 = vrot.lane.b32.xlu0 %v1874_v36, %s1674_s25 }
 0x53d   : > { %v826_v34 = vpop.xlane.xlu1 %825 }
 0x53e   : > { %1608 = vrcp.f32 %v826_v34 }
 0x544   : > { %v1609_v39 = vpop.eup %1608 }
 0x545   : > { %v828_v41 = vmul.f32 %v1609_v39, %v1605_v21  ;;  %v1593_v39 = vld [vmem:[%s2029_s27] ss:$0 sm:$0xff] }
 0x547   : > { %v829_v36 = vpack.c.bf16 %v828_v41, %v828_v41 }
 0x54a   : > { %v997_v35 = vpop.xlane.xlu0 %996 }
 0x54b   : > { %v998_v37 = vsub.f32 %v991_v27, %v997_v35 }
 0x54d   : > { %v999_v38 = vmul.f32 1.442695, %v998_v37  ;;  %v1592_v37 = vld [vmem:[%s2028_s21] ss:$0 sm:$0xff] }
 0x54f   : > { %1610 = vpow2.f32 %v999_v38 }
 0x552   : > { %v924_v45 = vpop.xlane.xlu0 %923 }
 0x553   : > { %1612 = vrcp.f32 %v924_v45  ;;  %v1533_v45 = vld [vmem:[%s1836_s22 + $0x30] sm:$0xff] }
 0x555   : > { %v1611_v40 = vpop.eup %1610  ;;  %v831_v42 = vpop.permute.xlu1 %830 }
 0x556   : > { %v836_v43 = vand.u32 %v831_v42, %v1889_v59  ;;  %v1001_v44 = vsel %vm753_vm8, %v1611_v40, 0.0 }
 0x557   : > { %1002 = vadd.xlane.f32.xlu1 %v1001_v44  ;;  %v1594_v44 = vld [vmem:[%s627_s13] ss:$0 sm:$0xff] }
 0x558   : > { %845 = vmatpush.bf16.msrb.mxu2 %v836_v43  ;;  %v1534_v43 = vld [vmem:[%s1836_s22 + $0x38] sm:$0xff] }
 0x559   : > { %v1613_v46 = vpop.eup %1612  ;;  %1235 = vmatpush.bf16.msra.mxu1 %v1534_v43 }
 0x55a   : > { %v926_v47 = vmul.f32 %v1613_v46, %v1607_v31 }
 0x55b   : > { %1462 = vmatmul.msk.bf16.vlgmr.msrb.gmra.mxu2 %vm768_vm12, %v829_v36 }
 0x55c   : > { %v927_v50 = vpack.c.bf16 %v926_v47, %v926_v47 }
 0x55d   : > { %1236 = vmatpush.bf16.msra.mxu1 %v1533_v45 }
 0x565   : > { %v929_v48 = vpop.permute.xlu0 %928 }
 0x566   : > { %v934_v49 = vand.u32 %v929_v48, %v1889_v59  ;;  %v1472_v59 = vld [vmem:[%s1805_s0 + $0xc] sm:$0xf] }
 0x567   : > { %v1035_v60 = vsel %vm857_vm9, %v1472_v59, 0  ;;  %v1532_v48 = vld [vmem:[%s1836_s22 + $0x28] sm:$0xff] }
 0x568   : > { %943 = vmatpush.bf16.msra.mxu2 %v934_v49  ;;  %1237 = vmatpush.bf16.msra.mxu1 %v1532_v48 }
 0x56b   : > { %1467 = vmatmul.msk.bf16.vlgmr.msra.gmra.mxu2 %vm768_vm12, %v927_v50 }
 0x56c   : > { %1044 = vmatpush.bf16.msrb.mxu2 %v1035_v60  ;;  %1238 = vmatpush.bf16.msra.mxu1 %v1531_v51 }
 0x570   : > { %1239 = vmatpush.bf16.msra.mxu1 %v1530_v54 }
 0x574   : > { %1240 = vmatpush.bf16.msra.mxu1 %v1529_v55 }
 0x5ca   : > { %v1003_v53 = vpop.xlane.xlu1 %1002 }
 0x5cb   : > { %1614 = vrcp.f32 %v1003_v53 }
 0x5d1   : > { %v1615_v56 = vpop.eup %1614 }
 0x5d2   : > { %v1005_v57 = vmul.f32 %v1615_v56, %v1611_v40 }
 0x5d4   : > { %v1006_v58 = vpack.c.bf16 %v1005_v57, %v1005_v57 }
 0x5d6   : > { %1471 = vmatmul.msk.bf16.vlgmr.msrb.gmra.mxu3 %vm768_vm12, %v1006_v58  ;;  %v1528_v58 = vld [vmem:[%s1836_s22 + $0x8] sm:$0xff] }
 0x5d7   : > { %1241 = vmatpush.bf16.msra.mxu1 %v1528_v58 }
 0x5de   : > { %v847_v61 = vpop.f32.mrf.mxu2 }
 0x5df   : > { %v851_v62 = vpack.c.bf16 %v847_v61, %v847_v61 }
 0x5e1   : > { %1464 = vmatmul.msk.bf16.vlgmr.msrb.gmra.mxu0 %vm733_vm7, %v851_v62 }
 0x5e2   : > { %1119 = vmatpush.bf16.msrb.mxu0 %v1526_v26 }
 0x5e6   : > { %v849_v63 = vpop.f32.mrf.mxu2 }
 0x5e7   : > { %v1527_v63 = vld [vmem:[%s1836_s22] sm:$0xff] }
 0x5e8   : > { %1242 = vmatpush.bf16.msra.mxu1 %v1527_v63 }
 0x5ee   : > { %v945_v0 = vpop.f32.mrf.mxu2 }
 0x5ef   : > { %v949_v2 = vpack.c.bf16 %v945_v0, %v945_v0 }
 0x5f1   : > { %1469 = vmatmul.msk.bf16.vlgmr.msra.gmra.mxu0 %vm733_vm7, %v949_v2 }
 0x5f6   : > { %v947_v3 = vpop.f32.mrf.mxu2 }
 0x659   : > { %v1024_v4 = vpop.f32.mrf.mxu3 }
 0x65a   : > { %v1028_v5 = vpack.c.bf16 %v1024_v4, %v1024_v4 }
 0x65c   : > { %1473 = vmatmul.msk.bf16.vlgmr.msrb.gmra.mxu2 %vm733_vm7, %v1028_v5 }
 0x65e   : > { %v870_v6 = vpop.f32.mrf.mxu0 }
 0x65f   : > { %v890_v10 = vadd.f32 %v1901_v20, %v870_v6 }
 0x661   : > { %v1026_v7 = vpop.f32.mrf.mxu3 }
 0x666   : > { %v872_v8 = vpop.f32.mrf.mxu0 }
 0x66e   : > { %v967_v11 = vpop.f32.mrf.mxu0 }
 0x66f   : > { %v971_v12 = vadd.f32 %v967_v11, %v890_v10 }
 0x676   : > { %v969_v13 = vpop.f32.mrf.mxu0 }
 0x6df   : > { %v1046_v14 = vpop.f32.mrf.mxu2 }
 0x6e0   : > { %v1050_v15 = vadd.f32 %v1046_v14, %v971_v12 }
 0x6e2   : > { %v1051_v17 = vadd.f32 %v1050_v15, %v1846_v1  ;;  %v1525_v1 = vld [vmem:[%s1822_s26] sm:$0xff] }
 0x6e3   : > { %1120 = vmatpush.bf16.msrb.mxu0 %v1525_v1 }
 0x6e4   : > { %v1931_v18 = vadd.f32 %v1591_v16, %v1051_v17 }
 0x6e6   : > { %v1059_v19 = vsel %vm651_vm1, %v1931_v18, 0.0 }
 0x6e7   : > { %1060 = vadd.xlane.f32.xlu2 %v1059_v19  ;;  %v1048_v20 = vpop.f32.mrf.mxu2 }
 0x75a   : > { %v1061_v21 = vpop.xlane.xlu2 %1060 }
 0x75b   : > { %v1062_v22 = vmul.f32 %v1061_v21, %v1850_v9 }
 0x75d   : > { %v1063_v23 = vsub.f32 %v1931_v18, %v1062_v22 }
 0x75f   : > { %v1064_v24 = vmul.f32 %v1063_v23, %v1063_v23 }
 0x761   : > { %v1065_v25 = vsel %vm651_vm1, %v1064_v24, 0.0 }
 0x762   : > { %1066 = vadd.xlane.f32.xlu0 %v1065_v25 }
 0x7d5   : > { %v1067_v27 = vpop.xlane.xlu0 %1066 }
 0x7d6   : > { %v1068_v28 = vmul.f32 %v1067_v27, %v1850_v9  ;;  %v1595_v27 = vld [vmem:[%s635_s23] ss:$0 sm:$0xff] }
 0x7d8   : > { %v1069_v29 = vadd.f32 1e-05, %v1068_v28 }
 0x7da   : > { %1616 = vrsqrt.f32 %v1069_v29  ;;  %vm1076_vm14 = vweird.f32 %v1069_v29 }
 0x7e0   : > { %v1617_v30 = vpop.eup %1616 }
 0x7e1   : > { %v1071_v31 = vmul.f32 %v1617_v30, %v1069_v29  ;;  %vm1077_vm13 = vweird.f32 %v1617_v30 }
 0x7e2   : > { %vm1078_vm15 = vmor %vm1076_vm14, %vm1077_vm13 }
 0x7e3   : > { %v1072_v32 = vmul.f32 %v1617_v30, %v1071_v31 }
 0x7e5   : > { %v1073_v33 = vmul.f32 0.5, %v1072_v32 }
 0x7e7   : > { %v1074_v34 = vsub.f32 1.5, %v1073_v33 }
 0x7e9   : > { %v1075_v35 = vmul.f32 %v1617_v30, %v1074_v34 }
 0x7eb   : > { %v1079_v9 = vsel %vm1078_vm15, %v1617_v30, %v1075_v35 }
 0x7ec   : > { %v1080_v38 = vmul.f32 %v1079_v9, %v1063_v23 }
 0x7ee   : > { %v1084_v40 = vmul.f32 %v1592_v37, %v1080_v38 }
 0x7f0   : > { %v1088_v41 = vadd.f32 %v1593_v39, %v1084_v40 }
 0x7f2   : > { %v1089_v42 = vpack.c.bf16 %v1088_v41, %v1088_v41 }
 0x7f4   : > { %1482 = vmatmul.msk.bf16.vlgmr.msrb.gmra.mxu0 %vm710_vm6, %v1089_v42 }
 0x871   : > { %v1122_v36 = vpop.f32.mrf.mxu0 }
 0x872   : > { %v1123_v46 = vadd.f32 %v1594_v44, %v1122_v36 }
 0x874   : > { %v1127_v47 = vmul.f32 0.70710677, %v1123_v46  ;;  %v1126_v24 = vmul.f32 0.5, %v1123_v46 }
 0x876   : > { %v1128_v49 = vand.u32 2147483647, %v1127_v47  ;;  %vm1161_vm5 = vcmp.ge.f32.partialorder %v1127_v47, 0.0 }
 0x878   : > { %v1129_v50 = vmul.f32 0.3275911, %v1128_v49  ;;  %v1155_v5 = vsub.f32 0.0, %v1128_v49 }
 0x879   : > { %v1124_v52 = vpop.f32.mrf.mxu0 }
 0x87a   : > { %v1130_v53 = vadd.f32 1.0, %v1129_v50  ;;  %v1156_v8 = vmul.f32 %v1155_v5, %v1128_v49 }
 0x87c   : > { %1618 = vrcp.f32 %v1130_v53  ;;  %v1142_v60 = vand.u32 2147483648, %v1130_v53  ;;  %v1140_v62 = vand.u32 2147483647, %v1130_v53  ;;  %vm1136_vm2 = vweird.f32 %v1130_v53 }
 0x87d   : > { %v1157_v12 = vmul.f32 1.442695, %v1156_v8 }
 0x87e   : > { %v1143_v2 = vor.u32 1.1754944e-38, %v1142_v60  ;;  %vm1141_vm4 = vcmp.eq.f32.partialorder %v1140_v62, 8.507059e+37 }
 0x87f   : > { %1620 = vpow2.f32 %v1157_v12 }
 0x882   : > { %v1619_v56 = vpop.eup %1618 }
 0x883   : > { %v1132_v57 = vmul.f32 %v1619_v56, %v1130_v53  ;;  %vm1137_vm0 = vweird.f32 %v1619_v56 }
 0x884   : > { %vm1138_vm3 = vmor %vm1136_vm2, %vm1137_vm0 }
 0x885   : > { %v1133_v59 = vsub.f32 1.0, %v1132_v57  ;;  %v1621_v19 = vpop.eup %1620 }
 0x887   : > { %v1134_v61 = vmul.f32 %v1619_v56, %v1133_v59 }
 0x889   : > { %v1135_v0 = vadd.f32 %v1619_v56, %v1134_v61 }
 0x88b   : > { %v1139_v3 = vsel %vm1138_vm3, %v1619_v56, %v1135_v0 }
 0x88c   : > { %v1144_v4 = vsel %vm1141_vm4, %v1143_v2, %v1139_v3 }
 0x88d   : > { %v1146_v6 = vmul.f32 1.0614054, %v1144_v4 }
 0x88f   : > { %v1483_v7 = vadd.f32 -1.4531521, %v1146_v6 }
 0x891   : > { %v1148_v10 = vmul.f32 %v1483_v7, %v1144_v4 }
 0x893   : > { %v1149_v11 = vadd.f32 1.4214138, %v1148_v10 }
 0x895   : > { %v1150_v13 = vmul.f32 %v1149_v11, %v1144_v4 }
 0x897   : > { %v1484_v14 = vadd.f32 -0.28449672, %v1150_v13 }
 0x899   : > { %v1152_v15 = vmul.f32 %v1484_v14, %v1144_v4 }
 0x89b   : > { %v1153_v16 = vadd.f32 0.2548296, %v1152_v15 }
 0x89d   : > { %v1154_v17 = vmul.f32 %v1153_v16, %v1144_v4 }
 0x89f   : > { %v1159_v20 = vmul.f32 %v1621_v19, %v1154_v17 }
 0x8a1   : > { %v1160_v21 = vsub.f32 1.0, %v1159_v20 }
 0x8a3   : > { %v1162_v22 = vsub.f32 0.0, %v1160_v21 }
 0x8a5   : > { %v1163_v23 = vsel %vm1161_vm5, %v1160_v21, %v1162_v22 }
 0x8a6   : > { %v1164_v25 = vadd.f32 1.0, %v1163_v23 }
 0x8a8   : > { %v1165_v26 = vmul.f32 %v1164_v25, %v1126_v24 }
 0x8aa   : > { %v1166_v1 = vpack.c.bf16 %v1165_v26, %v1165_v26 }
 0x8ac   : > { %1243 = vmatmul.bf16.vlgmr.msra.gmra.mxu1 %v1166_v1 }
 0x929   : > { %v1244_v28 = vpop.f32.mrf.mxu1 }
 0x92a   : > { %v1245_v29 = vadd.f32 %v1595_v27, %v1244_v28 }
 0x92c   : > { %v1248_v30 = vadd.f32 %v1245_v29, %v1931_v18 }
 0x92e   : > { %1249 = vst.msk [vmem:[%s1841_s2] sm:$0x1f] %vm651_vm1, %v1248_v30 }
 0x931   : > { %v1246_v31 = vpop.f32.mrf.mxu1 }
 0x932 PF: > { %s2030_s3 = sld [smem:[#allocation5_spill]] }
 0x933   : > { %s2031_s25 = sld [smem:[#allocation3_spill]] }
 0x934   : > { %s2032_s26 = sld [smem:[#allocation4_spill]] }
 0x935   : > { %s2033_s27 = sld [smem:[#allocation6_spill]] }
 0x936   : > { %s2034_s28 = sld [smem:[#allocation7_spill]] }
 0x938   : > { %s23_s29 = sadd.s32 1, %s2030_s3  }
 0x939   : > { %p20_p8 = scmp.ge.s32.totalorder %s23_s29, 6  }
 0x93b   :  { %22 = sbr.rel (!%p20_p8) target bundleno = 6 (0x6), region = 145 }

// kernel: _lambda_.10
= control target key start
LH: loop header
LB: loop body
LE: loop exit
PB: predicated region body
PF: predicated region fallthrough
CT: control target
= control target key end

     0   :  { %vm41_vm0 = vcmask 254976   ;;  %vm28_vm1 = vcmask 261120   ;;  %v262_v10 = vmov 32.0   ;;  %s388_s0 = inlined_call_operand.vmem [shape: f32[34,32], index: 0, kind: input, shape index: {}]   ;;  %s389_s1 = inlined_call_operand.vmem [shape: f32[1,32], index: 1, kind: input, shape index: {}]   ;;  %s390_s2 = inlined_call_operand.vmem [shape: f32[1,32], index: 2, kind: input, shape index: {}]   ;;  %s391_s4 = inlined_call_operand.vmem [shape: f32[1,64], index: 4, kind: input, shape index: {}]   ;;  %s392_s3 = inlined_call_operand.vmem [shape: bf16[32,64], index: 3, kind: input, shape index: {}]   ;;  %s393_s5 = inlined_call_operand.vmem [shape: f32[34,64], index: 5, kind: output, shape index: {}]  }
   0x1   :  { %v25_v0 = vld [vmem:[%s388_s0 + $0x20] sm:$0x3]  ;;  %v22_v1 = vld [vmem:[%s388_s0 + $0x8] sm:$0xff]  ;;  %v24_v4 = vld [vmem:[%s388_s0 + $0x18] sm:$0xff]  ;;  %250 = vrcp.f32 %v262_v10 }
   0x2   :  { %v42_v2 = vsel %vm41_vm0, %v25_v0, 0.0  ;;  %v32_v3 = vsel %vm28_vm1, %v22_v1, 0.0  ;;  %v38_v5 = vsel %vm28_vm1, %v24_v4, 0.0  ;;  %v23_v6 = vld [vmem:[%s388_s0 + $0x10] sm:$0xff]  ;;  %v21_v7 = vld [vmem:[%s388_s0] sm:$0xff]  ;;  %v241_v42 = vld [vmem:[%s392_s3 + $0x8] sm:$0xff] }
   0x3   :  { %43 = vadd.xlane.f32.xlu0 %v42_v2  ;;  %33 = vadd.xlane.f32.xlu1 %v32_v3  ;;  %v35_v8 = vsel %vm28_vm1, %v23_v6, 0.0  ;;  %v29_v9 = vsel %vm28_vm1, %v21_v7, 0.0  ;;  %v240_v43 = vld [vmem:[%s392_s3] sm:$0xff] }
   0x4   :  { %39 = vadd.xlane.f32.xlu2 %v38_v5  ;;  %243 = vmatpush.bf16.msra.mxu2 %v241_v42 }
   0x5   :  { %201 = vmatpush.bf16.msra.mxu0 %v241_v42  ;;  %242 = vmatpush.bf16.msra.mxu1 %v241_v42 }
   0x7   :  { %v251_v11 = vpop.eup %250 }
   0x8   :  { %v46_v12 = vmul.f32 32.0, %v251_v11  ;;  %vm50_vm2 = vweird.f32 %v251_v11  ;;  %245 = vmatpush.bf16.msra.mxu2 %v240_v43 }
   0x9   :  { %202 = vmatpush.bf16.msra.mxu0 %v240_v43  ;;  %244 = vmatpush.bf16.msra.mxu1 %v240_v43 }
   0xa   :  { %v47_v13 = vsub.f32 1.0, %v46_v12 }
   0xb   :  { %36 = vadd.xlane.f32.xlu1 %v35_v8  ;;  %30 = vadd.xlane.f32.xlu0 %v29_v9 }
   0xc   :  { %v48_v14 = vmul.f32 %v251_v11, %v47_v13 }
   0xe   :  { %v49_v15 = vadd.f32 %v251_v11, %v48_v14 }
  0x10   :  { %v313_v16 = vsel %vm50_vm2, %v251_v11, %v49_v15  ;;  %v247_v11 = vld [vmem:[%s389_s1] ss:$0 sm:$0xff] }
  0x76   :  { %v44_v17 = vpop.xlane.xlu0 %43  ;;  %v34_v18 = vpop.xlane.xlu1 %33 }
  0x77   :  { %v56_v19 = vmul.f32 %v313_v16, %v44_v17  ;;  %v53_v20 = vmul.f32 %v313_v16, %v34_v18  ;;  %v40_v25 = vpop.xlane.xlu2 %39 }
  0x78   :  { %v55_v32 = vmul.f32 %v313_v16, %v40_v25 }
  0x79   :  { %v317_v21 = vsub.f32 %v25_v0, %v56_v19  ;;  %v319_v22 = vsub.f32 %v22_v1, %v53_v20 }
  0x7a   :  { %v334_v35 = vsub.f32 %v24_v4, %v55_v32 }
  0x7b   :  { %v66_v23 = vmul.f32 %v317_v21, %v317_v21  ;;  %v63_v24 = vmul.f32 %v319_v22, %v319_v22 }
  0x7c   :  { %v65_v40 = vmul.f32 %v334_v35, %v334_v35 }
  0x7d   :  { %v79_v26 = vsel %vm41_vm0, %v66_v23, 0.0  ;;  %v70_v27 = vsel %vm28_vm1, %v63_v24, 0.0 }
  0x7e   :  { %80 = vadd.xlane.f32.xlu2 %v79_v26  ;;  %71 = vadd.xlane.f32.xlu1 %v70_v27  ;;  %v37_v28 = vpop.xlane.xlu1 %36  ;;  %v31_v29 = vpop.xlane.xlu0 %30  ;;  %v76_v41 = vsel %vm28_vm1, %v65_v40, 0.0 }
  0x7f   :  { %v54_v30 = vmul.f32 %v313_v16, %v37_v28  ;;  %v52_v31 = vmul.f32 %v313_v16, %v31_v29 }
  0x81   :  { %v330_v33 = vsub.f32 %v23_v6, %v54_v30  ;;  %v332_v34 = vsub.f32 %v21_v7, %v52_v31 }
  0x83   :  { %v64_v36 = vmul.f32 %v330_v33, %v330_v33  ;;  %v62_v37 = vmul.f32 %v332_v34, %v332_v34 }
  0x85   :  { %v73_v38 = vsel %vm28_vm1, %v64_v36, 0.0  ;;  %v67_v39 = vsel %vm28_vm1, %v62_v37, 0.0 }
  0x86   :  { %74 = vadd.xlane.f32.xlu2 %v73_v38  ;;  %68 = vadd.xlane.f32.xlu0 %v67_v39 }
  0x8e   :  { %77 = vadd.xlane.f32.xlu0 %v76_v41 }
  0xf1   :  { %v81_v44 = vpop.xlane.xlu2 %80  ;;  %v72_v45 = vpop.xlane.xlu1 %71 }
  0xf2   :  { %v86_v46 = vmul.f32 %v81_v44, %v313_v16  ;;  %v83_v47 = vmul.f32 %v72_v45, %v313_v16 }
  0xf4   :  { %v91_v48 = vadd.f32 1e-05, %v86_v46  ;;  %v88_v49 = vadd.f32 1e-05, %v83_v47 }
  0xf6   :  { %252 = vrsqrt.f32 %v91_v48  ;;  %vm138_vm4 = vweird.f32 %v91_v48  ;;  %vm108_vm5 = vweird.f32 %v88_v49 }
  0xf7   :  { %254 = vrsqrt.f32 %v88_v49 }
  0xf9   :  { %v75_v50 = vpop.xlane.xlu2 %74  ;;  %v69_v51 = vpop.xlane.xlu0 %68 }
  0xfa   :  { %v84_v52 = vmul.f32 %v75_v50, %v313_v16  ;;  %v82_v53 = vmul.f32 %v69_v51, %v313_v16 }
  0xfc   :  { %v253_v54 = vpop.eup %252  ;;  %v89_v55 = vadd.f32 1e-05, %v84_v52  ;;  %v87_v56 = vadd.f32 1e-05, %v82_v53 }
  0xfd   :  { %v255_v57 = vpop.eup %254  ;;  %v133_v58 = vmul.f32 %v253_v54, %v91_v48  ;;  %vm139_vm3 = vweird.f32 %v253_v54 }
  0xfe   :  { %v103_v59 = vmul.f32 %v255_v57, %v88_v49  ;;  %256 = vrsqrt.f32 %v89_v55  ;;  %vm140_vm6 = vmor %vm138_vm4, %vm139_vm3  ;;  %vm109_vm7 = vweird.f32 %v255_v57  ;;  %vm118_vm9 = vweird.f32 %v89_v55 }
  0xff   :  { %v134_v60 = vmul.f32 %v253_v54, %v133_v58  ;;  %258 = vrsqrt.f32 %v87_v56  ;;  %vm110_vm8 = vmor %vm108_vm5, %vm109_vm7  ;;  %vm98_vm12 = vweird.f32 %v87_v56  ;;  %vm223_vm3 = vcmask 517120  }
 0x100   :  { %v104_v61 = vmul.f32 %v255_v57, %v103_v59  ;;  %vm218_vm4 = vcmask 523264  }
 0x101   :  { %v135_v62 = vmul.f32 0.5, %v134_v60  ;;  %v78_v63 = vpop.xlane.xlu0 %77 }
 0x102   :  { %v105_v0 = vmul.f32 0.5, %v104_v61  ;;  %v85_v1 = vmul.f32 %v78_v63, %v313_v16  ;;  %v248_v16 = vld [vmem:[%s390_s2] ss:$0 sm:$0xff] }
 0x103   :  { %v136_v2 = vsub.f32 1.5, %v135_v62 }
 0x104   :  { %v257_v3 = vpop.eup %256  ;;  %v106_v4 = vsub.f32 1.5, %v105_v0  ;;  %v90_v5 = vadd.f32 1e-05, %v85_v1 }
 0x105   :  { %v259_v6 = vpop.eup %258  ;;  %v137_v7 = vmul.f32 %v253_v54, %v136_v2  ;;  %v113_v8 = vmul.f32 %v257_v3, %v89_v55  ;;  %vm119_vm11 = vweird.f32 %v257_v3 }
 0x106   :  { %v107_v9 = vmul.f32 %v255_v57, %v106_v4  ;;  %v93_v10 = vmul.f32 %v259_v6, %v87_v56  ;;  %260 = vrsqrt.f32 %v90_v5  ;;  %vm99_vm10 = vweird.f32 %v259_v6  ;;  %vm120_vm14 = vmor %vm118_vm9, %vm119_vm11 }
 0x107   :  { %v141_v12 = vsel %vm140_vm6, %v253_v54, %v137_v7  ;;  %v114_v13 = vmul.f32 %v257_v3, %v113_v8  ;;  %vm100_vm13 = vmor %vm98_vm12, %vm99_vm10  ;;  %vm128_vm0 = vweird.f32 %v90_v5 }
 0x108   :  { %v94_v14 = vmul.f32 %v259_v6, %v93_v10  ;;  %v146_v15 = vmul.f32 %v141_v12, %v317_v21  ;;  %v111_v18 = vsel %vm110_vm8, %v255_v57, %v107_v9 }
 0x109   :  { %v115_v17 = vmul.f32 0.5, %v114_v13  ;;  %v143_v27 = vmul.f32 %v111_v18, %v319_v22 }
 0x10a   :  { %v95_v19 = vmul.f32 0.5, %v94_v14  ;;  %v154_v20 = vmul.f32 %v247_v11, %v146_v15 }
 0x10b   :  { %v116_v23 = vsub.f32 1.5, %v115_v17  ;;  %v151_v39 = vmul.f32 %v247_v11, %v143_v27 }
 0x10c   :  { %v261_v24 = vpop.eup %260  ;;  %v96_v25 = vsub.f32 1.5, %v95_v19  ;;  %v162_v26 = vadd.f32 %v248_v16, %v154_v20 }
 0x10d   :  { %v117_v28 = vmul.f32 %v257_v3, %v116_v23  ;;  %v123_v21 = vmul.f32 %v261_v24, %v90_v5  ;;  %vm129_vm15 = vweird.f32 %v261_v24  ;;  %v159_v44 = vadd.f32 %v248_v16, %v151_v39 }
 0x10e   :  { %v97_v29 = vmul.f32 %v259_v6, %v96_v25  ;;  %v165_v30 = vpack.c.bf16 %v162_v26, %v162_v26  ;;  %vm130_vm2 = vmor %vm128_vm0, %vm129_vm15 }
 0x10f   :  { %v124_v31 = vmul.f32 %v261_v24, %v123_v21  ;;  %v121_v36 = vsel %vm120_vm14, %v257_v3, %v117_v28 }
 0x110   :  { %v101_v32 = vsel %vm100_vm13, %v259_v6, %v97_v29  ;;  %239 = vmatmul.msk.bf16.vlgmr.msra.gmra.mxu2 %vm28_vm1, %v165_v30  ;;  %v144_v41 = vmul.f32 %v121_v36, %v330_v33  ;;  %v249_v33 = vld [vmem:[%s391_s4] ss:$0 sm:$0xff] }
 0x111   :  { %v142_v37 = vmul.f32 %v101_v32, %v332_v34  ;;  %v125_v38 = vmul.f32 0.5, %v124_v31 }
 0x112   :  { %v152_v48 = vmul.f32 %v247_v11, %v144_v41 }
 0x113   :  { %v126_v40 = vsub.f32 1.5, %v125_v38  ;;  %v150_v22 = vmul.f32 %v247_v11, %v142_v37 }
 0x114   :  { %v160_v49 = vadd.f32 %v248_v16, %v152_v48 }
 0x115   :  { %v127_v42 = vmul.f32 %v261_v24, %v126_v40  ;;  %v158_v43 = vadd.f32 %v248_v16, %v150_v22 }
 0x117   :  { %v131_v45 = vsel %vm130_vm2, %v261_v24, %v127_v42  ;;  %v163_v46 = vpack.c.bf16 %v159_v44, %v158_v43 }
 0x118   :  { %v145_v47 = vmul.f32 %v131_v45, %v334_v35 }
 0x119   :  { %237 = vmatmul.msk.bf16.vlgmr.msra.gmra.mxu0 %vm28_vm1, %v163_v46 }
 0x11a   :  { %v153_v34 = vmul.f32 %v247_v11, %v145_v47 }
 0x11c   :  { %v161_v50 = vadd.f32 %v248_v16, %v153_v34 }
 0x11e   :  { %v164_v51 = vpack.c.bf16 %v161_v50, %v160_v49 }
 0x120   :  { %238 = vmatmul.msk.bf16.vlgmr.msra.gmra.mxu1 %vm28_vm1, %v164_v51 }
 0x193   :  { %v214_v52 = vpop.f32.mrf.mxu2 }
 0x194   :  { %v215_v53 = vadd.f32 %v249_v33, %v214_v52 }
 0x196   :  { %224 = vst.msk [vmem:[%s393_s5 + $0x20] sm:$0x3] %vm223_vm3, %v215_v53  ;;  %v204_v35 = vpop.f32.mrf.mxu0 }
 0x197   :  { %v205_v54 = vadd.f32 %v249_v33, %v204_v35 }
 0x199   :  { %219 = vst.msk [vmem:[%s393_s5] sm:$0xff] %vm218_vm4, %v205_v54 }
 0x19b   :  { %v216_v55 = vpop.f32.mrf.mxu2 }
 0x19d   :  { %v209_v56 = vpop.f32.mrf.mxu1 }
 0x19e   :  { %v206_v57 = vpop.f32.mrf.mxu0  ;;  %v210_v58 = vadd.f32 %v249_v33, %v209_v56 }
 0x19f   :  { %v207_v59 = vadd.f32 %v249_v33, %v206_v57 }
 0x1a0   :  { %221 = vst.msk [vmem:[%s393_s5 + $0x10] sm:$0xff] %vm218_vm4, %v210_v58 }
 0x1a1   :  { %220 = vst.msk [vmem:[%s393_s5 + $0x8] sm:$0xff] %vm218_vm4, %v207_v59 }
 0x1a5   :  { %v211_v60 = vpop.f32.mrf.mxu1 }
 0x1a6   :  { %v212_v61 = vadd.f32 %v249_v33, %v211_v60 }
 0x1a8   :  { %222 = vst.msk [vmem:[%s393_s5 + $0x18] sm:$0xff] %vm218_vm4, %v212_v61 }

// kernel: _lambda_.9
= control target key start
LH: loop header
LB: loop body
LE: loop exit
PB: predicated region body
PF: predicated region fallthrough
CT: control target
= control target key end

     0   :  { %s2313_s29 = smov 0   ;;  %s2315_s30 = smov 0   ;;  %s2731_s0 = inlined_call_operand.vmem [shape: f32[2,17,32], index: 0, kind: input, shape index: {}]   ;;  %s2732_s1 = inlined_call_operand.vmem [shape: f32[1,17,32], index: 1, kind: input, shape index: {}]   ;;  %s2733_s2 = inlined_call_operand.vmem [shape: f32[2,1,32], index: 2, kind: input, shape index: {}]   ;;  %s2734_s3 = inlined_call_operand.vmem [shape: f32[2,1,32], index: 3, kind: input, shape index: {}]   ;;  %s2735_s4 = inlined_call_operand.vmem [shape: bf16[2,32,96], index: 4, kind: input, shape index: {}]   ;;  %s2736_s5 = inlined_call_operand.vmem [shape: f32[2,1,96], index: 5, kind: input, shape index: {}]   ;;  %s2737_s6 = inlined_call_operand.vmem [shape: bf16[2,4,8,32], index: 6, kind: input, shape index: {}]   ;;  %s2738_s7 = inlined_call_operand.vmem [shape: f32[2,1,32], index: 7, kind: input, shape index: {}]   ;;  %s2739_s8 = inlined_call_operand.vmem [shape: f32[2,1,32], index: 8, kind: input, shape index: {}]   ;;  %s2740_s9 = inlined_call_operand.vmem [shape: f32[2,1,32], index: 9, kind: input, shape index: {}]   ;;  %s2741_s10 = inlined_call_operand.vmem [shape: bf16[2,32,128], index: 10, kind: input, shape index: {}]   ;;  %s2742_s11 = inlined_call_operand.vmem [shape: f32[2,1,128], index: 11, kind: input, shape index: {}]   ;;  %s2743_s12 = inlined_call_operand.vmem [shape: bf16[2,128,32], index: 12, kind: input, shape index: {}]   ;;  %s2744_s13 = inlined_call_operand.vmem [shape: f32[2,1,32], index: 13, kind: input, shape index: {}]   ;;  %s2745_s14 = inlined_call_operand.vmem [shape: f32[2,17,32], index: 14, kind: output, shape index: {}]  }
   0x1   :  { %2751 = sst [smem:[#allocation8_spill]] %s2731_s0  ;;  %s2317_s15 = smov 0  }
   0x2   :  { %2752 = sst [smem:[#allocation9_spill]] %s2732_s1  ;;  %s2319_s16 = smov 0  }
   0x3   :  { %2753 = sst [smem:[#allocation10_spill]] %s2734_s3  ;;  %s2321_s17 = smov 0  }
   0x4   :  { %2754 = sst [smem:[#allocation11_spill]] %s2735_s4 }
   0x5   :  { %2755 = sst [smem:[#allocation12_spill]] %s2737_s6 }
   0x6   :  { %2756 = sst [smem:[#allocation13_spill]] %s2745_s14 }
   0x7 LB: > { %2757 = sst [smem:[#allocation2_spill]] %s2207_s29  ;;  %s33_s18 = sadd.s32 1, %s2215_s15  ;;  %s2223_s17 = sphi %s2321_s17, %s24_s17   ;;  %s2219_s16 = sphi %s2319_s16, %s2781_s16   ;;  %s2215_s15 = sphi %s2317_s15, %s2780_s15   ;;  %s2211_s30 = sphi %s2315_s30, %s2779_s30   ;;  %s2207_s29 = sphi %s2313_s29, %s2778_s29  }
   0x8   : > { %2758 = sst [smem:[#allocation3_spill]] %s2215_s15  ;;  %s36_s19 = sadd.s32 1, %s2219_s16 }
   0x9   : > { %2759 = sst [smem:[#allocation4_spill]] %s2219_s16  ;;  %p34_p0 = scmp.ge.s32.totalorder %s33_s18, 2 }
   0xa   : > { %2760 = sst [smem:[#allocation5_spill]] %s2223_s17  ;;  %p1932_p1 = scmp.ge.s32.totalorder %s2223_s17, 1 }
   0xb   : > { %p528_p2 = scmp.lt.s32.totalorder %s2223_s17, 5  ;;  %s2783_s18 = smov (%p34_p0, %s33_s18), 0 }
   0xc   : > { %2761 = sst [smem:[#allocation6_spill]] %s2783_s18  ;;  %s2785_s19 = smov (!%p34_p0, %s36_s19), %s2219_s16 }
   0xd   : > { %p529_p3 = pnand %p1932_p1, %p528_p2  ;;  %p38_p4 = scmp.ge.s32.totalorder %s2785_s19, 2 }
   0xe   : > { %p618_p5 = scmp.lt.s32.totalorder (!%p529_p3), %s2211_s30, 1  ;;  %p623_p6 = scmp.lt.s32.totalorder (!%p529_p3), %s2207_s29, 1 }
   0xf   : > { %s2787_s19 = smov (%p38_p4, %s2785_s19), 0  ;;  %532 = sbr.rel (%p529_p3) target bundleno = 2497 (0x9c1), region = 76 }
  0x10   : > { %2762 = sst [smem:[#allocation7_spill]] %s2787_s19 }
  0x11   : > { %s2764_s0 = sld [smem:[#allocation8_spill]] (!%p529_p3) }
  0x12   : > { %s2765_s4 = sld [smem:[#allocation11_spill]] (!%p529_p3) }
  0x13   : > { %s2766_s6 = sld [smem:[#allocation12_spill]] (!%p529_p3) }
  0x14   : > { %s2789_s30 = smov (!%p618_p5, %s2211_s30), 1 }
  0x15   : > { %s2347_s20 = scalar_select %p623_p6, %s2207_s29, 1 }
  0x16   : > { %s2049_s21 = smul.u32 24, %s2789_s30 }
  0x17   : > { %s2031_s16 = sshll.u32 %s2347_s20, 4  ;;  %s658_s14 = scalar_lea.vmem %s2742_s11, %s2347_s20 }
  0x18   : > { %s622_s18 = scalar_lea.vmem %s2764_s0, %s2049_s21  ;;  %s2364_s1 = scalar_lea.vmem %s2765_s4, %s2031_s16 }
  0x19   : > { %s2373_s24 = scalar_lea.vmem %s2766_s6, %s2031_s16  ;;  %s2390_s30 = scalar_lea.vmem %s2741_s10, %s2031_s16 }
  0x1a   : > { %s2034_s6 = sshll.u32 %s2347_s20, 6  ;;  %s666_s19 = scalar_lea.vmem %s2744_s13, %s2347_s20 }
  0x1b   : > { %s2404_s0 = scalar_lea.vmem %s2743_s12, %s2034_s6  ;;  %s2767_s4 = sld [smem:[#allocation13_spill]] }
  0x1c   : > { %s2768_s16 = sld [smem:[#allocation2_spill]] }
  0x21   : > { %s2409_s3 = scalar_lea.vmem %s2767_s4, %s2049_s21 }
  0x22   : > { %p1943_p7 = scmp.ne.s32.totalorder %s2768_s16, 0 }
  0x23   : > { %s2769_s23 = sld [smem:[#allocation9_spill]] (!%p1943_p7) }
  0x24   : > { %676 = sbr.rel (%p1943_p7) target bundleno = 48 (0x30), region = 80 }
  0x29   : > { %v677_v0 = vld [vmem:[%s622_s18] sm:$0xff]  ;;  %vm686_vm0 = vcmask 261120   ;;  %v678_v2 = vld [vmem:[%s622_s18 + $0x8] sm:$0xff]  ;;  %v679_v5 = vld [vmem:[%s622_s18 + $0x10] sm:$0x1]  ;;  %vm689_vm1 = vcmask 253952  }
  0x2a   : > { %v680_v1 = vld [vmem:[%s2769_s23] sm:$0xff]  ;;  %v681_v4 = vld [vmem:[%s2769_s23 + $0x8] sm:$0xff]  ;;  %v682_v6 = vld [vmem:[%s2769_s23 + $0x10] sm:$0x1] }
  0x2b   : > { %v683_v3 = vadd.f32 %v680_v1, %v677_v0  ;;  %v684_v7 = vadd.f32 %v681_v4, %v678_v2  ;;  %v685_v8 = vadd.f32 %v682_v6, %v679_v5 }
  0x2d   : > { %687 = vst.msk [vmem:[%s2409_s3] sm:$0xff] %vm686_vm0, %v683_v3 }
  0x2e   : > { %688 = vst.msk [vmem:[%s2409_s3 + $0x8] sm:$0xff] %vm686_vm0, %v684_v7 }
  0x2f   : > { %690 = vst.msk [vmem:[%s2409_s3 + $0x10] sm:$0x1] %vm689_vm1, %v685_v8 }
  0x30 PF: > { %vm696_vm2 = vcmask 261120   ;;  %vm703_vm3 = vcmask 253952   ;;  %v2225_v15 = vmov 32.0   ;;  %v2036_v37 = vld [vmem:[%s2364_s1 + $0x8] sm:$0xff]  ;;  %v2035_v40 = vld [vmem:[%s2364_s1] sm:$0xff]  ;;  %s2770_s26 = scalar_lea.vmem %s2733_s2, %s2347_s20  ;;  %s2771_s15 = sld [smem:[#allocation10_spill]] }
  0x31   : > { %2111 = vrcp.f32 %v2225_v15  ;;  %817 = vmatpush.bf16.msra.mxu0 %v2036_v37  ;;  %v2103_v62 = vld [vmem:[%s2770_s26] ss:$0 sm:$0xff]  ;;  %s2773_s22 = scalar_lea.vmem %s2736_s5, %s2347_s20  ;;  %s2226_s6 = smov 96   ;;  %vm921_vm14 = vcmask 1040384   ;;  %vm842_vm15 = vcmask 64512   ;;  %vm873_vm0 = vcmask 138240  }
  0x32   : > { %s2227_s25 = smov 64   ;;  %vm880_vm1 = vcmask 131072   ;;  %s2229_s4 = smov 88  }
  0x33   : > { %s2230_s21 = smov 72   ;;  %s2231_s1 = smov 80  }
  0x34   : > { %v2425_v9 = vld [vmem:[%s2409_s3] sm:$0xff]  ;;  %s2232_s18 = smov 112   ;;  %s2233_s26 = smov 120  }
  0x35   : > { %v697_v11 = vsel %vm696_vm2, %v2425_v9, 0.0  ;;  %v2435_v13 = vld [vmem:[%s2409_s3 + $0x8] sm:$0xff]  ;;  %818 = vmatpush.bf16.msra.mxu0 %v2035_v40  ;;  %s2234_s27 = smov 104   ;;  %s2235_s28 = smov 56  }
  0x36   : > { %v2428_v10 = vld [vmem:[%s2409_s3 + $0x10] sm:$0x1]  ;;  %698 = vadd.xlane.f32.xlu0 %v697_v11  ;;  %v700_v14 = vsel %vm696_vm2, %v2435_v13, 0.0  ;;  %s2772_s17 = scalar_lea.vmem %s2771_s15, %s2347_s20  ;;  %s2236_s15 = smov 48  }
  0x37   : > { %v704_v12 = vsel %vm703_vm3, %v2428_v10, 0.0  ;;  %v2112_v16 = vpop.eup %2111  ;;  %v2104_v5 = vld [vmem:[%s2772_s17] ss:$0 sm:$0xff]  ;;  %s2237_s17 = smov 40   ;;  %s2774_s29 = scalar_lea.vmem %s2738_s7, %s2347_s20 }
  0x38   : > { %705 = vadd.xlane.f32.xlu1 %v704_v12  ;;  %v708_v17 = vmul.f32 32.0, %v2112_v16  ;;  %vm712_vm4 = vweird.f32 %v2112_v16 }
  0x3a   : > { %v709_v18 = vsub.f32 1.0, %v708_v17 }
  0x3c   : > { %v710_v19 = vmul.f32 %v2112_v16, %v709_v18 }
  0x3e   : > { %701 = vadd.xlane.f32.xlu0 %v700_v14  ;;  %v711_v20 = vadd.f32 %v2112_v16, %v710_v19 }
  0x40   : > { %v2439_v21 = vsel %vm712_vm4, %v2112_v16, %v711_v20  ;;  %vm1065_vm4 = vcmask 1043456  }
  0xa9   : > { %v699_v22 = vpop.xlane.xlu0 %698 }
  0xaa   : > { %v714_v23 = vmul.f32 %v2439_v21, %v699_v22 }
  0xab   : > { %v706_v26 = vpop.xlane.xlu1 %705 }
  0xac   : > { %v717_v24 = vsub.f32 %v2425_v9, %v714_v23  ;;  %v716_v30 = vmul.f32 %v2439_v21, %v706_v26  ;;  %v2105_v23 = vld [vmem:[%s2773_s22] ss:$0 sm:$0xff] }
  0xae   : > { %v720_v25 = vmul.f32 %v717_v24, %v717_v24  ;;  %v2448_v32 = vsub.f32 %v2428_v10, %v716_v30 }
  0xb0   : > { %v723_v27 = vsel %vm696_vm2, %v720_v25, 0.0  ;;  %v722_v35 = vmul.f32 %v2448_v32, %v2448_v32 }
  0xb1   : > { %724 = vadd.xlane.f32.xlu1 %v723_v27  ;;  %v702_v28 = vpop.xlane.xlu0 %701 }
  0xb2   : > { %v715_v29 = vmul.f32 %v2439_v21, %v702_v28  ;;  %v729_v36 = vsel %vm703_vm3, %v722_v35, 0.0 }
  0xb4   : > { %v718_v31 = vsub.f32 %v2435_v13, %v715_v29 }
  0xb6   : > { %v721_v33 = vmul.f32 %v718_v31, %v718_v31 }
  0xb8   : > { %v726_v34 = vsel %vm696_vm2, %v721_v33, 0.0 }
  0xb9   : > { %727 = vadd.xlane.f32.xlu2 %v726_v34 }
  0xc1   : > { %730 = vadd.xlane.f32.xlu2 %v729_v36  ;;  %v2228_v36 = vmov 0  }
  0xc2   : > { %v2487_v37 = vsel %vm921_vm14, 65535, %v2228_v36 }
 0x124   : > { %v725_v38 = vpop.xlane.xlu1 %724 }
 0x125   : > { %v732_v39 = vmul.f32 %v725_v38, %v2439_v21 }
 0x127   : > { %v735_v41 = vadd.f32 1e-05, %v732_v39 }
 0x129   : > { %2113 = vrsqrt.f32 %v735_v41  ;;  %vm744_vm6 = vweird.f32 %v735_v41 }
 0x12c   : > { %v728_v42 = vpop.xlane.xlu2 %727 }
 0x12d   : > { %v733_v43 = vmul.f32 %v728_v42, %v2439_v21 }
 0x12f   : > { %v2114_v44 = vpop.eup %2113  ;;  %v736_v45 = vadd.f32 1e-05, %v733_v43 }
 0x130   : > { %v739_v46 = vmul.f32 %v2114_v44, %v735_v41  ;;  %vm745_vm5 = vweird.f32 %v2114_v44 }
 0x131   : > { %2115 = vrsqrt.f32 %v736_v45  ;;  %vm746_vm7 = vmor %vm744_vm6, %vm745_vm5  ;;  %vm754_vm9 = vweird.f32 %v736_v45 }
 0x132   : > { %v740_v47 = vmul.f32 %v2114_v44, %v739_v46 }
 0x134   : > { %v741_v48 = vmul.f32 0.5, %v740_v47  ;;  %v731_v49 = vpop.xlane.xlu2 %730 }
 0x135   : > { %v734_v50 = vmul.f32 %v731_v49, %v2439_v21 }
 0x136   : > { %v742_v51 = vsub.f32 1.5, %v741_v48 }
 0x137   : > { %v2116_v52 = vpop.eup %2115  ;;  %v737_v53 = vadd.f32 1e-05, %v734_v50 }
 0x138   : > { %v743_v54 = vmul.f32 %v2114_v44, %v742_v51  ;;  %v749_v55 = vmul.f32 %v2116_v52, %v736_v45  ;;  %vm755_vm8 = vweird.f32 %v2116_v52 }
 0x139   : > { %2117 = vrsqrt.f32 %v737_v53  ;;  %vm756_vm10 = vmor %vm754_vm9, %vm755_vm8  ;;  %vm764_vm11 = vweird.f32 %v737_v53 }
 0x13a   : > { %v750_v56 = vmul.f32 %v2116_v52, %v749_v55  ;;  %v747_v57 = vsel %vm746_vm7, %v2114_v44, %v743_v54 }
 0x13b   : > { %v768_v61 = vmul.f32 %v747_v57, %v717_v24 }
 0x13c   : > { %v751_v58 = vmul.f32 0.5, %v750_v56 }
 0x13d   : > { %v774_v4 = vmul.f32 %v2103_v62, %v768_v61 }
 0x13e   : > { %v752_v59 = vsub.f32 1.5, %v751_v58 }
 0x13f   : > { %v2118_v60 = vpop.eup %2117  ;;  %v780_v11 = vadd.f32 %v2104_v5, %v774_v4 }
 0x140   : > { %v753_v63 = vmul.f32 %v2116_v52, %v752_v59  ;;  %v759_v0 = vmul.f32 %v2118_v60, %v737_v53  ;;  %vm765_vm12 = vweird.f32 %v2118_v60 }
 0x141   : > { %vm766_vm13 = vmor %vm764_vm11, %vm765_vm12 }
 0x142   : > { %v757_v1 = vsel %vm756_vm10, %v2116_v52, %v753_v63  ;;  %v760_v2 = vmul.f32 %v2118_v60, %v759_v0 }
 0x143   : > { %v769_v3 = vmul.f32 %v757_v1, %v718_v31 }
 0x144   : > { %v761_v6 = vmul.f32 0.5, %v760_v2 }
 0x145   : > { %v775_v7 = vmul.f32 %v2103_v62, %v769_v3  ;;  %v947_v3 = vld [vmem:[%s2373_s24] sm:$0xf] }
 0x146   : > { %v762_v8 = vsub.f32 1.5, %v761_v6  ;;  %v1094_v4 = vsel %vm1065_vm4, %v947_v3, 0 }
 0x147   : > { %v781_v12 = vadd.f32 %v2104_v5, %v775_v7 }
 0x148   : > { %v763_v14 = vmul.f32 %v2118_v60, %v762_v8 }
 0x149   : > { %v783_v15 = vpack.c.bf16 %v781_v12, %v780_v11 }
 0x14a   : > { %v767_v16 = vsel %vm766_vm13, %v2118_v60, %v763_v14 }
 0x14b   : > { %1952 = vmatmul.msk.bf16.vlgmr.msra.gmra.mxu0 %vm696_vm2, %v783_v15  ;;  %v770_v17 = vmul.f32 %v767_v16, %v2448_v32 }
 0x14d   : > { %v776_v18 = vmul.f32 %v2103_v62, %v770_v17 }
 0x14f   : > { %v782_v19 = vadd.f32 %v2104_v5, %v776_v18 }
 0x151   : > { %v784_v20 = vpack.c.bf16 %v782_v19, %v782_v19 }
 0x15b   : > { %1953 = vmatmul.msk.bf16.gmra.mxu0 %vm696_vm2, %v784_v20 }
 0x1c8   : > { %v820_v22 = vpop.f32.mrf.mxu0 }
 0x1c9   : > { %v821_v24 = vadd.f32 %v2105_v23, %v820_v22 }
 0x1cb   : > { %v829_v27 = vmul.f32 0.35355338, %v821_v24 }
 0x1d0   : > { %v822_v25 = vpop.f32.mrf.mxu0 }
 0x1d1   : > { %v823_v26 = vadd.f32 %v2105_v23, %v822_v25 }
 0x1d3   : > { %v830_v28 = vmul.f32 0.35355338, %v823_v26  ;;  %v2477_v29 = vpack.c.bf16 %v823_v26, %v821_v24 }
 0x1d5   : > { %v2479_v30 = vpack.c.bf16 %v830_v28, %v829_v27  ;;  %838 = vrot.lane.b32.xlu1 %v2477_v29, %s2226_s6 }
 0x1d8   : > { %v825_v31 = vpop.f32.mrf.mxu0 }
 0x1d9   : > { %v826_v32 = vadd.f32 %v2105_v23, %v825_v31 }
 0x1db   : > { %v2482_v33 = vpack.c.bf16 %v826_v32, %v826_v32  ;;  %v831_v43 = vmul.f32 0.35355338, %v826_v32 }
 0x1dd   : > { %912 = vrot.lane.b32.xlu1 %v2482_v33, %s2227_s25  ;;  %840 = vrot.lane.b32.xlu0 %v2482_v33, %s2226_s6  ;;  %v833_v44 = vpack.c.bf16 %v831_v43, %v831_v43  ;;  %s2775_s6 = scalar_lea.vmem %s2739_s8, %s2347_s20 }
 0x1e0   : > { %v827_v34 = vpop.f32.mrf.mxu0 }
 0x247   : > { %v839_v35 = vpop.permute.xlu1 %838 }
 0x248   : > { %v850_v42 = vsel %vm842_vm15, %v839_v35, 0 }
 0x24f   : > { %v913_v38 = vpop.permute.xlu1 %912  ;;  %v841_v39 = vpop.permute.xlu0 %840 }
 0x250   : > { %v853_v40 = vsel %vm842_vm15, %v841_v39, 0  ;;  %v925_v41 = vand.u32 %v2487_v37, %v913_v38 }
 0x251   : > { %861 = vmatpush.bf16.xpose.msra.mxu1 %v853_v40  ;;  %2047 = vmatpush.bf16.xpose.msra.mxu3 %v853_v40 }
 0x252   : > { %933 = vmatpush.bf16.msra.mxu2 %v925_v41 }
 0x259   : > { %862 = vmatpush.bf16.xpose.msra.mxu1 %v850_v42  ;;  %2048 = vmatpush.bf16.xpose.msra.mxu3 %v850_v42 }
 0x260   : > { %1954 = vmatmul.msk.bf16.vlgmr.msra.gmra.mxu1 %vm842_vm15, %v2479_v30  ;;  %1955 = vmatmul.msk.bf16.vlgmr.msra.gmra.mxu3 %vm842_vm15, %v833_v44 }
 0x261   : > { %1103 = vmatpush.bf16.msrb.mxu1 %v1094_v4 }
 0x2dd   : > { %v864_v45 = vpop.f32.mrf.mxu1 }
 0x2de   : > { %v874_v46 = vsel %vm873_vm0, %v864_v45, -inf }
 0x2df   : > { %875 = vmax.xlane.f32.xlu2 %v874_v46 }
 0x2e3   : > { %v869_v47 = vpop.f32.mrf.mxu3 }
 0x2e4   : > { %v881_v51 = vsel %vm880_vm1, %v869_v47, -inf }
 0x2e5   : > { %v866_v48 = vpop.f32.mrf.mxu1 }
 0x2e6   : > { %v877_v49 = vsel %vm873_vm0, %v866_v48, -inf }
 0x2e7   : > { %878 = vmax.xlane.f32.xlu2 %v877_v49 }
 0x2eb   : > { %v871_v50 = vpop.f32.mrf.mxu3 }
 0x2ef   : > { %882 = vmax.xlane.f32.xlu2 %v881_v51 }
 0x352   : > { %v876_v52 = vpop.xlane.xlu2 %875 }
 0x353   : > { %v884_v53 = vsub.f32 %v864_v45, %v876_v52 }
 0x355   : > { %v887_v54 = vmul.f32 1.442695, %v884_v53 }
 0x357   : > { %2119 = vpow2.f32 %v887_v54 }
 0x35a   : > { %v879_v55 = vpop.xlane.xlu2 %878 }
 0x35b   : > { %v885_v56 = vsub.f32 %v866_v48, %v879_v55 }
 0x35d   : > { %v2120_v57 = vpop.eup %2119  ;;  %v889_v58 = vmul.f32 1.442695, %v885_v56 }
 0x35e   : > { %v893_v59 = vsel %vm873_vm0, %v2120_v57, 0.0 }
 0x35f   : > { %2121 = vpow2.f32 %v889_v58  ;;  %894 = vadd.xlane.f32.xlu0 %v893_v59 }
 0x362   : > { %v883_v60 = vpop.xlane.xlu2 %882 }
 0x363   : > { %v886_v61 = vsub.f32 %v869_v47, %v883_v60 }
 0x365   : > { %v2122_v62 = vpop.eup %2121  ;;  %v891_v63 = vmul.f32 1.442695, %v886_v61 }
 0x366   : > { %v896_v0 = vsel %vm873_vm0, %v2122_v62, 0.0 }
 0x367   : > { %2123 = vpow2.f32 %v891_v63  ;;  %897 = vadd.xlane.f32.xlu2 %v896_v0 }
 0x36d   : > { %v2124_v1 = vpop.eup %2123 }
 0x36e   : > { %v899_v2 = vsel %vm880_vm1, %v2124_v1, 0.0 }
 0x36f   : > { %900 = vadd.xlane.f32.xlu1 %v899_v2 }
 0x373   : > { %954 = vrot.lane.b32.xlu0 %v2477_v29, %s2229_s4 }
 0x37b   : > { %1259 = vrot.lane.b32.xlu0 %v2482_v33, %s2230_s21 }
 0x37f   : > { %910 = vrot.lane.b32.xlu2 %v2477_v29, %s2227_s25 }
 0x383   : > { %1257 = vrot.lane.b32.xlu0 %v2477_v29, %s2230_s21  ;;  %s2776_s21 = scalar_lea.vmem %s2740_s9, %s2347_s20 }
 0x387   : > { %956 = vrot.lane.b32.xlu2 %v2482_v33, %s2229_s4 }
 0x388   : > { %1120 = vrot.lane.b32.xlu1 %v2482_v33, %s2231_s1 }
 0x38b   : > { %1116 = vrot.lane.b32.xlu0 %v833_v44, %s2232_s18 }
 0x38f   : > { %950 = vrot.lane.b32.xlu2 %v2479_v30, %s2233_s26 }
 0x390   : > { %1255 = vrot.lane.b32.xlu1 %v833_v44, %s2234_s27 }
 0x397   : > { %952 = vrot.lane.b32.xlu2 %v833_v44, %s2233_s26 }
 0x39f   : > { %1118 = vrot.lane.b32.xlu2 %v2477_v29, %s2231_s1 }
 0x3a7   : > { %1114 = vrot.lane.b32.xlu2 %v2479_v30, %s2232_s18 }
 0x3af   : > { %1253 = vrot.lane.b32.xlu2 %v2479_v30, %s2234_s27 }
 0x3d2   : > { %v895_v5 = vpop.xlane.xlu0 %894 }
 0x3d3   : > { %2125 = vrcp.f32 %v895_v5 }
 0x3d9   : > { %v2126_v7 = vpop.eup %2125 }
 0x3da   : > { %v898_v6 = vpop.xlane.xlu2 %897  ;;  %v905_v12 = vmul.f32 %v2126_v7, %v2120_v57 }
 0x3db   : > { %2127 = vrcp.f32 %v898_v6 }
 0x3e1   : > { %v2128_v8 = vpop.eup %2127 }
 0x3e2   : > { %v911_v11 = vpop.permute.xlu2 %910  ;;  %v906_v14 = vmul.f32 %v2128_v8, %v2122_v62  ;;  %v901_v15 = vpop.xlane.xlu1 %900 }
 0x3e3   : > { %934 = vmatpush.bf16.msra.mxu2 %v911_v11  ;;  %2129 = vrcp.f32 %v901_v15 }
 0x3e4   : > { %v908_v16 = vpack.c.bf16 %v906_v14, %v905_v12 }
 0x3e5   : > { %v955_v17 = vpop.permute.xlu0 %954 }
 0x3e6   : > { %1956 = vmatmul.msk.bf16.vlgmr.msra.gmra.mxu2 %vm873_vm0, %v908_v16  ;;  %v965_v26 = vsel %vm842_vm15, %v955_v17, 0 }
 0x3e9   : > { %v2130_v20 = vpop.eup %2129 }
 0x3ea   : > { %v957_v18 = vpop.permute.xlu2 %956  ;;  %v907_v24 = vmul.f32 %v2130_v20, %v2124_v1 }
 0x3eb   : > { %v968_v19 = vsel %vm842_vm15, %v957_v18, 0 }
 0x3ec   : > { %976 = vmatpush.bf16.xpose.msrb.mxu3 %v968_v19  ;;  %v909_v27 = vpack.c.bf16 %v907_v24, %v907_v24 }
 0x3ed   : > { %v1260_v22 = vpop.permute.xlu0 %1259 }
 0x3ee   : > { %v1271_v23 = vsel %vm842_vm15, %v1260_v22, 0 }
 0x3ef   : > { %1279 = vmatpush.bf16.xpose.msra.mxu1 %v1271_v23 }
 0x3f2   : > { %v951_v25 = vpop.permute.xlu2 %950 }
 0x3f4   : > { %977 = vmatpush.bf16.xpose.msrb.mxu3 %v965_v26 }
 0x3f5   : > { %v1258_v28 = vpop.permute.xlu0 %1257 }
 0x3f6   : > { %v1268_v30 = vsel %vm842_vm15, %v1258_v28, 0  ;;  %1957 = vmatmul.msk.bf16.gmra.mxu2 %vm873_vm0, %v909_v27 }
 0x3f7   : > { %1280 = vmatpush.bf16.xpose.msra.mxu1 %v1268_v30 }
 0x3fa   : > { %v1121_v31 = vpop.permute.xlu1 %1120  ;;  %v953_v32 = vpop.permute.xlu2 %952 }
 0x3fb   : > { %v1132_v34 = vsel %vm842_vm15, %v1121_v31, 0  ;;  %1958 = vmatmul.msk.bf16.vlgmr.msrb.gmra.mxu3 %vm842_vm15, %v951_v25 }
 0x3fc   : > { %1140 = vmatpush.bf16.xpose.msra.mxu3 %v1132_v34 }
 0x3fd   : > { %v1117_v39 = vpop.permute.xlu0 %1116 }
 0x402   : > { %v1119_v35 = vpop.permute.xlu2 %1118  ;;  %v1256_v56 = vpop.permute.xlu1 %1255 }
 0x403   : > { %v1129_v36 = vsel %vm842_vm15, %v1119_v35, 0 }
 0x404   : > { %1141 = vmatpush.bf16.xpose.msra.mxu3 %v1129_v36 }
 0x40a   : > { %v1115_v38 = vpop.permute.xlu2 %1114 }
 0x40b   : > { %1959 = vmatmul.msk.bf16.gmra.mxu3 %vm842_vm15, %v953_v32 }
 0x412   : > { %v1254_v52 = vpop.permute.xlu2 %1253 }
 0x41b   : > { %1967 = vmatmul.msk.bf16.vlgmr.msra.gmra.mxu3 %vm842_vm15, %v1115_v38 }
 0x42b   : > { %1968 = vmatmul.msk.bf16.gmra.mxu3 %vm842_vm15, %v1117_v39 }
 0x469   : > { %v936_v40 = vpop.f32.mrf.mxu2 }
 0x471   : > { %v938_v41 = vpop.f32.mrf.mxu2 }
 0x472   : > { %v945_v42 = vpack.c.bf16 %v938_v41, %v936_v40 }
 0x474   : > { %1965 = vmatmul.msk.bf16.vlgmr.msrb.gmra.mxu1 %vm842_vm15, %v945_v42 }
 0x479   : > { %v941_v43 = vpop.f32.mrf.mxu2 }
 0x47a   : > { %v946_v47 = vpack.c.bf16 %v941_v43, %v941_v43 }
 0x47e   : > { %v979_v44 = vpop.f32.mrf.mxu3 }
 0x47f   : > { %v988_v45 = vsel %vm873_vm0, %v979_v44, -inf }
 0x480   : > { %989 = vmax.xlane.f32.xlu2 %v988_v45 }
 0x481   : > { %v943_v46 = vpop.f32.mrf.mxu2 }
 0x484   : > { %1966 = vmatmul.msk.bf16.gmra.mxu1 %vm842_vm15, %v946_v47 }
 0x486   : > { %v981_v48 = vpop.f32.mrf.mxu3 }
 0x487   : > { %v991_v49 = vsel %vm873_vm0, %v981_v48, -inf }
 0x488   : > { %992 = vmax.xlane.f32.xlu0 %v991_v49 }
 0x48e   : > { %v984_v50 = vpop.f32.mrf.mxu3 }
 0x48f   : > { %v994_v51 = vsel %vm880_vm1, %v984_v50, -inf }
 0x490   : > { %995 = vmax.xlane.f32.xlu1 %v994_v51 }
 0x494   : > { %1974 = vmatmul.msk.bf16.vlgmr.msra.gmra.mxu1 %vm842_vm15, %v1254_v52 }
 0x496   : > { %v986_v53 = vpop.f32.mrf.mxu3 }
 0x49e   : > { %v1143_v54 = vpop.f32.mrf.mxu3 }
 0x49f   : > { %v1152_v55 = vsel %vm873_vm0, %v1143_v54, -inf }
 0x4a0   : > { %1153 = vmax.xlane.f32.xlu2 %v1152_v55 }
 0x4a4   : > { %1975 = vmatmul.msk.bf16.gmra.mxu1 %vm842_vm15, %v1256_v56 }
 0x4a6   : > { %v1145_v57 = vpop.f32.mrf.mxu3 }
 0x4a7   : > { %v1155_v58 = vsel %vm873_vm0, %v1145_v57, -inf }
 0x4a8   : > { %1156 = vmax.xlane.f32.xlu0 %v1155_v58 }
 0x4ae   : > { %v2535_v59 = vpop.f32.mrf.mxu3 }
 0x4af   : > { %v1158_v25 = vsel %vm880_vm1, %v2535_v59, -inf }
 0x4b6   : > { %v1150_v60 = vpop.f32.mrf.mxu3 }
 0x4f1   : > { %v2537_v61 = vpop.f32.mrf.mxu1 }
 0x4f3   : > { %v990_v62 = vpop.xlane.xlu2 %989 }
 0x4f4   : > { %v997_v63 = vsub.f32 %v979_v44, %v990_v62 }
 0x4f6   : > { %v1000_v0 = vmul.f32 1.442695, %v997_v63 }
 0x4f8   : > { %2131 = vpow2.f32 %v1000_v0 }
 0x4f9   : > { %v2539_v1 = vpop.f32.mrf.mxu1 }
 0x4fb   : > { %v993_v2 = vpop.xlane.xlu0 %992 }
 0x4fc   : > { %v998_v3 = vsub.f32 %v981_v48, %v993_v2 }
 0x4fe   : > { %v2541_v4 = vpop.eup %2131  ;;  %v1002_v5 = vmul.f32 1.442695, %v998_v3 }
 0x4ff   : > { %v1006_v6 = vsel %vm873_vm0, %v2541_v4, 0.0 }
 0x500   : > { %2133 = vpow2.f32 %v1002_v5  ;;  %1007 = vadd.xlane.f32.xlu0 %v1006_v6 }
 0x501   : > { %v2545_v7 = vpop.f32.mrf.mxu1 }
 0x503   : > { %v996_v11 = vpop.xlane.xlu1 %995 }
 0x504   : > { %v999_v14 = vsub.f32 %v984_v50, %v996_v11 }
 0x506   : > { %v2547_v8 = vpop.eup %2133  ;;  %v1004_v16 = vmul.f32 1.442695, %v999_v14 }
 0x507   : > { %v1009_v12 = vsel %vm873_vm0, %v2547_v8, 0.0 }
 0x508   : > { %1010 = vadd.xlane.f32.xlu1 %v1009_v12  ;;  %2135 = vpow2.f32 %v1004_v16 }
 0x509   : > { %v1112_v15 = vpop.f32.mrf.mxu1 }
 0x50e   : > { %v2553_v19 = vpop.eup %2135 }
 0x50f   : > { %v1012_v22 = vsel %vm880_vm1, %v2553_v19, 0.0 }
 0x511   : > { %v1282_v17 = vpop.f32.mrf.mxu1 }
 0x512   : > { %v1291_v18 = vsel %vm873_vm0, %v1282_v17, -inf }
 0x513   : > { %1292 = vmax.xlane.f32.xlu1 %v1291_v18  ;;  %v1154_v26 = vpop.xlane.xlu2 %1153 }
 0x514   : > { %1023 = vrot.lane.b32.xlu0 %v2477_v29, %s2235_s28  ;;  %v1161_v28 = vsub.f32 %v1143_v54, %v1154_v26 }
 0x516   : > { %v1164_v30 = vmul.f32 1.442695, %v1161_v28  ;;  %v1962_v28 = vld [vmem:[%s2373_s24 + $0x4] sm:$0xf] }
 0x518   : > { %2137 = vpow2.f32 %v1164_v30  ;;  %v1067_v30 = vsel %vm1065_vm4, %v1962_v28, 0 }
 0x519   : > { %v1284_v20 = vpop.f32.mrf.mxu1  ;;  %1076 = vmatpush.bf16.msrb.mxu2 %v1067_v30 }
 0x51a   : > { %v1294_v23 = vsel %vm873_vm0, %v1284_v20, -inf }
 0x51b   : > { %1013 = vadd.xlane.f32.xlu1 %v1012_v22  ;;  %1295 = vmax.xlane.f32.xlu2 %v1294_v23  ;;  %v1157_v34 = vpop.xlane.xlu0 %1156 }
 0x51c   : > { %v1162_v35 = vsub.f32 %v1145_v57, %v1157_v34 }
 0x51e   : > { %v2563_v31 = vpop.eup %2137  ;;  %v1166_v36 = vmul.f32 1.442695, %v1162_v35 }
 0x51f   : > { %v1170_v32 = vsel %vm873_vm0, %v2563_v31, 0.0 }
 0x520   : > { %2139 = vpow2.f32 %v1166_v36 }
 0x521   : > { %v2558_v24 = vpop.f32.mrf.mxu1 }
 0x522   : > { %v1297_v40 = vsel %vm880_vm1, %v2558_v24, -inf }
 0x523   : > { %1159 = vmax.xlane.f32.xlu1 %v1158_v25 }
 0x526   : > { %v2140_v38 = vpop.eup %2139 }
 0x527   : > { %v1173_v39 = vsel %vm873_vm0, %v2140_v38, 0.0 }
 0x529   : > { %v1289_v27 = vpop.f32.mrf.mxu1 }
 0x533   : > { %1025 = vrot.lane.b32.xlu2 %v2482_v33, %s2235_s28 }
 0x53c   : > { %1189 = vrot.lane.b32.xlu1 %v2482_v33, %s2236_s15 }
 0x53e   : > { %1171 = vadd.xlane.f32.xlu0 %v1170_v32 }
 0x552   : > { %1328 = vrot.lane.b32.xlu0 %v2482_v33, %s2237_s17 }
 0x55c   : > { %1174 = vadd.xlane.f32.xlu2 %v1173_v39 }
 0x566   : > { %1298 = vmax.xlane.f32.xlu1 %v1297_v40 }
 0x573   : > { %v1008_v46 = vpop.xlane.xlu0 %1007 }
 0x574   : > { %1187 = vrot.lane.b32.xlu2 %v2477_v29, %s2236_s15 }
 0x57b   : > { %v1011_v41 = vpop.xlane.xlu1 %1010 }
 0x586   : > { %v1293_v42 = vpop.xlane.xlu1 %1292  ;;  %v1024_v58 = vpop.permute.xlu0 %1023 }
 0x587   : > { %v1300_v43 = vsub.f32 %v1282_v17, %v1293_v42 }
 0x589   : > { %v1303_v44 = vmul.f32 1.442695, %v1300_v43 }
 0x58b   : > { %2141 = vpow2.f32 %v1303_v44 }
 0x58c   : > { %2143 = vrcp.f32 %v1011_v41 }
 0x58d   : > { %2145 = vrcp.f32 %v1008_v46  ;;  %v1971_v46 = vld [vmem:[%s2373_s24 + $0x8] sm:$0xf] }
 0x58e   : > { %v1296_v45 = vpop.xlane.xlu2 %1295  ;;  %v1014_v60 = vpop.xlane.xlu1 %1013 }
 0x58f   : > { %v1301_v47 = vsub.f32 %v1284_v20, %v1296_v45 }
 0x591   : > { %v2574_v48 = vpop.eup %2141  ;;  %v1305_v33 = vmul.f32 1.442695, %v1301_v47  ;;  %v1230_v47 = vsel %vm1065_vm4, %v1971_v46, 0 }
 0x592   : > { %v1309_v49 = vsel %vm873_vm0, %v2574_v48, 0.0  ;;  %v2144_v51 = vpop.eup %2143  ;;  %1239 = vmatpush.bf16.msra.mxu2 %v1230_v47 }
 0x593   : > { %2147 = vpow2.f32 %v1305_v33  ;;  %1310 = vadd.xlane.f32.xlu1 %v1309_v49  ;;  %v2146_v53 = vpop.eup %2145  ;;  %v1019_v55 = vmul.f32 %v2144_v51, %v2547_v8 }
 0x594   : > { %v1018_v57 = vmul.f32 %v2146_v53, %v2541_v4  ;;  %2149 = vrcp.f32 %v1014_v60 }
 0x596   : > { %v1026_v50 = vpop.permute.xlu2 %1025  ;;  %v1021_v62 = vpack.c.bf16 %v1019_v55, %v1018_v57  ;;  %v1160_v63 = vpop.xlane.xlu1 %1159 }
 0x597   : > { %v1035_v52 = vand.u32 %v1026_v50, %v2487_v37  ;;  %v1163_v12 = vsub.f32 %v2535_v59, %v1160_v63 }
 0x599   : > { %v2148_v54 = vpop.eup %2147  ;;  %1043 = vmatpush.bf16.msrb.mxu0 %v1035_v52  ;;  %v1168_v15 = vmul.f32 1.442695, %v1163_v12 }
 0x59a   : > { %v1312_v56 = vsel %vm873_vm0, %v2148_v54, 0.0  ;;  %v2150_v0 = vpop.eup %2149 }
 0x59b   : > { %1313 = vadd.xlane.f32.xlu1 %v1312_v56  ;;  %v1020_v2 = vmul.f32 %v2150_v0, %v2553_v19 }
 0x59d   : > { %1044 = vmatpush.bf16.msrb.mxu0 %v1024_v58  ;;  %v1022_v5 = vpack.c.bf16 %v1020_v2, %v1020_v2  ;;  %v1978_v58 = vld [vmem:[%s2373_s24 + $0xc] sm:$0xf] }
 0x59e   : > { %v1369_v60 = vsel %vm1065_vm4, %v1978_v58, 0 }
 0x5a0   : > { %1960 = vmatmul.msk.bf16.vlgmr.msrb.gmra.mxu0 %vm873_vm0, %v1021_v62 }
 0x5ae   : > { %v1190_v3 = vpop.permute.xlu1 %1189 }
 0x5af   : > { %v1199_v6 = vand.u32 %v1190_v3, %v2487_v37 }
 0x5b0   : > { %1961 = vmatmul.msk.bf16.gmra.mxu0 %vm873_vm0, %v1022_v5 }
 0x5b1   : > { %1207 = vmatpush.bf16.msra.mxu0 %v1199_v6  ;;  %v1172_v4 = vpop.xlane.xlu0 %1171 }
 0x5b2   : > { %2151 = vrcp.f32 %v1172_v4 }
 0x5b4   : > { %1326 = vrot.lane.b32.xlu1 %v2477_v29, %s2237_s17 }
 0x5b8   : > { %v2152_v16 = vpop.eup %2151 }
 0x5b9   : > { %v1182_v18 = vmul.f32 %v2152_v16, %v2563_v31 }
 0x5c4   : > { %v1329_v8 = vpop.permute.xlu0 %1328 }
 0x5c5   : > { %v1338_v11 = vand.u32 %v1329_v8, %v2487_v37 }
 0x5c7   : > { %1346 = vmatpush.bf16.msrb.mxu3 %v1338_v11 }
 0x5cf   : > { %v1175_v14 = vpop.xlane.xlu2 %1174 }
 0x5d0   : > { %2153 = vrcp.f32 %v1175_v14 }
 0x5d1   : > { %2155 = vpow2.f32 %v1168_v15 }
 0x5d6   : > { %v2154_v17 = vpop.eup %2153 }
 0x5d7   : > { %v1183_v19 = vmul.f32 %v2154_v17, %v2140_v38  ;;  %v1188_v20 = vpop.permute.xlu2 %1187  ;;  %v2156_v23 = vpop.eup %2155 }
 0x5d8   : > { %1208 = vmatpush.bf16.msra.mxu0 %v1188_v20  ;;  %v1176_v25 = vsel %vm880_vm1, %v2156_v23, 0.0 }
 0x5d9   : > { %v1185_v29 = vpack.c.bf16 %v1183_v19, %v1182_v18  ;;  %v1299_v22 = vpop.xlane.xlu1 %1298 }
 0x5da   : > { %v1302_v37 = vsub.f32 %v2558_v24, %v1299_v22 }
 0x5db   : > { %1969 = vmatmul.msk.bf16.vlgmr.msra.gmra.mxu0 %vm873_vm0, %v1185_v29  ;;  %v2106_v29 = vld [vmem:[%s2774_s29] ss:$0 sm:$0xff] }
 0x5dc   : > { %v1307_v59 = vmul.f32 1.442695, %v1302_v37  ;;  %1378 = vmatpush.bf16.msrb.mxu0 %v1369_v60 }
 0x5de   : > { %2157 = vpow2.f32 %v1307_v59  ;;  %1177 = vadd.xlane.f32.xlu1 %v1176_v25 }
 0x5e4   : > { %v2158_v26 = vpop.eup %2157 }
 0x5e5   : > { %v1315_v27 = vsel %vm880_vm1, %v2158_v26, 0.0 }
 0x5e6   : > { %1316 = vadd.xlane.f32.xlu0 %v1315_v27 }
 0x606   : > { %v1311_v31 = vpop.xlane.xlu1 %1310 }
 0x60e   : > { %v1314_v32 = vpop.xlane.xlu1 %1313 }
 0x60f   : > { %2159 = vrcp.f32 %v1314_v32 }
 0x610   : > { %2161 = vrcp.f32 %v1311_v31 }
 0x615   : > { %v2160_v34 = vpop.eup %2159 }
 0x616   : > { %v2162_v35 = vpop.eup %2161  ;;  %v1322_v36 = vmul.f32 %v2160_v34, %v2148_v54 }
 0x617   : > { %v1321_v39 = vmul.f32 %v2162_v35, %v2574_v48 }
 0x619   : > { %v1324_v42 = vpack.c.bf16 %v1322_v36, %v1321_v39 }
 0x61d   : > { %v1046_v24 = vpop.f32.mrf.mxu0 }
 0x625   : > { %v1048_v38 = vpop.f32.mrf.mxu0 }
 0x626   : > { %v1055_v40 = vpack.c.bf16 %v1048_v38, %v1046_v24  ;;  %v1327_v41 = vpop.permute.xlu1 %1326 }
 0x627   : > { %1347 = vmatpush.bf16.msrb.mxu3 %v1327_v41 }
 0x628   : > { %1963 = vmatmul.msk.bf16.vlgmr.msrb.gmra.mxu2 %vm842_vm15, %v1055_v40 }
 0x62a   : > { %1976 = vmatmul.msk.bf16.vlgmr.msrb.gmra.mxu3 %vm873_vm0, %v1324_v42 }
 0x62d   : > { %v1051_v43 = vpop.f32.mrf.mxu0 }
 0x62e   : > { %v1056_v45 = vpack.c.bf16 %v1051_v43, %v1051_v43 }
 0x635   : > { %v1053_v44 = vpop.f32.mrf.mxu0 }
 0x638   : > { %1964 = vmatmul.msk.bf16.gmra.mxu2 %vm842_vm15, %v1056_v45 }
 0x651   : > { %v1178_v33 = vpop.xlane.xlu1 %1177 }
 0x652   : > { %2163 = vrcp.f32 %v1178_v33 }
 0x658   : > { %v2164_v48 = vpop.eup %2163  ;;  %v1210_v49 = vpop.f32.mrf.mxu0 }
 0x659   : > { %v1317_v50 = vpop.xlane.xlu0 %1316  ;;  %v1184_v51 = vmul.f32 %v2164_v48, %v2156_v23 }
 0x65a   : > { %2165 = vrcp.f32 %v1317_v50 }
 0x65b   : > { %v1186_v52 = vpack.c.bf16 %v1184_v51, %v1184_v51 }
 0x65d   : > { %1970 = vmatmul.msk.bf16.gmra.mxu0 %vm873_vm0, %v1186_v52  ;;  %v2038_v52 = vld [vmem:[%s2390_s30 + $0x8] sm:$0xff] }
 0x65e   : > { %1516 = vmatpush.bf16.msrb.mxu2 %v2038_v52 }
 0x660   : > { %v2166_v53 = vpop.eup %2165  ;;  %v1212_v54 = vpop.f32.mrf.mxu0 }
 0x661   : > { %v1219_v55 = vpack.c.bf16 %v1212_v54, %v1210_v49  ;;  %v1323_v56 = vmul.f32 %v2166_v53, %v2158_v26 }
 0x663   : > { %1972 = vmatmul.msk.bf16.vlgmr.msra.gmra.mxu2 %vm842_vm15, %v1219_v55  ;;  %v1325_v57 = vpack.c.bf16 %v1323_v56, %v1323_v56  ;;  %v2037_v55 = vld [vmem:[%s2390_s30] sm:$0xff] }
 0x664   : > { %1517 = vmatpush.bf16.msrb.mxu2 %v2037_v55 }
 0x665   : > { %1977 = vmatmul.msk.bf16.gmra.mxu3 %vm873_vm0, %v1325_v57 }
 0x6ab   : > { %v1078_v62 = vpop.f32.mrf.mxu2 }
 0x6ac   : > { %v1106_v17 = vadd.f32 %v2537_v61, %v1078_v62 }
 0x6ad   : > { %v1349_v63 = vpop.f32.mrf.mxu3 }
 0x6b3   : > { %v1080_v0 = vpop.f32.mrf.mxu2 }
 0x6b4   : > { %v1108_v37 = vadd.f32 %v2539_v1, %v1080_v0 }
 0x6b5   : > { %v1351_v2 = vpop.f32.mrf.mxu3 }
 0x6b6   : > { %v1358_v3 = vpack.c.bf16 %v1351_v2, %v1349_v63 }
 0x6b8   : > { %1979 = vmatmul.msk.bf16.vlgmr.msrb.gmra.mxu0 %vm842_vm15, %v1358_v3 }
 0x6bb   : > { %v1083_v5 = vpop.f32.mrf.mxu2 }
 0x6bc   : > { %v1111_v1 = vadd.f32 %v2545_v7, %v1083_v5 }
 0x6c3   : > { %v1085_v6 = vpop.f32.mrf.mxu2 }
 0x6da   : > { %v1215_v4 = vpop.f32.mrf.mxu0 }
 0x6db   : > { %v1220_v8 = vpack.c.bf16 %v1215_v4, %v1215_v4 }
 0x6dd   : > { %1973 = vmatmul.msk.bf16.gmra.mxu2 %vm842_vm15, %v1220_v8 }
 0x6e2   : > { %v1217_v11 = vpop.f32.mrf.mxu0 }
 0x6e6   : > { %v1241_v16 = vpop.f32.mrf.mxu2 }
 0x6e7   : > { %v1250_v18 = vadd.f32 %v1241_v16, %v1106_v17 }
 0x6e8   : > { %v1354_v12 = vpop.f32.mrf.mxu3 }
 0x6e9   : > { %v1359_v14 = vpack.c.bf16 %v1354_v12, %v1354_v12 }
 0x6eb   : > { %1980 = vmatmul.msk.bf16.gmra.mxu0 %vm842_vm15, %v1359_v14 }
 0x6ee   : > { %v1243_v23 = vpop.f32.mrf.mxu2 }
 0x6ef   : > { %v1251_v25 = vadd.f32 %v1243_v23, %v1108_v37 }
 0x6f0   : > { %v1356_v15 = vpop.f32.mrf.mxu3 }
 0x6f1   : > { %v2107_v15 = vld [vmem:[%s2775_s6] ss:$0 sm:$0xff] }
 0x735   : > { %v1380_v19 = vpop.f32.mrf.mxu0 }
 0x736   : > { %v1389_v20 = vadd.f32 %v1380_v19, %v1250_v18  ;;  %v2108_v19 = vld [vmem:[%s2776_s21] ss:$0 sm:$0xff] }
 0x738   : > { %v1392_v22 = vadd.f32 %v1389_v20, %v2425_v9 }
 0x73a   : > { %v2619_v59 = vadd.f32 %v2106_v29, %v1392_v22 }
 0x73c   : > { %v1404_v26 = vsel %vm696_vm2, %v2619_v59, 0.0 }
 0x73d   : > { %1405 = vadd.xlane.f32.xlu2 %v1404_v26  ;;  %v1382_v61 = vpop.f32.mrf.mxu0 }
 0x73e   : > { %v1390_v27 = vadd.f32 %v1382_v61, %v1251_v25 }
 0x740   : > { %v1393_v28 = vadd.f32 %v1390_v27, %v2435_v13 }
 0x742   : > { %v2624_v30 = vadd.f32 %v2106_v29, %v1393_v28 }
 0x744   : > { %v1407_v31 = vsel %vm696_vm2, %v2624_v30, 0.0 }
 0x745   : > { %1408 = vadd.xlane.f32.xlu1 %v1407_v31 }
 0x760   : > { %v1246_v9 = vpop.f32.mrf.mxu2 }
 0x761   : > { %v1252_v32 = vadd.f32 %v1246_v9, %v1111_v1 }
 0x768   : > { %v1248_v24 = vpop.f32.mrf.mxu2  ;;  %v1385_v34 = vpop.f32.mrf.mxu0 }
 0x769   : > { %v1391_v35 = vadd.f32 %v1385_v34, %v1252_v32 }
 0x76b   : > { %v1394_v36 = vadd.f32 %v1391_v35, %v2428_v10 }
 0x76d   : > { %v2630_v38 = vadd.f32 %v2106_v29, %v1394_v36 }
 0x76f   : > { %v1410_v13 = vsel %vm703_vm3, %v2630_v38, 0.0 }
 0x770   : > { %1411 = vadd.xlane.f32.xlu0 %v1410_v13  ;;  %v1387_v39 = vpop.f32.mrf.mxu0 }
 0x7b0   : > { %v1406_v40 = vpop.xlane.xlu2 %1405 }
 0x7b1   : > { %v1413_v41 = vmul.f32 %v1406_v40, %v2439_v21 }
 0x7b3   : > { %v1416_v42 = vsub.f32 %v2619_v59, %v1413_v41 }
 0x7b5   : > { %v1419_v7 = vmul.f32 %v1416_v42, %v1416_v42 }
 0x7b7   : > { %v1422_v43 = vsel %vm696_vm2, %v1419_v7, 0.0  ;;  %v2046_v7 = vld [vmem:[%s2404_s0 + $0x38] sm:$0xff] }
 0x7b8   : > { %1423 = vadd.xlane.f32.xlu1 %v1422_v43  ;;  %v1409_v44 = vpop.xlane.xlu1 %1408  ;;  %1718 = vmatpush.bf16.msrb.mxu1 %v2046_v7 }
 0x7b9   : > { %v1414_v10 = vmul.f32 %v1409_v44, %v2439_v21 }
 0x7bb   : > { %v1417_v45 = vsub.f32 %v2624_v30, %v1414_v10 }
 0x7bd   : > { %v1420_v46 = vmul.f32 %v1417_v45, %v1417_v45 }
 0x7bf   : > { %v1425_v47 = vsel %vm696_vm2, %v1420_v46, 0.0 }
 0x7c0   : > { %1426 = vadd.xlane.f32.xlu2 %v1425_v47 }
 0x7e3   : > { %v1412_v33 = vpop.xlane.xlu0 %1411 }
 0x7e4   : > { %v1415_v48 = vmul.f32 %v1412_v33, %v2439_v21 }
 0x7e6   : > { %v1418_v49 = vsub.f32 %v2630_v38, %v1415_v48  ;;  %v2044_v48 = vld [vmem:[%s2404_s0 + $0x28] sm:$0xff] }
 0x7e8   : > { %v1421_v50 = vmul.f32 %v1418_v49, %v1418_v49 }
 0x7ea   : > { %v1428_v51 = vsel %vm703_vm3, %v1421_v50, 0.0 }
 0x7eb   : > { %1429 = vadd.xlane.f32.xlu0 %v1428_v51  ;;  %v2043_v51 = vld [vmem:[%s2404_s0 + $0x20] sm:$0xff] }
 0x82b   : > { %v1424_v53 = vpop.xlane.xlu1 %1423 }
 0x82c   : > { %v1431_v54 = vmul.f32 %v1424_v53, %v2439_v21 }
 0x82e   : > { %v1434_v56 = vadd.f32 1e-05, %v1431_v54 }
 0x830   : > { %2167 = vrsqrt.f32 %v1434_v56  ;;  %vm1443_vm6 = vweird.f32 %v1434_v56 }
 0x833   : > { %v1427_v57 = vpop.xlane.xlu2 %1426 }
 0x834   : > { %v1432_v58 = vmul.f32 %v1427_v57, %v2439_v21 }
 0x836   : > { %v2168_v60 = vpop.eup %2167  ;;  %v1435_v62 = vadd.f32 1e-05, %v1432_v58 }
 0x837   : > { %v1438_v63 = vmul.f32 %v2168_v60, %v1434_v56  ;;  %vm1444_vm5 = vweird.f32 %v2168_v60  ;;  %v2042_v56 = vld [vmem:[%s2404_s0 + $0x18] sm:$0xff] }
 0x838   : > { %2169 = vrsqrt.f32 %v1435_v62  ;;  %vm1445_vm7 = vmor %vm1443_vm6, %vm1444_vm5  ;;  %vm1453_vm9 = vweird.f32 %v1435_v62 }
 0x839   : > { %v1439_v0 = vmul.f32 %v2168_v60, %v1438_v63  ;;  %v2041_v63 = vld [vmem:[%s2404_s0 + $0x10] sm:$0xff] }
 0x83b   : > { %v1440_v2 = vmul.f32 0.5, %v1439_v0 }
 0x83d   : > { %v1441_v3 = vsub.f32 1.5, %v1440_v2 }
 0x83e   : > { %v2170_v5 = vpop.eup %2169 }
 0x83f   : > { %v1442_v6 = vmul.f32 %v2168_v60, %v1441_v3  ;;  %v1448_v4 = vmul.f32 %v2170_v5, %v1435_v62  ;;  %vm1454_vm8 = vweird.f32 %v2170_v5 }
 0x840   : > { %vm1455_vm10 = vmor %vm1453_vm9, %vm1454_vm8 }
 0x841   : > { %v1449_v8 = vmul.f32 %v2170_v5, %v1448_v4  ;;  %v1446_v11 = vsel %vm1445_vm7, %v2168_v60, %v1442_v6 }
 0x842   : > { %v1467_v16 = vmul.f32 %v1446_v11, %v1416_v42  ;;  %v2040_v11 = vld [vmem:[%s2404_s0 + $0x8] sm:$0xff] }
 0x843   : > { %v1450_v12 = vmul.f32 0.5, %v1449_v8 }
 0x844   : > { %v1473_v20 = vmul.f32 %v2107_v15, %v1467_v16 }
 0x845   : > { %v1451_v14 = vsub.f32 1.5, %v1450_v12 }
 0x846   : > { %v1479_v23 = vadd.f32 %v2108_v19, %v1473_v20  ;;  %v2039_v20 = vld [vmem:[%s2404_s0] sm:$0xff] }
 0x847   : > { %v1452_v17 = vmul.f32 %v2170_v5, %v1451_v14 }
 0x849   : > { %v1456_v18 = vsel %vm1455_vm10, %v2170_v5, %v1452_v17 }
 0x84a   : > { %v1468_v29 = vmul.f32 %v1456_v18, %v1417_v45  ;;  %v2045_v45 = vld [vmem:[%s2404_s0 + $0x30] sm:$0xff] }
 0x84b   : > { %1719 = vmatpush.bf16.msrb.mxu1 %v2045_v45 }
 0x84c   : > { %v1474_v22 = vmul.f32 %v2107_v15, %v1468_v29 }
 0x84e   : > { %v1480_v37 = vadd.f32 %v2108_v19, %v1474_v22 }
 0x84f   : > { %1720 = vmatpush.bf16.msrb.mxu1 %v2044_v48 }
 0x850   : > { %v1482_v25 = vpack.c.bf16 %v1480_v37, %v1479_v23 }
 0x852   : > { %1989 = vmatmul.msk.bf16.vlgmr.msrb.gmra.mxu2 %vm696_vm2, %v1482_v25 }
 0x853   : > { %1721 = vmatpush.bf16.msrb.mxu1 %v2043_v51 }
 0x857   : > { %1722 = vmatpush.bf16.msrb.mxu1 %v2042_v56 }
 0x85b   : > { %1723 = vmatpush.bf16.msrb.mxu1 %v2041_v63 }
 0x85e   : > { %v1430_v26 = vpop.xlane.xlu0 %1429 }
 0x85f   : > { %v1433_v61 = vmul.f32 %v1430_v26, %v2439_v21  ;;  %v2665_v21 = vld [vmem:[%s658_s14] ss:$0 sm:$0xff]  ;;  %1724 = vmatpush.bf16.msrb.mxu1 %v2040_v11 }
 0x861   : > { %v1436_v27 = vadd.f32 1e-05, %v1433_v61 }
 0x863   : > { %2171 = vrsqrt.f32 %v1436_v27  ;;  %vm1463_vm12 = vweird.f32 %v1436_v27  ;;  %1725 = vmatpush.bf16.msrb.mxu1 %v2039_v20 }
 0x869   : > { %v2172_v28 = vpop.eup %2171 }
 0x86a   : > { %v1458_v31 = vmul.f32 %v2172_v28, %v1436_v27  ;;  %vm1464_vm11 = vweird.f32 %v2172_v28 }
 0x86b   : > { %vm1465_vm13 = vmor %vm1463_vm12, %vm1464_vm11 }
 0x86c   : > { %v1459_v9 = vmul.f32 %v2172_v28, %v1458_v31 }
 0x86e   : > { %v1460_v1 = vmul.f32 0.5, %v1459_v9 }
 0x870   : > { %v1461_v32 = vsub.f32 1.5, %v1460_v1 }
 0x872   : > { %v1462_v24 = vmul.f32 %v2172_v28, %v1461_v32 }
 0x874   : > { %v1466_v34 = vsel %vm1465_vm13, %v2172_v28, %v1462_v24 }
 0x875   : > { %v1469_v35 = vmul.f32 %v1466_v34, %v1418_v49 }
 0x877   : > { %v1475_v36 = vmul.f32 %v2107_v15, %v1469_v35 }
 0x879   : > { %v1481_v13 = vadd.f32 %v2108_v19, %v1475_v36 }
 0x87b   : > { %v1483_v39 = vpack.c.bf16 %v1481_v13, %v1481_v13 }
 0x87d   : > { %1990 = vmatmul.msk.bf16.gmra.mxu2 %vm696_vm2, %v1483_v39 }
 0x8d5   : > { %v1519_v40 = vpop.f32.mrf.mxu2 }
 0x8d6   : > { %v2668_v41 = vadd.f32 %v2665_v21, %v1519_v40 }
 0x8d8   : > { %v2671_v42 = vmul.f32 0.70710677, %v2668_v41 }
 0x8da   : > { %v1534_v43 = vand.u32 2147483647, %v2671_v42  ;;  %vm1633_vm8 = vcmp.ge.f32.partialorder %v2671_v42, 0.0 }
 0x8dc   : > { %v1537_v44 = vmul.f32 0.3275911, %v1534_v43  ;;  %v1615_v6 = vsub.f32 0.0, %v1534_v43 }
 0x8dd   : > { %v1521_v10 = vpop.f32.mrf.mxu2 }
 0x8de   : > { %v1540_v46 = vadd.f32 1.0, %v1537_v44  ;;  %v2677_v47 = vadd.f32 %v2665_v21, %v1521_v10  ;;  %v1618_v16 = vmul.f32 %v1615_v6, %v1534_v43 }
 0x8e0   : > { %2173 = vrcp.f32 %v1540_v46  ;;  %v2680_v33 = vmul.f32 0.70710677, %v2677_v47  ;;  %v1554_v57 = vand.u32 2147483648, %v1540_v46  ;;  %v1552_v60 = vand.u32 2147483647, %v1540_v46 }
 0x8e1   : > { %vm1548_vm15 = vweird.f32 %v1540_v46  ;;  %v1621_v37 = vmul.f32 1.442695, %v1618_v16 }
 0x8e2   : > { %v1535_v49 = vand.u32 2147483647, %v2680_v33  ;;  %v1555_v0 = vor.u32 1.1754944e-38, %v1554_v57  ;;  %vm1553_vm1 = vcmp.eq.f32.partialorder %v1552_v60, 8.507059e+37  ;;  %vm1634_vm9 = vcmp.ge.f32.partialorder %v2680_v33, 0.0 }
 0x8e4   : > { %v1538_v50 = vmul.f32 0.3275911, %v1535_v49  ;;  %v1616_v27 = vsub.f32 0.0, %v1535_v49 }
 0x8e6   : > { %v2174_v52 = vpop.eup %2173  ;;  %v1541_v54 = vadd.f32 1.0, %v1538_v50  ;;  %v1619_v32 = vmul.f32 %v1616_v27, %v1535_v49 }
 0x8e7   : > { %v1544_v53 = vmul.f32 %v2174_v52, %v1540_v46  ;;  %vm1549_vm14 = vweird.f32 %v2174_v52 }
 0x8e8   : > { %2175 = vrcp.f32 %v1541_v54  ;;  %vm1550_vm0 = vmor %vm1548_vm15, %vm1549_vm14  ;;  %v1569_v15 = vand.u32 2147483648, %v1541_v54  ;;  %v1567_v18 = vand.u32 2147483647, %v1541_v54  ;;  %vm1563_vm5 = vweird.f32 %v1541_v54 }
 0x8e9   : > { %v1545_v55 = vsub.f32 1.0, %v1544_v53  ;;  %2177 = vpow2.f32 %v1621_v37  ;;  %v1623_v39 = vmul.f32 1.442695, %v1619_v32 }
 0x8ea   : > { %v1570_v23 = vor.u32 1.1754944e-38, %v1569_v15  ;;  %vm1568_vm7 = vcmp.eq.f32.partialorder %v1567_v18, 8.507059e+37 }
 0x8eb   : > { %v1546_v58 = vmul.f32 %v2174_v52, %v1545_v55  ;;  %2179 = vpow2.f32 %v1623_v39 }
 0x8ed   : > { %v1547_v62 = vadd.f32 %v2174_v52, %v1546_v58 }
 0x8ee   : > { %v2176_v2 = vpop.eup %2175 }
 0x8ef   : > { %v1551_v3 = vsel %vm1550_vm0, %v2174_v52, %v1547_v62  ;;  %v1559_v4 = vmul.f32 %v2176_v2, %v1541_v54  ;;  %vm1564_vm4 = vweird.f32 %v2176_v2  ;;  %v2178_v7 = vpop.eup %2177 }
 0x8f0   : > { %v1556_v5 = vsel %vm1553_vm1, %v1555_v0, %v1551_v3  ;;  %vm1565_vm6 = vmor %vm1563_vm5, %vm1564_vm4  ;;  %v1528_v3 = vmul.f32 0.5, %v2668_v41 }
 0x8f1   : > { %v1588_v8 = vmul.f32 1.0614054, %v1556_v5  ;;  %v1560_v12 = vsub.f32 1.0, %v1559_v4 }
 0x8f3   : > { %v1991_v14 = vadd.f32 -1.4531521, %v1588_v8  ;;  %v1561_v17 = vmul.f32 %v2176_v2, %v1560_v12 }
 0x8f5   : > { %v1594_v19 = vmul.f32 %v1991_v14, %v1556_v5  ;;  %v1562_v29 = vadd.f32 %v2176_v2, %v1561_v17 }
 0x8f7   : > { %v1597_v22 = vadd.f32 1.4214138, %v1594_v19  ;;  %v1566_v25 = vsel %vm1565_vm6, %v2176_v2, %v1562_v29 }
 0x8f8   : > { %v1571_v61 = vsel %vm1568_vm7, %v1570_v23, %v1566_v25 }
 0x8f9   : > { %v1600_v26 = vmul.f32 %v1597_v22, %v1556_v5  ;;  %v1589_v28 = vmul.f32 1.0614054, %v1571_v61 }
 0x8fb   : > { %v1994_v31 = vadd.f32 -0.28449672, %v1600_v26  ;;  %v1992_v9 = vadd.f32 -1.4531521, %v1589_v28 }
 0x8fd   : > { %v1606_v1 = vmul.f32 %v1994_v31, %v1556_v5  ;;  %v1595_v24 = vmul.f32 %v1992_v9, %v1571_v61 }
 0x8ff   : > { %v1609_v34 = vadd.f32 0.2548296, %v1606_v1  ;;  %v1598_v35 = vadd.f32 1.4214138, %v1595_v24 }
 0x900   : > { %v1524_v36 = vpop.f32.mrf.mxu2 }
 0x901   : > { %v1612_v13 = vmul.f32 %v1609_v34, %v1556_v5  ;;  %v2690_v40 = vadd.f32 %v2665_v21, %v1524_v36  ;;  %v1601_v43 = vmul.f32 %v1598_v35, %v1571_v61  ;;  %v2180_v21 = vpop.eup %2179  ;;  %v1529_v5 = vmul.f32 0.5, %v2677_v47 }
 0x903   : > { %v1627_v44 = vmul.f32 %v2178_v7, %v1612_v13  ;;  %v2693_v10 = vmul.f32 0.70710677, %v2690_v40  ;;  %v1995_v45 = vadd.f32 -0.28449672, %v1601_v43  ;;  %v1530_v24 = vmul.f32 0.5, %v2690_v40 }
 0x904   : > { %v2110_v13 = vld [vmem:[%s666_s19] ss:$0 sm:$0xff] }
 0x905   : > { %v1536_v46 = vand.u32 2147483647, %v2693_v10  ;;  %v1630_v48 = vsub.f32 1.0, %v1627_v44  ;;  %v1607_v49 = vmul.f32 %v1995_v45, %v1571_v61  ;;  %vm1635_vm14 = vcmp.ge.f32.partialorder %v2693_v10, 0.0 }
 0x907   : > { %v1539_v50 = vmul.f32 0.3275911, %v1536_v46  ;;  %v1610_v51 = vadd.f32 0.2548296, %v1607_v49  ;;  %v1636_v54 = vsub.f32 0.0, %v1630_v48  ;;  %v1617_v18 = vsub.f32 0.0, %v1536_v46 }
 0x908   : > { %v1526_v52 = vpop.f32.mrf.mxu2 }
 0x909   : > { %v1542_v53 = vadd.f32 1.0, %v1539_v50  ;;  %v1613_v55 = vmul.f32 %v1610_v51, %v1571_v61  ;;  %v1639_v57 = vsel %vm1633_vm8, %v1630_v48, %v1636_v54  ;;  %v1620_v20 = vmul.f32 %v1617_v18, %v1536_v46 }
 0x90a   : > { %v1642_v63 = vadd.f32 1.0, %v1639_v57 }
 0x90b   : > { %2181 = vrcp.f32 %v1542_v53  ;;  %v1628_v56 = vmul.f32 %v2180_v21, %v1613_v55  ;;  %v1584_v12 = vand.u32 2147483648, %v1542_v53  ;;  %v1582_v42 = vand.u32 2147483647, %v1542_v53 }
 0x90c   : > { %v1645_v8 = vmul.f32 %v1642_v63, %v1528_v3  ;;  %vm1578_vm11 = vweird.f32 %v1542_v53  ;;  %v1625_v23 = vmul.f32 1.442695, %v1620_v20 }
 0x90d   : > { %v1631_v58 = vsub.f32 1.0, %v1628_v56  ;;  %v1585_v33 = vor.u32 1.1754944e-38, %v1584_v12  ;;  %vm1583_vm13 = vcmp.eq.f32.partialorder %v1582_v42, 8.507059e+37 }
 0x90e   : > { %2183 = vpow2.f32 %v1625_v23 }
 0x90f   : > { %v1637_v60 = vsub.f32 0.0, %v1631_v58 }
 0x911   : > { %v2182_v62 = vpop.eup %2181  ;;  %v1640_v0 = vsel %vm1634_vm9, %v1631_v58, %v1637_v60 }
 0x912   : > { %v1574_v2 = vmul.f32 %v2182_v62, %v1542_v53  ;;  %v1643_v6 = vadd.f32 1.0, %v1640_v0  ;;  %vm1579_vm10 = vweird.f32 %v2182_v62 }
 0x913   : > { %vm1580_vm12 = vmor %vm1578_vm11, %vm1579_vm10 }
 0x914   : > { %v1575_v4 = vsub.f32 1.0, %v1574_v2  ;;  %v1646_v11 = vmul.f32 %v1643_v6, %v1529_v5  ;;  %v2184_v28 = vpop.eup %2183 }
 0x916   : > { %v1576_v14 = vmul.f32 %v2182_v62, %v1575_v4  ;;  %v1648_v15 = vpack.c.bf16 %v1646_v11, %v1645_v8 }
 0x918   : > { %v1577_v16 = vadd.f32 %v2182_v62, %v1576_v14  ;;  %1726 = vmatmul.bf16.vlgmr.msrb.gmra.mxu1 %v1648_v15 }
 0x91a   : > { %v1581_v17 = vsel %vm1580_vm12, %v2182_v62, %v1577_v16 }
 0x91b   : > { %v1586_v41 = vsel %vm1583_vm13, %v1585_v33, %v1581_v17 }
 0x91c   : > { %v1590_v19 = vmul.f32 1.0614054, %v1586_v41 }
 0x91e   : > { %v1993_v47 = vadd.f32 -1.4531521, %v1590_v19 }
 0x920   : > { %v1596_v29 = vmul.f32 %v1993_v47, %v1586_v41 }
 0x922   : > { %v1599_v22 = vadd.f32 1.4214138, %v1596_v29 }
 0x924   : > { %v1602_v37 = vmul.f32 %v1599_v22, %v1586_v41 }
 0x926   : > { %v1996_v25 = vadd.f32 -0.28449672, %v1602_v37 }
 0x928   : > { %v1608_v26 = vmul.f32 %v1996_v25, %v1586_v41 }
 0x92a   : > { %v1611_v61 = vadd.f32 0.2548296, %v1608_v26 }
 0x92c   : > { %v1614_v27 = vmul.f32 %v1611_v61, %v1586_v41 }
 0x92e   : > { %v1629_v31 = vmul.f32 %v2184_v28, %v1614_v27 }
 0x930   : > { %v1632_v9 = vsub.f32 1.0, %v1629_v31 }
 0x932   : > { %v1638_v1 = vsub.f32 0.0, %v1632_v9 }
 0x934   : > { %v1641_v32 = vsel %vm1635_vm14, %v1632_v9, %v1638_v1 }
 0x935   : > { %v1644_v34 = vadd.f32 1.0, %v1641_v32 }
 0x937   : > { %v1647_v35 = vmul.f32 %v1644_v34, %v1530_v24 }
 0x939   : > { %v1649_v36 = vpack.c.bf16 %v1647_v35, %v1647_v35 }
 0x93b   : > { %1731 = vmatmul.bf16.gmra.mxu1 %v1649_v36 }
 0x995   : > { %v1727_v39 = vpop.f32.mrf.mxu1 }
 0x996   : > { %v1728_v7 = vadd.f32 %v2110_v13, %v1727_v39 }
 0x998   : > { %v1736_v43 = vadd.f32 %v1728_v7, %v2619_v59 }
 0x99a   : > { %1739 = vst.msk [vmem:[%s2409_s3] sm:$0xff] %vm696_vm2, %v1736_v43 }
 0x99d   : > { %v1729_v44 = vpop.f32.mrf.mxu1 }
 0x99e   : > { %v1730_v10 = vadd.f32 %v2110_v13, %v1729_v44 }
 0x9a0   : > { %v1737_v40 = vadd.f32 %v1730_v10, %v2624_v30 }
 0x9a2   : > { %1740 = vst.msk [vmem:[%s2409_s3 + $0x8] sm:$0xff] %vm696_vm2, %v1737_v40 }
 0x9b8   : > { %v1732_v45 = vpop.f32.mrf.mxu1 }
 0x9b9   : > { %v1733_v46 = vadd.f32 %v2110_v13, %v1732_v45 }
 0x9bb   : > { %v1738_v48 = vadd.f32 %v1733_v46, %v2630_v38 }
 0x9bd   : > { %1741 = vst.msk [vmem:[%s2409_s3 + $0x10] sm:$0x1] %vm703_vm3, %v1738_v48 }
 0x9c0   : > { %v1734_v49 = vpop.f32.mrf.mxu1 }
 0x9c1 PF: > { %s2777_s20 = sld [smem:[#allocation5_spill]] }
 0x9c2   : > { %s2778_s29 = sld [smem:[#allocation3_spill]] }
 0x9c3   : > { %s2779_s30 = sld [smem:[#allocation4_spill]] }
 0x9c4   : > { %s2780_s15 = sld [smem:[#allocation6_spill]] }
 0x9c5   : > { %s2781_s16 = sld [smem:[#allocation7_spill]] }
 0x9c7   : > { %s24_s17 = sadd.s32 1, %s2777_s20  }
 0x9c8   : > { %p21_p8 = scmp.ge.s32.totalorder %s24_s17, 6  }
 0x9ca   :  { %23 = sbr.rel (!%p21_p8) target bundleno = 7 (0x7), region = 149 }

// kernel: _lambda_.11
= control target key start
LH: loop header
LB: loop body
LE: loop exit
PB: predicated region body
PF: predicated region fallthrough
CT: control target
= control target key end

     0   :  { %8 = vsyncpa [#allocation5], 0  ;;  %s468_s12 = smov 0   ;;  %s505_s0 = inlined_call_operand.vmem [shape: f32[2,16,64], index: 0, kind: input, shape index: {}]   ;;  %s506_s1 = inlined_call_operand.vmem [shape: f32[2,16,64], index: 1, kind: input, shape index: {}]   ;;  %s507_s2 = inlined_call_operand.vmem [shape: f32[2,16,1], index: 2, kind: input, shape index: {}]   ;;  %s508_s3 = inlined_call_operand.hbm [shape: f32[1,1], index: 3, kind: output, shape index: {}]  }
   0x1 LB: > { %s474_s13 = sadd.s32 4294967295, %s443_s12   ;;  %p364_p0 = scmp.ge.s32.totalorder %s443_s12, 1  ;;  %s443_s12 = sphi %s468_s12, %s14_s12  }
   0x2   : > { %p153_p1 = scmp.lt.s32.totalorder %s443_s12, 3 }
   0x4   : > { %p154_p2 = pnand %p364_p0, %p153_p1 }
   0x5   : > { %p182_p3 = scmp.lt.s32.totalorder (!%p154_p2), %s474_s13, 1  ;;  %p371_p4 = scmp.ne.s32.totalorder (!%p154_p2), %s474_s13, 0 }
   0x6   : > { %157 = sbr.rel (%p154_p2) target bundleno = 382 (0x17e), region = 32 }
   0xb   : > { %s183_s14 = scalar_select %p182_p3, %s474_s13, 1 }
   0xc   : > { %200 = sbr.rel (%p371_p4) target bundleno = 20 (0x14), region = 36 }
   0xd   : > { %s377_s15 = sshll.u32 %s183_s14, 4 }
   0xe   : > { %s186_s18 = scalar_lea.vmem %s505_s0, %s377_s15  ;;  %s191_s21 = scalar_lea.vmem %s506_s1, %s377_s15 }
   0xf   : > { %s489_s24 = scalar_lea.vmem %s507_s2, %s377_s15 }
  0x11   : > { %vm201_vm0 = vcmask 0   ;;  %v445_v0 = vmov 0.0  }
  0x12   : > { %202 = vst.msk [vmem:[#allocation2] sm:$0x1] %vm201_vm0, %v445_v0 }
  0x13   : > { %203 = vst.msk [vmem:[#allocation3] sm:$0x1] %vm201_vm0, %v445_v0 }
  0x14 PF: > { %v204_v1 = vld [vmem:[%s186_s18] sm:$0xff]  ;;  %v205_v3 = vld [vmem:[%s186_s18 + $0x8] sm:$0xff]  ;;  %vm212_vm1 = vcmask 523264   ;;  %v446_v11 = vmov 64.0   ;;  %vm233_vm3 = vcmask 7168   ;;  %vm248_vm4 = vcmask 0  }
  0x15   : > { %v206_v2 = vld [vmem:[%s191_s21] sm:$0xff]  ;;  %v207_v5 = vld [vmem:[%s191_s21 + $0x8] sm:$0xff]  ;;  %401 = vrcp.f32 %v446_v11  ;;  %p372_p5 = scmp.ne.s32.totalorder %s474_s13, 1 }
  0x16   : > { %v208_v4 = vsub.f32 %v204_v1, %v206_v2  ;;  %v209_v7 = vsub.f32 %v205_v3, %v207_v5  ;;  %v228_v20 = vld [vmem:[%s489_s24] sm:$0xff]  ;;  %v229_v21 = vld [vmem:[%s489_s24 + $0x8] sm:$0xff] }
  0x17   : > { %v251_v29 = vsel %vm233_vm3, %v228_v20, 0.0  ;;  %v252_v30 = vsel %vm233_vm3, %v229_v21, 0.0 }
  0x18   : > { %v210_v6 = vmul.f32 %v208_v4, %v208_v4  ;;  %v211_v9 = vmul.f32 %v209_v7, %v209_v7  ;;  %v253_v31 = vadd.f32 %v252_v30, %v251_v29 }
  0x19   : > { %v230_v46 = vld [vmem:[#allocation2] sm:$0x1] }
  0x1a   : > { %v213_v8 = vsel %vm212_vm1, %v210_v6, 0.0  ;;  %v216_v10 = vsel %vm212_vm1, %v211_v9, 0.0  ;;  %v250_v49 = vld [vmem:[#allocation3] sm:$0x1] }
  0x1b   : > { %214 = vadd.xlane.f32.xlu0 %v213_v8  ;;  %v402_v12 = vpop.eup %401 }
  0x1c   : > { %v220_v13 = vmul.f32 64.0, %v402_v12  ;;  %vm224_vm2 = vweird.f32 %v402_v12 }
  0x1e   : > { %v221_v14 = vsub.f32 1.0, %v220_v13 }
  0x20   : > { %v222_v15 = vmul.f32 %v402_v12, %v221_v14 }
  0x22   : > { %v223_v16 = vadd.f32 %v402_v12, %v222_v15 }
  0x23   : > { %217 = vadd.xlane.f32.xlu0 %v216_v10 }
  0x24   : > { %v225_v18 = vsel %vm224_vm2, %v402_v12, %v223_v16 }
  0x8e   : > { %v215_v17 = vpop.xlane.xlu0 %214 }
  0x8f   : > { %v226_v19 = vmul.f32 %v225_v18, %v215_v17 }
  0x91   : > { %v231_v23 = vmul.f32 %v228_v20, %v226_v19 }
  0x93   : > { %v234_v26 = vsel %vm233_vm3, %v231_v23, 0.0 }
  0x96   : > { %v218_v22 = vpop.xlane.xlu0 %217 }
  0x97   : > { %v227_v24 = vmul.f32 %v225_v18, %v218_v22 }
  0x99   : > { %v232_v25 = vmul.f32 %v229_v21, %v227_v24 }
  0x9b   : > { %v235_v27 = vsel %vm233_vm3, %v232_v25, 0.0 }
  0x9c   : > { %v236_v28 = vadd.f32 %v235_v27, %v234_v26 }
  0x9e   : > { %237 = vadd.xlane.f32.xlu1 %v236_v28 }
  0xa6   : > { %254 = vadd.xlane.f32.xlu1 %v253_v31 }
 0x111   : > { %v238_v32 = vpop.xlane.xlu1 %237 }
 0x112   : > { %v239_v33 = vrot.slane %v238_v32, 4 }
 0x114   : > { %v240_v34 = vadd.f32 %v239_v33, %v238_v32 }
 0x116   : > { %v241_v35 = vrot.slane %v240_v34, 2 }
 0x118   : > { %v242_v36 = vadd.f32 %v241_v35, %v240_v34 }
 0x119   : > { %v255_v37 = vpop.xlane.xlu1 %254 }
 0x11a   : > { %v256_v38 = vrot.slane %v255_v37, 4  ;;  %v243_v39 = vrot.slane %v242_v36, 1 }
 0x11c   : > { %v257_v40 = vadd.f32 %v256_v38, %v255_v37  ;;  %v244_v41 = vadd.f32 %v243_v39, %v242_v36 }
 0x11e   : > { %v258_v42 = vrot.slane %v257_v40, 2  ;;  %380 = vpush %v244_v41 }
 0x120   : > { %v259_v43 = vadd.f32 %v258_v42, %v257_v40 }
 0x122   : > { %v260_v44 = vrot.slane %v259_v43, 1 }
 0x124   : > { %v261_v45 = vadd.f32 %v260_v44, %v259_v43 }
 0x126   : > { %382 = vpush %v261_v45 }
 0x14f   : > { %s381_s25 = spop %380 }
 0x150   : > { %v246_v47 = vstv %s381_s25 }
 0x151   : > { %v247_v48 = vadd.f32 %v246_v47, %v230_v46 }
 0x153   : > { %249 = vst.msk [vmem:[#allocation2] sm:$0x1] %vm248_vm4, %v247_v48 }
 0x157   : > { %s383_s26 = spop %382  ;;  %269 = sbr.rel (%p372_p5) target bundleno = 377 (0x179), region = 40 }
 0x158   : > { %v263_v50 = vstv %s383_s26 }
 0x159   : > { %v264_v51 = vadd.f32 %v263_v50, %v250_v49 }
 0x15b   : > { %265 = vst.msk [vmem:[#allocation3] sm:$0x1] %vm248_vm4, %v264_v51 }
 0x15c   : > { %v270_v62 = vld [vmem:[#allocation2] sm:$0x1] }
 0x162   : > { %v271_v52 = vld [vmem:[#allocation3] sm:$0x1] }
 0x163   : > { %v272_v53 = vmax.f32 %v271_v52, 1e-12 }
 0x165   : > { %403 = vrcp.f32 %v272_v53  ;;  %v284_v56 = vand.u32 2147483648, %v272_v53  ;;  %vm278_vm5 = vweird.f32 %v272_v53  ;;  %v282_v58 = vand.u32 2147483647, %v272_v53 }
 0x167   : > { %v285_v60 = vor.u32 1.1754944e-38, %v284_v56  ;;  %vm283_vm8 = vcmp.eq.f32.partialorder %v282_v58, 8.507059e+37 }
 0x16b   : > { %v404_v54 = vpop.eup %403 }
 0x16c   : > { %v274_v55 = vmul.f32 %v404_v54, %v272_v53  ;;  %vm279_vm6 = vweird.f32 %v404_v54 }
 0x16d   : > { %vm280_vm7 = vmor %vm278_vm5, %vm279_vm6 }
 0x16e   : > { %v275_v57 = vsub.f32 1.0, %v274_v55 }
 0x170   : > { %v276_v59 = vmul.f32 %v404_v54, %v275_v57 }
 0x172   : > { %v277_v61 = vadd.f32 %v404_v54, %v276_v59 }
 0x174   : > { %v281_v63 = vsel %vm280_vm7, %v404_v54, %v277_v61 }
 0x175   : > { %v286_v0 = vsel %vm283_vm8, %v285_v60, %v281_v63 }
 0x176   : > { %v287_v1 = vmul.f32 %v286_v0, %v270_v62 }
 0x178   : > { %288 = vst.msk [vmem:[#allocation4] sm:$0x1] %vm248_vm4, %v287_v1 }
 0x179 PF: > { %p388_p6 = scmp.eq.s32.totalorder %s474_s13, 1  ;;  %s447_s27 = smov [#allocation4]  }
 0x17a   : > { %s295_s28 = sshll.u32 %s447_s27, 4  ;;  %s297_s4 = sshll.u32 %s508_s3, 4  ;;  %s296_s28 = int_to_ptr.vmem [resolvable:$true] %s295_s28  ;;  %s298_s4 = int_to_ptr.hbm [resolvable:$true] %s297_s4 }
 0x17b   : > { %385 = dma.vmem_to_hbm [thread:$0]  (%p388_p6), %s296_s28, 16, %s298_s4, [#allocation5]  }
 0x17c   : > { %438 = dma.done.wait (%p388_p6), [#allocation5], 16  }
 0x17d   : > { %440 = vsyncadd (%p388_p6), [#allocation5], 4294967280 }
 0x17e PF: > { %s14_s12 = sadd.s32 1, %s443_s12  }
 0x17f   : > { %p11_p7 = scmp.ge.s32.totalorder %s14_s12, 4  }
 0x181   :  { %13 = sbr.rel (!%p11_p7) target bundleno = 1 (0x1), region = 73 }
 0x186   :  { %311 = vsyncpa [#allocation5], 1 }
 0x187   :  { %313 = vsyncpa [#allocation5 + $0x1], 1 }

</bundles_post_ra>
